<compile_context>
chip_gen: v7x
topology: tpu7x:2x2x1
jax: 0.10.0
libtpu: 0.0.40
codegen_flags: <defaults>
</compile_context>

<pallas_src>
import functools

import jax
import jax.numpy as jnp
from jax.experimental import pallas as pl
from jax.experimental.pallas import tpu as pltpu


def _round_up(x, m):
    return (x + m - 1) // m * m


# ------------------------------- Pallas kernel --------------------------------

def _upsample_conv_glu_kernel(x_ref, w_ref, b_ref, o_ref, *,
                              tap_offsets, rp, l_out, approx):
    """One batch element of Upsample(x2) -> Conv3x3(pad=1) -> GLU, phase-folded.

    x_ref: (Cin, L_in)    bf16  zero-padded activation, row-major flatten of the
                                spatially padded (H+2, W+2) image, +2 tail zeros
    w_ref: (9, 2*Rp, Cin) bf16  per-tap sub-pixel-folded weights; "a" rows then gate rows
    b_ref: (2*Rp, 1)      f32   bias ("a" half then gate half)
    o_ref: (Rp, L_out)          GLU output; rows = (chan, phase_y, phase_x), columns =
                                y*(W+2)+x on the ORIGINAL grid (2 junk cols per row are
                                cropped by the wrapper together with the pad rows)
    """
    acc = jnp.zeros((2 * rp, l_out), jnp.float32)
    # Implicit GEMM: 9 accumulating dots against lane-shifted views of the padded
    # activation block (tap gather happens in VMEM, never in HBM).
    for t, off in enumerate(tap_offsets):
        v = x_ref[:, off:off + l_out]                         # (Cin, L_out) bf16 view
        acc = acc + jnp.dot(w_ref[t], v, preferred_element_type=jnp.float32)
    acc = acc + b_ref[...]
    a = acc[:rp]                                              # sublane-aligned row split
    g = acc[rp:]
    sig = pl.reciprocal(1.0 + jnp.exp(-g), approx=approx)     # sigmoid on the EUP
    o_ref[...] = (a * sig).astype(o_ref.dtype)


# ----------------------------- Layer / module wrappers ------------------------

def decoder_layer(x, w, b, *, out_dtype=jnp.bfloat16, approx_sigmoid=True):
    """One SimpleDecoder layer: Upsample(x2, nearest) -> Conv2d(3x3, pad=1) -> GLU(dim=1).

    x: (N, Cin, H, W); w: (Cout, Cin, 3, 3) PyTorch OIHW; b: (Cout,)
    returns (N, Cout // 2, 2H, 2W) in out_dtype.
    """
    N, Cin, H, W = x.shape
    Cout = w.shape[0]
    Cg = Cout // 2
    R = 4 * Cg                          # rows per GLU half = (chan, phase_y, phase_x)
    Rp = _round_up(R, 8)                # sublane-aligned split / unmasked row tiles
    Wp = W + 2
    l_out = H * Wp                      # output columns per image (incl. 2 junk cols/row)
    tap_offsets = tuple(wy * Wp + wx for wy in range(3) for wx in range(3))
    l_in = (H + 2) * Wp + 2             # = l_out + max(tap_offsets); keeps slices in-bounds

    # --- padded, flattened activation (the ONLY activation pass in the wrapper) ---
    x_pad = jnp.pad(x.astype(jnp.bfloat16), ((0, 0), (0, 0), (1, 1), (1, 1)))
    x_flat = jnp.pad(x_pad.reshape(N, Cin, (H + 2) * Wp), ((0, 0), (0, 0), (0, 2)))

    # --- fold the x2 nearest upsample into the conv weights (sub-pixel conv) ------
    # Output phase (py, px) at original-grid (y, x) is a 3x3 window on the padded
    # original image; B[p, window_pos, kernel_tap] folds the kernel taps per phase.
    B = jnp.array([[[1., 0., 0.],
                    [0., 1., 1.],
                    [0., 0., 0.]],
                   [[0., 0., 0.],
                    [1., 1., 0.],
                    [0., 0., 1.]]], dtype=jnp.float32)
    w_win = jnp.einsum('pad,qbe,oide->opqiab', B, B, w.astype(jnp.float32))
    w_rows = w_win.reshape(Cout * 4, Cin, 3, 3)               # row = c*4 + py*2 + px
    pad_r = ((0, Rp - R), (0, 0), (0, 0), (0, 0))
    wa = jnp.pad(w_rows[:R], pad_r)                           # "a" half   (Rp, Cin, 3, 3)
    wg = jnp.pad(w_rows[R:], pad_r)                           # gate half
    w_all = jnp.concatenate([wa, wg], axis=0)                 # (2Rp, Cin, 3, 3)
    w_taps = jnp.transpose(w_all, (2, 3, 0, 1)).reshape(9, 2 * Rp, Cin).astype(jnp.bfloat16)

    bias = jnp.concatenate([
        jnp.pad(jnp.repeat(b[:Cg], 4), (0, Rp - R)),
        jnp.pad(jnp.repeat(b[Cg:], 4), (0, Rp - R)),
    ]).reshape(2 * Rp, 1).astype(jnp.float32)

    kernel = functools.partial(_upsample_conv_glu_kernel,
                               tap_offsets=tap_offsets, rp=Rp, l_out=l_out,
                               approx=approx_sigmoid)

    o = pl.pallas_call(
        kernel,
        out_shape=jax.ShapeDtypeStruct((N, Rp, l_out), out_dtype),
        grid_spec=pltpu.PrefetchScalarGridSpec(
            num_scalar_prefetch=0,
            grid=(N,),                                        # >= 2 steps: both v7x TCs busy
            in_specs=[
                pl.BlockSpec((None, Cin, l_in), lambda n: (n, 0, 0)),     # per-image block
                pl.BlockSpec((9, 2 * Rp, Cin), lambda n: (0, 0, 0)),      # resident weights
                pl.BlockSpec((2 * Rp, 1), lambda n: (0, 0)),              # resident bias
            ],
            out_specs=pl.BlockSpec((None, Rp, l_out), lambda n: (n, 0, 0)),
        ),
        compiler_params=pltpu.CompilerParams(
            dimension_semantics=("parallel",)),
    )(x_flat, w_taps, bias)

    # Phase interleave (c, py, px, y, x) -> NCHW at 2x resolution; the junk-column crop
    # and the Rp pad-row crop are fused into this single pass (bf16 for mid layers).
    o = o.reshape(N, Rp, H, Wp)[:, :R, :, :W].reshape(N, Cg, 2, 2, H, W)
    o = jnp.transpose(o, (0, 1, 4, 2, 5, 3))                  # (N, Cg, H, py, W, px)
    return o.reshape(N, Cg, 2 * H, 2 * W)


def simple_decoder_forward(x, params):
    n_layers = len(params)
    for i, (w, b) in enumerate(params):
        last = i == n_layers - 1
        x = decoder_layer(x, w, b,
                          out_dtype=jnp.float32 if last else jnp.bfloat16,
                          approx_sigmoid=not last)
    return x


def init_simple_decoder_params(key, chan_in, chan_out=3, num_upsamples=4):
    """Deterministic init mimicking PyTorch Conv2d default (uniform +/- 1/sqrt(fan_in))."""
    params = []
    chans = chan_in
    for ind in range(num_upsamples):
        last = ind == num_upsamples - 1
        cout = chans if not last else chan_out * 2
        key, kw, kb = jax.random.split(key, 3)
        fan_in = chans * 3 * 3
        bound = 1.0 / (fan_in ** 0.5)
        w = jax.random.uniform(kw, (cout, chans, 3, 3), jnp.float32, -bound, bound)
        b = jax.random.uniform(kb, (cout,), jnp.float32, -bound, bound)
        params.append((w, b))
        chans //= 2
    return params


# ------------------------------- Pure-JAX reference ---------------------------

def ref_layer(x, w, b):
    x_up = jnp.repeat(jnp.repeat(x, 2, axis=2), 2, axis=3)
    y = jax.lax.conv_general_dilated(
        x_up, w, window_strides=(1, 1), padding=((1, 1), (1, 1)),
        dimension_numbers=("NCHW", "OIHW", "NCHW"))
    y = y + b[None, :, None, None]
    c = y.shape[1] // 2
    return y[:, :c] * jax.nn.sigmoid(y[:, c:])


def ref_forward(x, params):
    for (w, b) in params:
        x = ref_layer(x, w, b)
    return x


# ------------------------------------- main ------------------------------------

if __name__ == "__main__":
    key = jax.random.PRNGKey(0)
    k_x, k_p = jax.random.split(key)

    # small shapes: batch=2, chan_in=16, spatial=4x4; 4 upsamples -> (2, 3, 64, 64)
    N, CHAN_IN, H, W = 2, 16, 4, 4
    x = jax.random.normal(k_x, (N, CHAN_IN, H, W), jnp.float32)

    params = init_simple_decoder_params(k_p, chan_in=CHAN_IN, chan_out=3, num_upsamples=4)

    fwd = jax.jit(functools.partial(simple_decoder_forward, params=params))
    out = jax.block_until_ready(fwd(x))

    assert out.shape == (N, 3, 16 * H, 16 * W), out.shape
    assert out.dtype == jnp.float32

    ref = jax.block_until_ready(ref_forward(x, params))
    # bf16 matmul operands + bf16 intermediate activations (f32 MXU accumulation)
    # -> relaxed tolerance vs the pure-f32 reference.
    max_err = float(jnp.max(jnp.abs(out - ref)))
    assert jnp.allclose(out, ref, rtol=2e-2, atol=2e-2), max_err

    print("KERNEL_OK")
</pallas_src>

<mosaic_0001>
module attributes {stable_mosaic.version = 11 : i64} {
  func.func @_upsample_conv_glu_kernel(%arg0: i32, %arg1: memref<1x16x38xbf16, #tpu.memory_space<vmem>>, %arg2: memref<9x64x16xbf16, #tpu.memory_space<vmem>>, %arg3: memref<64x1xf32, #tpu.memory_space<vmem>>, %arg4: memref<1x32x24xbf16, #tpu.memory_space<vmem>>) attributes {dimension_semantics = [#tpu.dimension_semantics<parallel>], iteration_bounds = array<i64: 2>, scalar_prefetch = 0 : i64, scratch_operands = 0 : i64, tpu.core_type = #tpu.core_type<tc>, window_params = [{transform_indices = @transform_0, window_bounds = array<i64: 1, 16, 38>}, {pipeline_mode = #tpu.pipeline_mode<synchronous>, transform_indices = @transform_1, window_bounds = array<i64: 9, 64, 16>}, {pipeline_mode = #tpu.pipeline_mode<synchronous>, transform_indices = @transform_2, window_bounds = array<i64: 64, 1>}, {transform_indices = @transform_3, window_bounds = array<i64: 1, 32, 24>}]} {
    %cst = arith.constant 0.000000e+00 : f32
    %0 = vector.broadcast %cst : f32 to vector<64x24xf32>
    %c0 = arith.constant 0 : index
    %c0_0 = arith.constant 0 : index
    %c0_1 = arith.constant 0 : index
    %1 = vector.load %arg1[%c0, %c0_0, %c0_1] : memref<1x16x38xbf16, #tpu.memory_space<vmem>>, vector<1x16x24xbf16>
    %2 = vector.shape_cast %1 : vector<1x16x24xbf16> to vector<16x24xbf16>
    %c0_2 = arith.constant 0 : index
    %c0_3 = arith.constant 0 : index
    %c0_4 = arith.constant 0 : index
    %3 = vector.load %arg2[%c0_2, %c0_3, %c0_4] : memref<9x64x16xbf16, #tpu.memory_space<vmem>>, vector<1x64x16xbf16>
    %4 = vector.shape_cast %3 : vector<1x64x16xbf16> to vector<64x16xbf16>
    %cst_5 = arith.constant dense<0.000000e+00> : vector<64x24xf32>
    %5 = tpu.matmul %4, %2, %cst_5 {dimension_numbers = #tpu.dot_dimension_numbers<[1], [0], [0], [1], [0, 0, 1, 1], [], []>} : vector<64x16xbf16>, vector<16x24xbf16>, vector<64x24xf32> -> vector<64x24xf32>
    %6 = arith.addf %0, %5 : vector<64x24xf32>
    %c0_6 = arith.constant 0 : index
    %c0_7 = arith.constant 0 : index
    %c1 = arith.constant 1 : index
    %7 = vector.load %arg1[%c0_6, %c0_7, %c1] : memref<1x16x38xbf16, #tpu.memory_space<vmem>>, vector<1x16x24xbf16>
    %8 = vector.shape_cast %7 : vector<1x16x24xbf16> to vector<16x24xbf16>
    %c1_8 = arith.constant 1 : index
    %c0_9 = arith.constant 0 : index
    %c0_10 = arith.constant 0 : index
    %9 = vector.load %arg2[%c1_8, %c0_9, %c0_10] : memref<9x64x16xbf16, #tpu.memory_space<vmem>>, vector<1x64x16xbf16>
    %10 = vector.shape_cast %9 : vector<1x64x16xbf16> to vector<64x16xbf16>
    %cst_11 = arith.constant dense<0.000000e+00> : vector<64x24xf32>
    %11 = tpu.matmul %10, %8, %cst_11 {dimension_numbers = #tpu.dot_dimension_numbers<[1], [0], [0], [1], [0, 0, 1, 1], [], []>} : vector<64x16xbf16>, vector<16x24xbf16>, vector<64x24xf32> -> vector<64x24xf32>
    %12 = arith.addf %6, %11 : vector<64x24xf32>
    %c0_12 = arith.constant 0 : index
    %c0_13 = arith.constant 0 : index
    %c2 = arith.constant 2 : index
    %13 = vector.load %arg1[%c0_12, %c0_13, %c2] : memref<1x16x38xbf16, #tpu.memory_space<vmem>>, vector<1x16x24xbf16>
    %14 = vector.shape_cast %13 : vector<1x16x24xbf16> to vector<16x24xbf16>
    %c2_14 = arith.constant 2 : index
    %c0_15 = arith.constant 0 : index
    %c0_16 = arith.constant 0 : index
    %15 = vector.load %arg2[%c2_14, %c0_15, %c0_16] : memref<9x64x16xbf16, #tpu.memory_space<vmem>>, vector<1x64x16xbf16>
    %16 = vector.shape_cast %15 : vector<1x64x16xbf16> to vector<64x16xbf16>
    %cst_17 = arith.constant dense<0.000000e+00> : vector<64x24xf32>
    %17 = tpu.matmul %16, %14, %cst_17 {dimension_numbers = #tpu.dot_dimension_numbers<[1], [0], [0], [1], [0, 0, 1, 1], [], []>} : vector<64x16xbf16>, vector<16x24xbf16>, vector<64x24xf32> -> vector<64x24xf32>
    %18 = arith.addf %12, %17 : vector<64x24xf32>
    %c0_18 = arith.constant 0 : index
    %c0_19 = arith.constant 0 : index
    %c6 = arith.constant 6 : index
    %19 = vector.load %arg1[%c0_18, %c0_19, %c6] : memref<1x16x38xbf16, #tpu.memory_space<vmem>>, vector<1x16x24xbf16>
    %20 = vector.shape_cast %19 : vector<1x16x24xbf16> to vector<16x24xbf16>
    %c3 = arith.constant 3 : index
    %c0_20 = arith.constant 0 : index
    %c0_21 = arith.constant 0 : index
    %21 = vector.load %arg2[%c3, %c0_20, %c0_21] : memref<9x64x16xbf16, #tpu.memory_space<vmem>>, vector<1x64x16xbf16>
    %22 = vector.shape_cast %21 : vector<1x64x16xbf16> to vector<64x16xbf16>
    %cst_22 = arith.constant dense<0.000000e+00> : vector<64x24xf32>
    %23 = tpu.matmul %22, %20, %cst_22 {dimension_numbers = #tpu.dot_dimension_numbers<[1], [0], [0], [1], [0, 0, 1, 1], [], []>} : vector<64x16xbf16>, vector<16x24xbf16>, vector<64x24xf32> -> vector<64x24xf32>
    %24 = arith.addf %18, %23 : vector<64x24xf32>
    %c0_23 = arith.constant 0 : index
    %c0_24 = arith.constant 0 : index
    %c7 = arith.constant 7 : index
    %25 = vector.load %arg1[%c0_23, %c0_24, %c7] : memref<1x16x38xbf16, #tpu.memory_space<vmem>>, vector<1x16x24xbf16>
    %26 = vector.shape_cast %25 : vector<1x16x24xbf16> to vector<16x24xbf16>
    %c4 = arith.constant 4 : index
    %c0_25 = arith.constant 0 : index
    %c0_26 = arith.constant 0 : index
    %27 = vector.load %arg2[%c4, %c0_25, %c0_26] : memref<9x64x16xbf16, #tpu.memory_space<vmem>>, vector<1x64x16xbf16>
    %28 = vector.shape_cast %27 : vector<1x64x16xbf16> to vector<64x16xbf16>
    %cst_27 = arith.constant dense<0.000000e+00> : vector<64x24xf32>
    %29 = tpu.matmul %28, %26, %cst_27 {dimension_numbers = #tpu.dot_dimension_numbers<[1], [0], [0], [1], [0, 0, 1, 1], [], []>} : vector<64x16xbf16>, vector<16x24xbf16>, vector<64x24xf32> -> vector<64x24xf32>
    %30 = arith.addf %24, %29 : vector<64x24xf32>
    %c0_28 = arith.constant 0 : index
    %c0_29 = arith.constant 0 : index
    %c8 = arith.constant 8 : index
    %31 = vector.load %arg1[%c0_28, %c0_29, %c8] : memref<1x16x38xbf16, #tpu.memory_space<vmem>>, vector<1x16x24xbf16>
    %32 = vector.shape_cast %31 : vector<1x16x24xbf16> to vector<16x24xbf16>
    %c5 = arith.constant 5 : index
    %c0_30 = arith.constant 0 : index
    %c0_31 = arith.constant 0 : index
    %33 = vector.load %arg2[%c5, %c0_30, %c0_31] : memref<9x64x16xbf16, #tpu.memory_space<vmem>>, vector<1x64x16xbf16>
    %34 = vector.shape_cast %33 : vector<1x64x16xbf16> to vector<64x16xbf16>
    %cst_32 = arith.constant dense<0.000000e+00> : vector<64x24xf32>
    %35 = tpu.matmul %34, %32, %cst_32 {dimension_numbers = #tpu.dot_dimension_numbers<[1], [0], [0], [1], [0, 0, 1, 1], [], []>} : vector<64x16xbf16>, vector<16x24xbf16>, vector<64x24xf32> -> vector<64x24xf32>
    %36 = arith.addf %30, %35 : vector<64x24xf32>
    %c0_33 = arith.constant 0 : index
    %c0_34 = arith.constant 0 : index
    %c12 = arith.constant 12 : index
    %37 = vector.load %arg1[%c0_33, %c0_34, %c12] : memref<1x16x38xbf16, #tpu.memory_space<vmem>>, vector<1x16x24xbf16>
    %38 = vector.shape_cast %37 : vector<1x16x24xbf16> to vector<16x24xbf16>
    %c6_35 = arith.constant 6 : index
    %c0_36 = arith.constant 0 : index
    %c0_37 = arith.constant 0 : index
    %39 = vector.load %arg2[%c6_35, %c0_36, %c0_37] : memref<9x64x16xbf16, #tpu.memory_space<vmem>>, vector<1x64x16xbf16>
    %40 = vector.shape_cast %39 : vector<1x64x16xbf16> to vector<64x16xbf16>
    %cst_38 = arith.constant dense<0.000000e+00> : vector<64x24xf32>
    %41 = tpu.matmul %40, %38, %cst_38 {dimension_numbers = #tpu.dot_dimension_numbers<[1], [0], [0], [1], [0, 0, 1, 1], [], []>} : vector<64x16xbf16>, vector<16x24xbf16>, vector<64x24xf32> -> vector<64x24xf32>
    %42 = arith.addf %36, %41 : vector<64x24xf32>
    %c0_39 = arith.constant 0 : index
    %c0_40 = arith.constant 0 : index
    %c13 = arith.constant 13 : index
    %43 = vector.load %arg1[%c0_39, %c0_40, %c13] : memref<1x16x38xbf16, #tpu.memory_space<vmem>>, vector<1x16x24xbf16>
    %44 = vector.shape_cast %43 : vector<1x16x24xbf16> to vector<16x24xbf16>
    %c7_41 = arith.constant 7 : index
    %c0_42 = arith.constant 0 : index
    %c0_43 = arith.constant 0 : index
    %45 = vector.load %arg2[%c7_41, %c0_42, %c0_43] : memref<9x64x16xbf16, #tpu.memory_space<vmem>>, vector<1x64x16xbf16>
    %46 = vector.shape_cast %45 : vector<1x64x16xbf16> to vector<64x16xbf16>
    %cst_44 = arith.constant dense<0.000000e+00> : vector<64x24xf32>
    %47 = tpu.matmul %46, %44, %cst_44 {dimension_numbers = #tpu.dot_dimension_numbers<[1], [0], [0], [1], [0, 0, 1, 1], [], []>} : vector<64x16xbf16>, vector<16x24xbf16>, vector<64x24xf32> -> vector<64x24xf32>
    %48 = arith.addf %42, %47 : vector<64x24xf32>
    %c0_45 = arith.constant 0 : index
    %c0_46 = arith.constant 0 : index
    %c14 = arith.constant 14 : index
    %49 = vector.load %arg1[%c0_45, %c0_46, %c14] : memref<1x16x38xbf16, #tpu.memory_space<vmem>>, vector<1x16x24xbf16>
    %50 = vector.shape_cast %49 : vector<1x16x24xbf16> to vector<16x24xbf16>
    %c8_47 = arith.constant 8 : index
    %c0_48 = arith.constant 0 : index
    %c0_49 = arith.constant 0 : index
    %51 = vector.load %arg2[%c8_47, %c0_48, %c0_49] : memref<9x64x16xbf16, #tpu.memory_space<vmem>>, vector<1x64x16xbf16>
    %52 = vector.shape_cast %51 : vector<1x64x16xbf16> to vector<64x16xbf16>
    %cst_50 = arith.constant dense<0.000000e+00> : vector<64x24xf32>
    %53 = tpu.matmul %52, %50, %cst_50 {dimension_numbers = #tpu.dot_dimension_numbers<[1], [0], [0], [1], [0, 0, 1, 1], [], []>} : vector<64x16xbf16>, vector<16x24xbf16>, vector<64x24xf32> -> vector<64x24xf32>
    %54 = arith.addf %48, %53 : vector<64x24xf32>
    %c0_51 = arith.constant 0 : index
    %c0_52 = arith.constant 0 : index
    %55 = vector.load %arg3[%c0_51, %c0_52] : memref<64x1xf32, #tpu.memory_space<vmem>>, vector<64x1xf32>
    %56 = vector.broadcast %55 : vector<64x1xf32> to vector<64x24xf32>
    %57 = arith.addf %54, %56 : vector<64x24xf32>
    %58 = vector.extract_strided_slice %57 {offsets = [0, 0], sizes = [32, 24], strides = [1, 1]} : vector<64x24xf32> to vector<32x24xf32>
    %59 = vector.extract_strided_slice %57 {offsets = [32, 0], sizes = [32, 24], strides = [1, 1]} : vector<64x24xf32> to vector<32x24xf32>
    %cst_53 = arith.constant 0.000000e+00 : f32
    %60 = vector.broadcast %cst_53 : f32 to vector<32x24xf32>
    %61 = arith.subf %60, %59 : vector<32x24xf32>
    %62 = math.exp %61 : vector<32x24xf32>
    %cst_54 = arith.constant 1.000000e+00 : f32
    %63 = vector.broadcast %cst_54 : f32 to vector<32x24xf32>
    %64 = arith.addf %63, %62 : vector<32x24xf32>
    %65 = tpu.reciprocal %64 {approx = true} : vector<32x24xf32> -> vector<32x24xf32>
    %66 = arith.mulf %58, %65 : vector<32x24xf32>
    %67 = arith.truncf %66 : vector<32x24xf32> to vector<32x24xbf16>
    %c0_55 = arith.constant 0 : index
    %c0_56 = arith.constant 0 : index
    %c0_57 = arith.constant 0 : index
    %68 = vector.load %arg4[%c0_55, %c0_56, %c0_57] : memref<1x32x24xbf16, #tpu.memory_space<vmem>>, vector<1x32x24xbf16>
    %69 = vector.shape_cast %68 : vector<1x32x24xbf16> to vector<32x24xbf16>
    %70 = vector.shape_cast %67 : vector<32x24xbf16> to vector<1x32x24xbf16>
    tpu.vector_store %arg4[%c0_55, %c0_56, %c0_57], %70 {strides = array<i32>} : memref<1x32x24xbf16, #tpu.memory_space<vmem>>, vector<1x32x24xbf16>,
    return
  }
  func.func @transform_0(%arg0: i32) -> (i32, i32, i32) {
    %c0_i32 = arith.constant 0 : i32
    %c0_i32_0 = arith.constant 0 : i32
    %c0_i32_1 = arith.constant 0 : i32
    return %arg0, %c0_i32, %c0_i32_0 : i32, i32, i32
  }
  func.func @transform_1(%arg0: i32) -> (i32, i32, i32) {
    %c0_i32 = arith.constant 0 : i32
    %c0_i32_0 = arith.constant 0 : i32
    %c0_i32_1 = arith.constant 0 : i32
    %c0_i32_2 = arith.constant 0 : i32
    return %c0_i32, %c0_i32_0, %c0_i32_1 : i32, i32, i32
  }
  func.func @transform_2(%arg0: i32) -> (i32, i32) {
    %c0_i32 = arith.constant 0 : i32
    %c0_i32_0 = arith.constant 0 : i32
    %c0_i32_1 = arith.constant 0 : i32
    return %c0_i32, %c0_i32_0 : i32, i32
  }
  func.func @transform_3(%arg0: i32) -> (i32, i32, i32) {
    %c0_i32 = arith.constant 0 : i32
    %c0_i32_0 = arith.constant 0 : i32
    %c0_i32_1 = arith.constant 0 : i32
    return %arg0, %c0_i32, %c0_i32_0 : i32, i32, i32
  }
}

module attributes {stable_mosaic.version = 11 : i64} {
  func.func @_upsample_conv_glu_kernel(%arg0: i32, %arg1: memref<1x8x102xbf16, #tpu.memory_space<vmem>>, %arg2: memref<9x32x8xbf16, #tpu.memory_space<vmem>>, %arg3: memref<32x1xf32, #tpu.memory_space<vmem>>, %arg4: memref<1x16x80xbf16, #tpu.memory_space<vmem>>) attributes {dimension_semantics = [#tpu.dimension_semantics<parallel>], iteration_bounds = array<i64: 2>, scalar_prefetch = 0 : i64, scratch_operands = 0 : i64, tpu.core_type = #tpu.core_type<tc>, window_params = [{transform_indices = @transform_0, window_bounds = array<i64: 1, 8, 102>}, {pipeline_mode = #tpu.pipeline_mode<synchronous>, transform_indices = @transform_1, window_bounds = array<i64: 9, 32, 8>}, {pipeline_mode = #tpu.pipeline_mode<synchronous>, transform_indices = @transform_2, window_bounds = array<i64: 32, 1>}, {transform_indices = @transform_3, window_bounds = array<i64: 1, 16, 80>}]} {
    %cst = arith.constant 0.000000e+00 : f32
    %0 = vector.broadcast %cst : f32 to vector<32x80xf32>
    %c0 = arith.constant 0 : index
    %c0_0 = arith.constant 0 : index
    %c0_1 = arith.constant 0 : index
    %1 = vector.load %arg1[%c0, %c0_0, %c0_1] : memref<1x8x102xbf16, #tpu.memory_space<vmem>>, vector<1x8x80xbf16>
    %2 = vector.shape_cast %1 : vector<1x8x80xbf16> to vector<8x80xbf16>
    %c0_2 = arith.constant 0 : index
    %c0_3 = arith.constant 0 : index
    %c0_4 = arith.constant 0 : index
    %3 = vector.load %arg2[%c0_2, %c0_3, %c0_4] : memref<9x32x8xbf16, #tpu.memory_space<vmem>>, vector<1x32x8xbf16>
    %4 = vector.shape_cast %3 : vector<1x32x8xbf16> to vector<32x8xbf16>
    %cst_5 = arith.constant dense<0.000000e+00> : vector<32x80xf32>
    %5 = tpu.matmul %4, %2, %cst_5 {dimension_numbers = #tpu.dot_dimension_numbers<[1], [0], [0], [1], [0, 0, 1, 1], [], []>} : vector<32x8xbf16>, vector<8x80xbf16>, vector<32x80xf32> -> vector<32x80xf32>
    %6 = arith.addf %0, %5 : vector<32x80xf32>
    %c0_6 = arith.constant 0 : index
    %c0_7 = arith.constant 0 : index
    %c1 = arith.constant 1 : index
    %7 = vector.load %arg1[%c0_6, %c0_7, %c1] : memref<1x8x102xbf16, #tpu.memory_space<vmem>>, vector<1x8x80xbf16>
    %8 = vector.shape_cast %7 : vector<1x8x80xbf16> to vector<8x80xbf16>
    %c1_8 = arith.constant 1 : index
    %c0_9 = arith.constant 0 : index
    %c0_10 = arith.constant 0 : index
    %9 = vector.load %arg2[%c1_8, %c0_9, %c0_10] : memref<9x32x8xbf16, #tpu.memory_space<vmem>>, vector<1x32x8xbf16>
    %10 = vector.shape_cast %9 : vector<1x32x8xbf16> to vector<32x8xbf16>
    %cst_11 = arith.constant dense<0.000000e+00> : vector<32x80xf32>
    %11 = tpu.matmul %10, %8, %cst_11 {dimension_numbers = #tpu.dot_dimension_numbers<[1], [0], [0], [1], [0, 0, 1, 1], [], []>} : vector<32x8xbf16>, vector<8x80xbf16>, vector<32x80xf32> -> vector<32x80xf32>
    %12 = arith.addf %6, %11 : vector<32x80xf32>
    %c0_12 = arith.constant 0 : index
    %c0_13 = arith.constant 0 : index
    %c2 = arith.constant 2 : index
    %13 = vector.load %arg1[%c0_12, %c0_13, %c2] : memref<1x8x102xbf16, #tpu.memory_space<vmem>>, vector<1x8x80xbf16>
    %14 = vector.shape_cast %13 : vector<1x8x80xbf16> to vector<8x80xbf16>
    %c2_14 = arith.constant 2 : index
    %c0_15 = arith.constant 0 : index
    %c0_16 = arith.constant 0 : index
    %15 = vector.load %arg2[%c2_14, %c0_15, %c0_16] : memref<9x32x8xbf16, #tpu.memory_space<vmem>>, vector<1x32x8xbf16>
    %16 = vector.shape_cast %15 : vector<1x32x8xbf16> to vector<32x8xbf16>
    %cst_17 = arith.constant dense<0.000000e+00> : vector<32x80xf32>
    %17 = tpu.matmul %16, %14, %cst_17 {dimension_numbers = #tpu.dot_dimension_numbers<[1], [0], [0], [1], [0, 0, 1, 1], [], []>} : vector<32x8xbf16>, vector<8x80xbf16>, vector<32x80xf32> -> vector<32x80xf32>
    %18 = arith.addf %12, %17 : vector<32x80xf32>
    %c0_18 = arith.constant 0 : index
    %c0_19 = arith.constant 0 : index
    %c10 = arith.constant 10 : index
    %19 = vector.load %arg1[%c0_18, %c0_19, %c10] : memref<1x8x102xbf16, #tpu.memory_space<vmem>>, vector<1x8x80xbf16>
    %20 = vector.shape_cast %19 : vector<1x8x80xbf16> to vector<8x80xbf16>
    %c3 = arith.constant 3 : index
    %c0_20 = arith.constant 0 : index
    %c0_21 = arith.constant 0 : index
    %21 = vector.load %arg2[%c3, %c0_20, %c0_21] : memref<9x32x8xbf16, #tpu.memory_space<vmem>>, vector<1x32x8xbf16>
    %22 = vector.shape_cast %21 : vector<1x32x8xbf16> to vector<32x8xbf16>
    %cst_22 = arith.constant dense<0.000000e+00> : vector<32x80xf32>
    %23 = tpu.matmul %22, %20, %cst_22 {dimension_numbers = #tpu.dot_dimension_numbers<[1], [0], [0], [1], [0, 0, 1, 1], [], []>} : vector<32x8xbf16>, vector<8x80xbf16>, vector<32x80xf32> -> vector<32x80xf32>
    %24 = arith.addf %18, %23 : vector<32x80xf32>
    %c0_23 = arith.constant 0 : index
    %c0_24 = arith.constant 0 : index
    %c11 = arith.constant 11 : index
    %25 = vector.load %arg1[%c0_23, %c0_24, %c11] : memref<1x8x102xbf16, #tpu.memory_space<vmem>>, vector<1x8x80xbf16>
    %26 = vector.shape_cast %25 : vector<1x8x80xbf16> to vector<8x80xbf16>
    %c4 = arith.constant 4 : index
    %c0_25 = arith.constant 0 : index
    %c0_26 = arith.constant 0 : index
    %27 = vector.load %arg2[%c4, %c0_25, %c0_26] : memref<9x32x8xbf16, #tpu.memory_space<vmem>>, vector<1x32x8xbf16>
    %28 = vector.shape_cast %27 : vector<1x32x8xbf16> to vector<32x8xbf16>
    %cst_27 = arith.constant dense<0.000000e+00> : vector<32x80xf32>
    %29 = tpu.matmul %28, %26, %cst_27 {dimension_numbers = #tpu.dot_dimension_numbers<[1], [0], [0], [1], [0, 0, 1, 1], [], []>} : vector<32x8xbf16>, vector<8x80xbf16>, vector<32x80xf32> -> vector<32x80xf32>
    %30 = arith.addf %24, %29 : vector<32x80xf32>
    %c0_28 = arith.constant 0 : index
    %c0_29 = arith.constant 0 : index
    %c12 = arith.constant 12 : index
    %31 = vector.load %arg1[%c0_28, %c0_29, %c12] : memref<1x8x102xbf16, #tpu.memory_space<vmem>>, vector<1x8x80xbf16>
    %32 = vector.shape_cast %31 : vector<1x8x80xbf16> to vector<8x80xbf16>
    %c5 = arith.constant 5 : index
    %c0_30 = arith.constant 0 : index
    %c0_31 = arith.constant 0 : index
    %33 = vector.load %arg2[%c5, %c0_30, %c0_31] : memref<9x32x8xbf16, #tpu.memory_space<vmem>>, vector<1x32x8xbf16>
    %34 = vector.shape_cast %33 : vector<1x32x8xbf16> to vector<32x8xbf16>
    %cst_32 = arith.constant dense<0.000000e+00> : vector<32x80xf32>
    %35 = tpu.matmul %34, %32, %cst_32 {dimension_numbers = #tpu.dot_dimension_numbers<[1], [0], [0], [1], [0, 0, 1, 1], [], []>} : vector<32x8xbf16>, vector<8x80xbf16>, vector<32x80xf32> -> vector<32x80xf32>
    %36 = arith.addf %30, %35 : vector<32x80xf32>
    %c0_33 = arith.constant 0 : index
    %c0_34 = arith.constant 0 : index
    %c20 = arith.constant 20 : index
    %37 = vector.load %arg1[%c0_33, %c0_34, %c20] : memref<1x8x102xbf16, #tpu.memory_space<vmem>>, vector<1x8x80xbf16>
    %38 = vector.shape_cast %37 : vector<1x8x80xbf16> to vector<8x80xbf16>
    %c6 = arith.constant 6 : index
    %c0_35 = arith.constant 0 : index
    %c0_36 = arith.constant 0 : index
    %39 = vector.load %arg2[%c6, %c0_35, %c0_36] : memref<9x32x8xbf16, #tpu.memory_space<vmem>>, vector<1x32x8xbf16>
    %40 = vector.shape_cast %39 : vector<1x32x8xbf16> to vector<32x8xbf16>
    %cst_37 = arith.constant dense<0.000000e+00> : vector<32x80xf32>
    %41 = tpu.matmul %40, %38, %cst_37 {dimension_numbers = #tpu.dot_dimension_numbers<[1], [0], [0], [1], [0, 0, 1, 1], [], []>} : vector<32x8xbf16>, vector<8x80xbf16>, vector<32x80xf32> -> vector<32x80xf32>
    %42 = arith.addf %36, %41 : vector<32x80xf32>
    %c0_38 = arith.constant 0 : index
    %c0_39 = arith.constant 0 : index
    %c21 = arith.constant 21 : index
    %43 = vector.load %arg1[%c0_38, %c0_39, %c21] : memref<1x8x102xbf16, #tpu.memory_space<vmem>>, vector<1x8x80xbf16>
    %44 = vector.shape_cast %43 : vector<1x8x80xbf16> to vector<8x80xbf16>
    %c7 = arith.constant 7 : index
    %c0_40 = arith.constant 0 : index
    %c0_41 = arith.constant 0 : index
    %45 = vector.load %arg2[%c7, %c0_40, %c0_41] : memref<9x32x8xbf16, #tpu.memory_space<vmem>>, vector<1x32x8xbf16>
    %46 = vector.shape_cast %45 : vector<1x32x8xbf16> to vector<32x8xbf16>
    %cst_42 = arith.constant dense<0.000000e+00> : vector<32x80xf32>
    %47 = tpu.matmul %46, %44, %cst_42 {dimension_numbers = #tpu.dot_dimension_numbers<[1], [0], [0], [1], [0, 0, 1, 1], [], []>} : vector<32x8xbf16>, vector<8x80xbf16>, vector<32x80xf32> -> vector<32x80xf32>
    %48 = arith.addf %42, %47 : vector<32x80xf32>
    %c0_43 = arith.constant 0 : index
    %c0_44 = arith.constant 0 : index
    %c22 = arith.constant 22 : index
    %49 = vector.load %arg1[%c0_43, %c0_44, %c22] : memref<1x8x102xbf16, #tpu.memory_space<vmem>>, vector<1x8x80xbf16>
    %50 = vector.shape_cast %49 : vector<1x8x80xbf16> to vector<8x80xbf16>
    %c8 = arith.constant 8 : index
    %c0_45 = arith.constant 0 : index
    %c0_46 = arith.constant 0 : index
    %51 = vector.load %arg2[%c8, %c0_45, %c0_46] : memref<9x32x8xbf16, #tpu.memory_space<vmem>>, vector<1x32x8xbf16>
    %52 = vector.shape_cast %51 : vector<1x32x8xbf16> to vector<32x8xbf16>
    %cst_47 = arith.constant dense<0.000000e+00> : vector<32x80xf32>
    %53 = tpu.matmul %52, %50, %cst_47 {dimension_numbers = #tpu.dot_dimension_numbers<[1], [0], [0], [1], [0, 0, 1, 1], [], []>} : vector<32x8xbf16>, vector<8x80xbf16>, vector<32x80xf32> -> vector<32x80xf32>
    %54 = arith.addf %48, %53 : vector<32x80xf32>
    %c0_48 = arith.constant 0 : index
    %c0_49 = arith.constant 0 : index
    %55 = vector.load %arg3[%c0_48, %c0_49] : memref<32x1xf32, #tpu.memory_space<vmem>>, vector<32x1xf32>
    %56 = vector.broadcast %55 : vector<32x1xf32> to vector<32x80xf32>
    %57 = arith.addf %54, %56 : vector<32x80xf32>
    %58 = vector.extract_strided_slice %57 {offsets = [0, 0], sizes = [16, 80], strides = [1, 1]} : vector<32x80xf32> to vector<16x80xf32>
    %59 = vector.extract_strided_slice %57 {offsets = [16, 0], sizes = [16, 80], strides = [1, 1]} : vector<32x80xf32> to vector<16x80xf32>
    %cst_50 = arith.constant 0.000000e+00 : f32
    %60 = vector.broadcast %cst_50 : f32 to vector<16x80xf32>
    %61 = arith.subf %60, %59 : vector<16x80xf32>
    %62 = math.exp %61 : vector<16x80xf32>
    %cst_51 = arith.constant 1.000000e+00 : f32
    %63 = vector.broadcast %cst_51 : f32 to vector<16x80xf32>
    %64 = arith.addf %63, %62 : vector<16x80xf32>
    %65 = tpu.reciprocal %64 {approx = true} : vector<16x80xf32> -> vector<16x80xf32>
    %66 = arith.mulf %58, %65 : vector<16x80xf32>
    %67 = arith.truncf %66 : vector<16x80xf32> to vector<16x80xbf16>
    %c0_52 = arith.constant 0 : index
    %c0_53 = arith.constant 0 : index
    %c0_54 = arith.constant 0 : index
    %68 = vector.load %arg4[%c0_52, %c0_53, %c0_54] : memref<1x16x80xbf16, #tpu.memory_space<vmem>>, vector<1x16x80xbf16>
    %69 = vector.shape_cast %68 : vector<1x16x80xbf16> to vector<16x80xbf16>
    %70 = vector.shape_cast %67 : vector<16x80xbf16> to vector<1x16x80xbf16>
    tpu.vector_store %arg4[%c0_52, %c0_53, %c0_54], %70 {strides = array<i32>} : memref<1x16x80xbf16, #tpu.memory_space<vmem>>, vector<1x16x80xbf16>,
    return
  }
  func.func @transform_0(%arg0: i32) -> (i32, i32, i32) {
    %c0_i32 = arith.constant 0 : i32
    %c0_i32_0 = arith.constant 0 : i32
    %c0_i32_1 = arith.constant 0 : i32
    return %arg0, %c0_i32, %c0_i32_0 : i32, i32, i32
  }
  func.func @transform_1(%arg0: i32) -> (i32, i32, i32) {
    %c0_i32 = arith.constant 0 : i32
    %c0_i32_0 = arith.constant 0 : i32
    %c0_i32_1 = arith.constant 0 : i32
    %c0_i32_2 = arith.constant 0 : i32
    return %c0_i32, %c0_i32_0, %c0_i32_1 : i32, i32, i32
  }
  func.func @transform_2(%arg0: i32) -> (i32, i32) {
    %c0_i32 = arith.constant 0 : i32
    %c0_i32_0 = arith.constant 0 : i32
    %c0_i32_1 = arith.constant 0 : i32
    return %c0_i32, %c0_i32_0 : i32, i32
  }
  func.func @transform_3(%arg0: i32) -> (i32, i32, i32) {
    %c0_i32 = arith.constant 0 : i32
    %c0_i32_0 = arith.constant 0 : i32
    %c0_i32_1 = arith.constant 0 : i32
    return %arg0, %c0_i32, %c0_i32_0 : i32, i32, i32
  }
}

module attributes {stable_mosaic.version = 11 : i64} {
  func.func @_upsample_conv_glu_kernel(%arg0: i32, %arg1: memref<1x4x326xbf16, #tpu.memory_space<vmem>>, %arg2: memref<9x16x4xbf16, #tpu.memory_space<vmem>>, %arg3: memref<16x1xf32, #tpu.memory_space<vmem>>, %arg4: memref<1x8x288xbf16, #tpu.memory_space<vmem>>) attributes {dimension_semantics = [#tpu.dimension_semantics<parallel>], iteration_bounds = array<i64: 2>, scalar_prefetch = 0 : i64, scratch_operands = 0 : i64, tpu.core_type = #tpu.core_type<tc>, window_params = [{transform_indices = @transform_0, window_bounds = array<i64: 1, 4, 326>}, {pipeline_mode = #tpu.pipeline_mode<synchronous>, transform_indices = @transform_1, window_bounds = array<i64: 9, 16, 4>}, {pipeline_mode = #tpu.pipeline_mode<synchronous>, transform_indices = @transform_2, window_bounds = array<i64: 16, 1>}, {transform_indices = @transform_3, window_bounds = array<i64: 1, 8, 288>}]} {
    %cst = arith.constant 0.000000e+00 : f32
    %0 = vector.broadcast %cst : f32 to vector<16x288xf32>
    %c0 = arith.constant 0 : index
    %c0_0 = arith.constant 0 : index
    %c0_1 = arith.constant 0 : index
    %1 = vector.load %arg1[%c0, %c0_0, %c0_1] : memref<1x4x326xbf16, #tpu.memory_space<vmem>>, vector<1x4x288xbf16>
    %2 = vector.shape_cast %1 : vector<1x4x288xbf16> to vector<4x288xbf16>
    %c0_2 = arith.constant 0 : index
    %c0_3 = arith.constant 0 : index
    %c0_4 = arith.constant 0 : index
    %3 = vector.load %arg2[%c0_2, %c0_3, %c0_4] : memref<9x16x4xbf16, #tpu.memory_space<vmem>>, vector<1x16x4xbf16>
    %4 = vector.shape_cast %3 : vector<1x16x4xbf16> to vector<16x4xbf16>
    %cst_5 = arith.constant dense<0.000000e+00> : vector<16x288xf32>
    %5 = tpu.matmul %4, %2, %cst_5 {dimension_numbers = #tpu.dot_dimension_numbers<[1], [0], [0], [1], [0, 0, 1, 1], [], []>} : vector<16x4xbf16>, vector<4x288xbf16>, vector<16x288xf32> -> vector<16x288xf32>
    %6 = arith.addf %0, %5 : vector<16x288xf32>
    %c0_6 = arith.constant 0 : index
    %c0_7 = arith.constant 0 : index
    %c1 = arith.constant 1 : index
    %7 = vector.load %arg1[%c0_6, %c0_7, %c1] : memref<1x4x326xbf16, #tpu.memory_space<vmem>>, vector<1x4x288xbf16>
    %8 = vector.shape_cast %7 : vector<1x4x288xbf16> to vector<4x288xbf16>
    %c1_8 = arith.constant 1 : index
    %c0_9 = arith.constant 0 : index
    %c0_10 = arith.constant 0 : index
    %9 = vector.load %arg2[%c1_8, %c0_9, %c0_10] : memref<9x16x4xbf16, #tpu.memory_space<vmem>>, vector<1x16x4xbf16>
    %10 = vector.shape_cast %9 : vector<1x16x4xbf16> to vector<16x4xbf16>
    %cst_11 = arith.constant dense<0.000000e+00> : vector<16x288xf32>
    %11 = tpu.matmul %10, %8, %cst_11 {dimension_numbers = #tpu.dot_dimension_numbers<[1], [0], [0], [1], [0, 0, 1, 1], [], []>} : vector<16x4xbf16>, vector<4x288xbf16>, vector<16x288xf32> -> vector<16x288xf32>
    %12 = arith.addf %6, %11 : vector<16x288xf32>
    %c0_12 = arith.constant 0 : index
    %c0_13 = arith.constant 0 : index
    %c2 = arith.constant 2 : index
    %13 = vector.load %arg1[%c0_12, %c0_13, %c2] : memref<1x4x326xbf16, #tpu.memory_space<vmem>>, vector<1x4x288xbf16>
    %14 = vector.shape_cast %13 : vector<1x4x288xbf16> to vector<4x288xbf16>
    %c2_14 = arith.constant 2 : index
    %c0_15 = arith.constant 0 : index
    %c0_16 = arith.constant 0 : index
    %15 = vector.load %arg2[%c2_14, %c0_15, %c0_16] : memref<9x16x4xbf16, #tpu.memory_space<vmem>>, vector<1x16x4xbf16>
    %16 = vector.shape_cast %15 : vector<1x16x4xbf16> to vector<16x4xbf16>
    %cst_17 = arith.constant dense<0.000000e+00> : vector<16x288xf32>
    %17 = tpu.matmul %16, %14, %cst_17 {dimension_numbers = #tpu.dot_dimension_numbers<[1], [0], [0], [1], [0, 0, 1, 1], [], []>} : vector<16x4xbf16>, vector<4x288xbf16>, vector<16x288xf32> -> vector<16x288xf32>
    %18 = arith.addf %12, %17 : vector<16x288xf32>
    %c0_18 = arith.constant 0 : index
    %c0_19 = arith.constant 0 : index
    %c18 = arith.constant 18 : index
    %19 = vector.load %arg1[%c0_18, %c0_19, %c18] : memref<1x4x326xbf16, #tpu.memory_space<vmem>>, vector<1x4x288xbf16>
    %20 = vector.shape_cast %19 : vector<1x4x288xbf16> to vector<4x288xbf16>
    %c3 = arith.constant 3 : index
    %c0_20 = arith.constant 0 : index
    %c0_21 = arith.constant 0 : index
    %21 = vector.load %arg2[%c3, %c0_20, %c0_21] : memref<9x16x4xbf16, #tpu.memory_space<vmem>>, vector<1x16x4xbf16>
    %22 = vector.shape_cast %21 : vector<1x16x4xbf16> to vector<16x4xbf16>
    %cst_22 = arith.constant dense<0.000000e+00> : vector<16x288xf32>
    %23 = tpu.matmul %22, %20, %cst_22 {dimension_numbers = #tpu.dot_dimension_numbers<[1], [0], [0], [1], [0, 0, 1, 1], [], []>} : vector<16x4xbf16>, vector<4x288xbf16>, vector<16x288xf32> -> vector<16x288xf32>
    %24 = arith.addf %18, %23 : vector<16x288xf32>
    %c0_23 = arith.constant 0 : index
    %c0_24 = arith.constant 0 : index
    %c19 = arith.constant 19 : index
    %25 = vector.load %arg1[%c0_23, %c0_24, %c19] : memref<1x4x326xbf16, #tpu.memory_space<vmem>>, vector<1x4x288xbf16>
    %26 = vector.shape_cast %25 : vector<1x4x288xbf16> to vector<4x288xbf16>
    %c4 = arith.constant 4 : index
    %c0_25 = arith.constant 0 : index
    %c0_26 = arith.constant 0 : index
    %27 = vector.load %arg2[%c4, %c0_25, %c0_26] : memref<9x16x4xbf16, #tpu.memory_space<vmem>>, vector<1x16x4xbf16>
    %28 = vector.shape_cast %27 : vector<1x16x4xbf16> to vector<16x4xbf16>
    %cst_27 = arith.constant dense<0.000000e+00> : vector<16x288xf32>
    %29 = tpu.matmul %28, %26, %cst_27 {dimension_numbers = #tpu.dot_dimension_numbers<[1], [0], [0], [1], [0, 0, 1, 1], [], []>} : vector<16x4xbf16>, vector<4x288xbf16>, vector<16x288xf32> -> vector<16x288xf32>
    %30 = arith.addf %24, %29 : vector<16x288xf32>
    %c0_28 = arith.constant 0 : index
    %c0_29 = arith.constant 0 : index
    %c20 = arith.constant 20 : index
    %31 = vector.load %arg1[%c0_28, %c0_29, %c20] : memref<1x4x326xbf16, #tpu.memory_space<vmem>>, vector<1x4x288xbf16>
    %32 = vector.shape_cast %31 : vector<1x4x288xbf16> to vector<4x288xbf16>
    %c5 = arith.constant 5 : index
    %c0_30 = arith.constant 0 : index
    %c0_31 = arith.constant 0 : index
    %33 = vector.load %arg2[%c5, %c0_30, %c0_31] : memref<9x16x4xbf16, #tpu.memory_space<vmem>>, vector<1x16x4xbf16>
    %34 = vector.shape_cast %33 : vector<1x16x4xbf16> to vector<16x4xbf16>
    %cst_32 = arith.constant dense<0.000000e+00> : vector<16x288xf32>
    %35 = tpu.matmul %34, %32, %cst_32 {dimension_numbers = #tpu.dot_dimension_numbers<[1], [0], [0], [1], [0, 0, 1, 1], [], []>} : vector<16x4xbf16>, vector<4x288xbf16>, vector<16x288xf32> -> vector<16x288xf32>
    %36 = arith.addf %30, %35 : vector<16x288xf32>
    %c0_33 = arith.constant 0 : index
    %c0_34 = arith.constant 0 : index
    %c36 = arith.constant 36 : index
    %37 = vector.load %arg1[%c0_33, %c0_34, %c36] : memref<1x4x326xbf16, #tpu.memory_space<vmem>>, vector<1x4x288xbf16>
    %38 = vector.shape_cast %37 : vector<1x4x288xbf16> to vector<4x288xbf16>
    %c6 = arith.constant 6 : index
    %c0_35 = arith.constant 0 : index
    %c0_36 = arith.constant 0 : index
    %39 = vector.load %arg2[%c6, %c0_35, %c0_36] : memref<9x16x4xbf16, #tpu.memory_space<vmem>>, vector<1x16x4xbf16>
    %40 = vector.shape_cast %39 : vector<1x16x4xbf16> to vector<16x4xbf16>
    %cst_37 = arith.constant dense<0.000000e+00> : vector<16x288xf32>
    %41 = tpu.matmul %40, %38, %cst_37 {dimension_numbers = #tpu.dot_dimension_numbers<[1], [0], [0], [1], [0, 0, 1, 1], [], []>} : vector<16x4xbf16>, vector<4x288xbf16>, vector<16x288xf32> -> vector<16x288xf32>
    %42 = arith.addf %36, %41 : vector<16x288xf32>
    %c0_38 = arith.constant 0 : index
    %c0_39 = arith.constant 0 : index
    %c37 = arith.constant 37 : index
    %43 = vector.load %arg1[%c0_38, %c0_39, %c37] : memref<1x4x326xbf16, #tpu.memory_space<vmem>>, vector<1x4x288xbf16>
    %44 = vector.shape_cast %43 : vector<1x4x288xbf16> to vector<4x288xbf16>
    %c7 = arith.constant 7 : index
    %c0_40 = arith.constant 0 : index
    %c0_41 = arith.constant 0 : index
    %45 = vector.load %arg2[%c7, %c0_40, %c0_41] : memref<9x16x4xbf16, #tpu.memory_space<vmem>>, vector<1x16x4xbf16>
    %46 = vector.shape_cast %45 : vector<1x16x4xbf16> to vector<16x4xbf16>
    %cst_42 = arith.constant dense<0.000000e+00> : vector<16x288xf32>
    %47 = tpu.matmul %46, %44, %cst_42 {dimension_numbers = #tpu.dot_dimension_numbers<[1], [0], [0], [1], [0, 0, 1, 1], [], []>} : vector<16x4xbf16>, vector<4x288xbf16>, vector<16x288xf32> -> vector<16x288xf32>
    %48 = arith.addf %42, %47 : vector<16x288xf32>
    %c0_43 = arith.constant 0 : index
    %c0_44 = arith.constant 0 : index
    %c38 = arith.constant 38 : index
    %49 = vector.load %arg1[%c0_43, %c0_44, %c38] : memref<1x4x326xbf16, #tpu.memory_space<vmem>>, vector<1x4x288xbf16>
    %50 = vector.shape_cast %49 : vector<1x4x288xbf16> to vector<4x288xbf16>
    %c8 = arith.constant 8 : index
    %c0_45 = arith.constant 0 : index
    %c0_46 = arith.constant 0 : index
    %51 = vector.load %arg2[%c8, %c0_45, %c0_46] : memref<9x16x4xbf16, #tpu.memory_space<vmem>>, vector<1x16x4xbf16>
    %52 = vector.shape_cast %51 : vector<1x16x4xbf16> to vector<16x4xbf16>
    %cst_47 = arith.constant dense<0.000000e+00> : vector<16x288xf32>
    %53 = tpu.matmul %52, %50, %cst_47 {dimension_numbers = #tpu.dot_dimension_numbers<[1], [0], [0], [1], [0, 0, 1, 1], [], []>} : vector<16x4xbf16>, vector<4x288xbf16>, vector<16x288xf32> -> vector<16x288xf32>
    %54 = arith.addf %48, %53 : vector<16x288xf32>
    %c0_48 = arith.constant 0 : index
    %c0_49 = arith.constant 0 : index
    %55 = vector.load %arg3[%c0_48, %c0_49] : memref<16x1xf32, #tpu.memory_space<vmem>>, vector<16x1xf32>
    %56 = vector.broadcast %55 : vector<16x1xf32> to vector<16x288xf32>
    %57 = arith.addf %54, %56 : vector<16x288xf32>
    %58 = vector.extract_strided_slice %57 {offsets = [0, 0], sizes = [8, 288], strides = [1, 1]} : vector<16x288xf32> to vector<8x288xf32>
    %59 = vector.extract_strided_slice %57 {offsets = [8, 0], sizes = [8, 288], strides = [1, 1]} : vector<16x288xf32> to vector<8x288xf32>
    %cst_50 = arith.constant 0.000000e+00 : f32
    %60 = vector.broadcast %cst_50 : f32 to vector<8x288xf32>
    %61 = arith.subf %60, %59 : vector<8x288xf32>
    %62 = math.exp %61 : vector<8x288xf32>
    %cst_51 = arith.constant 1.000000e+00 : f32
    %63 = vector.broadcast %cst_51 : f32 to vector<8x288xf32>
    %64 = arith.addf %63, %62 : vector<8x288xf32>
    %65 = tpu.reciprocal %64 {approx = true} : vector<8x288xf32> -> vector<8x288xf32>
    %66 = arith.mulf %58, %65 : vector<8x288xf32>
    %67 = arith.truncf %66 : vector<8x288xf32> to vector<8x288xbf16>
    %c0_52 = arith.constant 0 : index
    %c0_53 = arith.constant 0 : index
    %c0_54 = arith.constant 0 : index
    %68 = vector.load %arg4[%c0_52, %c0_53, %c0_54] : memref<1x8x288xbf16, #tpu.memory_space<vmem>>, vector<1x8x288xbf16>
    %69 = vector.shape_cast %68 : vector<1x8x288xbf16> to vector<8x288xbf16>
    %70 = vector.shape_cast %67 : vector<8x288xbf16> to vector<1x8x288xbf16>
    tpu.vector_store %arg4[%c0_52, %c0_53, %c0_54], %70 {strides = array<i32>} : memref<1x8x288xbf16, #tpu.memory_space<vmem>>, vector<1x8x288xbf16>,
    return
  }
  func.func @transform_0(%arg0: i32) -> (i32, i32, i32) {
    %c0_i32 = arith.constant 0 : i32
    %c0_i32_0 = arith.constant 0 : i32
    %c0_i32_1 = arith.constant 0 : i32
    return %arg0, %c0_i32, %c0_i32_0 : i32, i32, i32
  }
  func.func @transform_1(%arg0: i32) -> (i32, i32, i32) {
    %c0_i32 = arith.constant 0 : i32
    %c0_i32_0 = arith.constant 0 : i32
    %c0_i32_1 = arith.constant 0 : i32
    %c0_i32_2 = arith.constant 0 : i32
    return %c0_i32, %c0_i32_0, %c0_i32_1 : i32, i32, i32
  }
  func.func @transform_2(%arg0: i32) -> (i32, i32) {
    %c0_i32 = arith.constant 0 : i32
    %c0_i32_0 = arith.constant 0 : i32
    %c0_i32_1 = arith.constant 0 : i32
    return %c0_i32, %c0_i32_0 : i32, i32
  }
  func.func @transform_3(%arg0: i32) -> (i32, i32, i32) {
    %c0_i32 = arith.constant 0 : i32
    %c0_i32_0 = arith.constant 0 : i32
    %c0_i32_1 = arith.constant 0 : i32
    return %arg0, %c0_i32, %c0_i32_0 : i32, i32, i32
  }
}

module attributes {stable_mosaic.version = 11 : i64} {
  func.func @_upsample_conv_glu_kernel(%arg0: i32, %arg1: memref<1x2x1158xbf16, #tpu.memory_space<vmem>>, %arg2: memref<9x32x2xbf16, #tpu.memory_space<vmem>>, %arg3: memref<32x1xf32, #tpu.memory_space<vmem>>, %arg4: memref<1x16x1088xf32, #tpu.memory_space<vmem>>) attributes {dimension_semantics = [#tpu.dimension_semantics<parallel>], iteration_bounds = array<i64: 2>, scalar_prefetch = 0 : i64, scratch_operands = 0 : i64, tpu.core_type = #tpu.core_type<tc>, window_params = [{transform_indices = @transform_0, window_bounds = array<i64: 1, 2, 1158>}, {pipeline_mode = #tpu.pipeline_mode<synchronous>, transform_indices = @transform_1, window_bounds = array<i64: 9, 32, 2>}, {pipeline_mode = #tpu.pipeline_mode<synchronous>, transform_indices = @transform_2, window_bounds = array<i64: 32, 1>}, {transform_indices = @transform_3, window_bounds = array<i64: 1, 16, 1088>}]} {
    %cst = arith.constant 0.000000e+00 : f32
    %0 = vector.broadcast %cst : f32 to vector<32x1088xf32>
    %c0 = arith.constant 0 : index
    %c0_0 = arith.constant 0 : index
    %c0_1 = arith.constant 0 : index
    %1 = vector.load %arg1[%c0, %c0_0, %c0_1] : memref<1x2x1158xbf16, #tpu.memory_space<vmem>>, vector<1x2x1088xbf16>
    %2 = vector.shape_cast %1 : vector<1x2x1088xbf16> to vector<2x1088xbf16>
    %c0_2 = arith.constant 0 : index
    %c0_3 = arith.constant 0 : index
    %c0_4 = arith.constant 0 : index
    %3 = vector.load %arg2[%c0_2, %c0_3, %c0_4] : memref<9x32x2xbf16, #tpu.memory_space<vmem>>, vector<1x32x2xbf16>
    %4 = vector.shape_cast %3 : vector<1x32x2xbf16> to vector<32x2xbf16>
    %cst_5 = arith.constant dense<0.000000e+00> : vector<32x1088xf32>
    %5 = tpu.matmul %4, %2, %cst_5 {dimension_numbers = #tpu.dot_dimension_numbers<[1], [0], [0], [1], [0, 0, 1, 1], [], []>} : vector<32x2xbf16>, vector<2x1088xbf16>, vector<32x1088xf32> -> vector<32x1088xf32>
    %6 = arith.addf %0, %5 : vector<32x1088xf32>
    %c0_6 = arith.constant 0 : index
    %c0_7 = arith.constant 0 : index
    %c1 = arith.constant 1 : index
    %7 = vector.load %arg1[%c0_6, %c0_7, %c1] : memref<1x2x1158xbf16, #tpu.memory_space<vmem>>, vector<1x2x1088xbf16>
    %8 = vector.shape_cast %7 : vector<1x2x1088xbf16> to vector<2x1088xbf16>
    %c1_8 = arith.constant 1 : index
    %c0_9 = arith.constant 0 : index
    %c0_10 = arith.constant 0 : index
    %9 = vector.load %arg2[%c1_8, %c0_9, %c0_10] : memref<9x32x2xbf16, #tpu.memory_space<vmem>>, vector<1x32x2xbf16>
    %10 = vector.shape_cast %9 : vector<1x32x2xbf16> to vector<32x2xbf16>
    %cst_11 = arith.constant dense<0.000000e+00> : vector<32x1088xf32>
    %11 = tpu.matmul %10, %8, %cst_11 {dimension_numbers = #tpu.dot_dimension_numbers<[1], [0], [0], [1], [0, 0, 1, 1], [], []>} : vector<32x2xbf16>, vector<2x1088xbf16>, vector<32x1088xf32> -> vector<32x1088xf32>
    %12 = arith.addf %6, %11 : vector<32x1088xf32>
    %c0_12 = arith.constant 0 : index
    %c0_13 = arith.constant 0 : index
    %c2 = arith.constant 2 : index
    %13 = vector.load %arg1[%c0_12, %c0_13, %c2] : memref<1x2x1158xbf16, #tpu.memory_space<vmem>>, vector<1x2x1088xbf16>
    %14 = vector.shape_cast %13 : vector<1x2x1088xbf16> to vector<2x1088xbf16>
    %c2_14 = arith.constant 2 : index
    %c0_15 = arith.constant 0 : index
    %c0_16 = arith.constant 0 : index
    %15 = vector.load %arg2[%c2_14, %c0_15, %c0_16] : memref<9x32x2xbf16, #tpu.memory_space<vmem>>, vector<1x32x2xbf16>
    %16 = vector.shape_cast %15 : vector<1x32x2xbf16> to vector<32x2xbf16>
    %cst_17 = arith.constant dense<0.000000e+00> : vector<32x1088xf32>
    %17 = tpu.matmul %16, %14, %cst_17 {dimension_numbers = #tpu.dot_dimension_numbers<[1], [0], [0], [1], [0, 0, 1, 1], [], []>} : vector<32x2xbf16>, vector<2x1088xbf16>, vector<32x1088xf32> -> vector<32x1088xf32>
    %18 = arith.addf %12, %17 : vector<32x1088xf32>
    %c0_18 = arith.constant 0 : index
    %c0_19 = arith.constant 0 : index
    %c34 = arith.constant 34 : index
    %19 = vector.load %arg1[%c0_18, %c0_19, %c34] : memref<1x2x1158xbf16, #tpu.memory_space<vmem>>, vector<1x2x1088xbf16>
    %20 = vector.shape_cast %19 : vector<1x2x1088xbf16> to vector<2x1088xbf16>
    %c3 = arith.constant 3 : index
    %c0_20 = arith.constant 0 : index
    %c0_21 = arith.constant 0 : index
    %21 = vector.load %arg2[%c3, %c0_20, %c0_21] : memref<9x32x2xbf16, #tpu.memory_space<vmem>>, vector<1x32x2xbf16>
    %22 = vector.shape_cast %21 : vector<1x32x2xbf16> to vector<32x2xbf16>
    %cst_22 = arith.constant dense<0.000000e+00> : vector<32x1088xf32>
    %23 = tpu.matmul %22, %20, %cst_22 {dimension_numbers = #tpu.dot_dimension_numbers<[1], [0], [0], [1], [0, 0, 1, 1], [], []>} : vector<32x2xbf16>, vector<2x1088xbf16>, vector<32x1088xf32> -> vector<32x1088xf32>
    %24 = arith.addf %18, %23 : vector<32x1088xf32>
    %c0_23 = arith.constant 0 : index
    %c0_24 = arith.constant 0 : index
    %c35 = arith.constant 35 : index
    %25 = vector.load %arg1[%c0_23, %c0_24, %c35] : memref<1x2x1158xbf16, #tpu.memory_space<vmem>>, vector<1x2x1088xbf16>
    %26 = vector.shape_cast %25 : vector<1x2x1088xbf16> to vector<2x1088xbf16>
    %c4 = arith.constant 4 : index
    %c0_25 = arith.constant 0 : index
    %c0_26 = arith.constant 0 : index
    %27 = vector.load %arg2[%c4, %c0_25, %c0_26] : memref<9x32x2xbf16, #tpu.memory_space<vmem>>, vector<1x32x2xbf16>
    %28 = vector.shape_cast %27 : vector<1x32x2xbf16> to vector<32x2xbf16>
    %cst_27 = arith.constant dense<0.000000e+00> : vector<32x1088xf32>
    %29 = tpu.matmul %28, %26, %cst_27 {dimension_numbers = #tpu.dot_dimension_numbers<[1], [0], [0], [1], [0, 0, 1, 1], [], []>} : vector<32x2xbf16>, vector<2x1088xbf16>, vector<32x1088xf32> -> vector<32x1088xf32>
    %30 = arith.addf %24, %29 : vector<32x1088xf32>
    %c0_28 = arith.constant 0 : index
    %c0_29 = arith.constant 0 : index
    %c36 = arith.constant 36 : index
    %31 = vector.load %arg1[%c0_28, %c0_29, %c36] : memref<1x2x1158xbf16, #tpu.memory_space<vmem>>, vector<1x2x1088xbf16>
    %32 = vector.shape_cast %31 : vector<1x2x1088xbf16> to vector<2x1088xbf16>
    %c5 = arith.constant 5 : index
    %c0_30 = arith.constant 0 : index
    %c0_31 = arith.constant 0 : index
    %33 = vector.load %arg2[%c5, %c0_30, %c0_31] : memref<9x32x2xbf16, #tpu.memory_space<vmem>>, vector<1x32x2xbf16>
    %34 = vector.shape_cast %33 : vector<1x32x2xbf16> to vector<32x2xbf16>
    %cst_32 = arith.constant dense<0.000000e+00> : vector<32x1088xf32>
    %35 = tpu.matmul %34, %32, %cst_32 {dimension_numbers = #tpu.dot_dimension_numbers<[1], [0], [0], [1], [0, 0, 1, 1], [], []>} : vector<32x2xbf16>, vector<2x1088xbf16>, vector<32x1088xf32> -> vector<32x1088xf32>
    %36 = arith.addf %30, %35 : vector<32x1088xf32>
    %c0_33 = arith.constant 0 : index
    %c0_34 = arith.constant 0 : index
    %c68 = arith.constant 68 : index
    %37 = vector.load %arg1[%c0_33, %c0_34, %c68] : memref<1x2x1158xbf16, #tpu.memory_space<vmem>>, vector<1x2x1088xbf16>
    %38 = vector.shape_cast %37 : vector<1x2x1088xbf16> to vector<2x1088xbf16>
    %c6 = arith.constant 6 : index
    %c0_35 = arith.constant 0 : index
    %c0_36 = arith.constant 0 : index
    %39 = vector.load %arg2[%c6, %c0_35, %c0_36] : memref<9x32x2xbf16, #tpu.memory_space<vmem>>, vector<1x32x2xbf16>
    %40 = vector.shape_cast %39 : vector<1x32x2xbf16> to vector<32x2xbf16>
    %cst_37 = arith.constant dense<0.000000e+00> : vector<32x1088xf32>
    %41 = tpu.matmul %40, %38, %cst_37 {dimension_numbers = #tpu.dot_dimension_numbers<[1], [0], [0], [1], [0, 0, 1, 1], [], []>} : vector<32x2xbf16>, vector<2x1088xbf16>, vector<32x1088xf32> -> vector<32x1088xf32>
    %42 = arith.addf %36, %41 : vector<32x1088xf32>
    %c0_38 = arith.constant 0 : index
    %c0_39 = arith.constant 0 : index
    %c69 = arith.constant 69 : index
    %43 = vector.load %arg1[%c0_38, %c0_39, %c69] : memref<1x2x1158xbf16, #tpu.memory_space<vmem>>, vector<1x2x1088xbf16>
    %44 = vector.shape_cast %43 : vector<1x2x1088xbf16> to vector<2x1088xbf16>
    %c7 = arith.constant 7 : index
    %c0_40 = arith.constant 0 : index
    %c0_41 = arith.constant 0 : index
    %45 = vector.load %arg2[%c7, %c0_40, %c0_41] : memref<9x32x2xbf16, #tpu.memory_space<vmem>>, vector<1x32x2xbf16>
    %46 = vector.shape_cast %45 : vector<1x32x2xbf16> to vector<32x2xbf16>
    %cst_42 = arith.constant dense<0.000000e+00> : vector<32x1088xf32>
    %47 = tpu.matmul %46, %44, %cst_42 {dimension_numbers = #tpu.dot_dimension_numbers<[1], [0], [0], [1], [0, 0, 1, 1], [], []>} : vector<32x2xbf16>, vector<2x1088xbf16>, vector<32x1088xf32> -> vector<32x1088xf32>
    %48 = arith.addf %42, %47 : vector<32x1088xf32>
    %c0_43 = arith.constant 0 : index
    %c0_44 = arith.constant 0 : index
    %c70 = arith.constant 70 : index
    %49 = vector.load %arg1[%c0_43, %c0_44, %c70] : memref<1x2x1158xbf16, #tpu.memory_space<vmem>>, vector<1x2x1088xbf16>
    %50 = vector.shape_cast %49 : vector<1x2x1088xbf16> to vector<2x1088xbf16>
    %c8 = arith.constant 8 : index
    %c0_45 = arith.constant 0 : index
    %c0_46 = arith.constant 0 : index
    %51 = vector.load %arg2[%c8, %c0_45, %c0_46] : memref<9x32x2xbf16, #tpu.memory_space<vmem>>, vector<1x32x2xbf16>
    %52 = vector.shape_cast %51 : vector<1x32x2xbf16> to vector<32x2xbf16>
    %cst_47 = arith.constant dense<0.000000e+00> : vector<32x1088xf32>
    %53 = tpu.matmul %52, %50, %cst_47 {dimension_numbers = #tpu.dot_dimension_numbers<[1], [0], [0], [1], [0, 0, 1, 1], [], []>} : vector<32x2xbf16>, vector<2x1088xbf16>, vector<32x1088xf32> -> vector<32x1088xf32>
    %54 = arith.addf %48, %53 : vector<32x1088xf32>
    %c0_48 = arith.constant 0 : index
    %c0_49 = arith.constant 0 : index
    %55 = vector.load %arg3[%c0_48, %c0_49] : memref<32x1xf32, #tpu.memory_space<vmem>>, vector<32x1xf32>
    %56 = vector.broadcast %55 : vector<32x1xf32> to vector<32x1088xf32>
    %57 = arith.addf %54, %56 : vector<32x1088xf32>
    %58 = vector.extract_strided_slice %57 {offsets = [0, 0], sizes = [16, 1088], strides = [1, 1]} : vector<32x1088xf32> to vector<16x1088xf32>
    %59 = vector.extract_strided_slice %57 {offsets = [16, 0], sizes = [16, 1088], strides = [1, 1]} : vector<32x1088xf32> to vector<16x1088xf32>
    %cst_50 = arith.constant 0.000000e+00 : f32
    %60 = vector.broadcast %cst_50 : f32 to vector<16x1088xf32>
    %61 = arith.subf %60, %59 : vector<16x1088xf32>
    %62 = math.exp %61 : vector<16x1088xf32>
    %cst_51 = arith.constant 1.000000e+00 : f32
    %63 = vector.broadcast %cst_51 : f32 to vector<16x1088xf32>
    %64 = arith.addf %63, %62 : vector<16x1088xf32>
    %65 = tpu.reciprocal %64 : vector<16x1088xf32> -> vector<16x1088xf32>
    %66 = arith.mulf %58, %65 : vector<16x1088xf32>
    %c0_52 = arith.constant 0 : index
    %c0_53 = arith.constant 0 : index
    %c0_54 = arith.constant 0 : index
    %67 = vector.load %arg4[%c0_52, %c0_53, %c0_54] : memref<1x16x1088xf32, #tpu.memory_space<vmem>>, vector<1x16x1088xf32>
    %68 = vector.shape_cast %67 : vector<1x16x1088xf32> to vector<16x1088xf32>
    %69 = vector.shape_cast %66 : vector<16x1088xf32> to vector<1x16x1088xf32>
    tpu.vector_store %arg4[%c0_52, %c0_53, %c0_54], %69 {strides = array<i32>} : memref<1x16x1088xf32, #tpu.memory_space<vmem>>, vector<1x16x1088xf32>,
    return
  }
  func.func @transform_0(%arg0: i32) -> (i32, i32, i32) {
    %c0_i32 = arith.constant 0 : i32
    %c0_i32_0 = arith.constant 0 : i32
    %c0_i32_1 = arith.constant 0 : i32
    return %arg0, %c0_i32, %c0_i32_0 : i32, i32, i32
  }
  func.func @transform_1(%arg0: i32) -> (i32, i32, i32) {
    %c0_i32 = arith.constant 0 : i32
    %c0_i32_0 = arith.constant 0 : i32
    %c0_i32_1 = arith.constant 0 : i32
    %c0_i32_2 = arith.constant 0 : i32
    return %c0_i32, %c0_i32_0, %c0_i32_1 : i32, i32, i32
  }
  func.func @transform_2(%arg0: i32) -> (i32, i32) {
    %c0_i32 = arith.constant 0 : i32
    %c0_i32_0 = arith.constant 0 : i32
    %c0_i32_1 = arith.constant 0 : i32
    return %c0_i32, %c0_i32_0 : i32, i32
  }
  func.func @transform_3(%arg0: i32) -> (i32, i32, i32) {
    %c0_i32 = arith.constant 0 : i32
    %c0_i32_0 = arith.constant 0 : i32
    %c0_i32_1 = arith.constant 0 : i32
    return %arg0, %c0_i32, %c0_i32_0 : i32, i32, i32
  }
}

</mosaic_0001>

<bundles_post_ra>
// kernel: simple_decoder_forward.5
= control target key start
LH: loop header
LB: loop body
LE: loop exit
PB: predicated region body
PF: predicated region fallthrough
CT: control target
= control target key end

     0   :  { %8 = vsyncpa [#allocation3], 0  ;;  %s1315_s12 = smov 0   ;;  %s1423_s0 = inlined_call_operand.vmem [shape: bf16[2,8,102], index: 0, kind: input, shape index: {}]   ;;  %s1424_s1 = inlined_call_operand.hbm [shape: bf16[9,32,8], index: 1, kind: input, shape index: {}]   ;;  %s1425_s2 = inlined_call_operand.vmem [shape: f32[32,1], index: 2, kind: input, shape index: {}]   ;;  %s1426_s3 = inlined_call_operand.vmem [shape: bf16[2,16,80], index: 3, kind: output, shape index: {}]  }
   0x1 LB: > { %s1321_s13 = sadd.s32 4294967295, %s1281_s12   ;;  %p1010_p0 = scmp.ge.s32.totalorder %s1281_s12, 1  ;;  %s1281_s12 = sphi %s1315_s12, %s14_s12  }
   0x2   : > { %p113_p1 = scmp.lt.s32.totalorder %s1281_s12, 3  ;;  %s1283_s14 = smov [#allocation2]  }
   0x3   : > { %s125_s15 = sshll.u32 %s1283_s14, 4  ;;  %p1427_p3 = scmp.eq.s32.totalorder %s1321_s13, 0  ;;  %s126_s15 = int_to_ptr.vmem [resolvable:$true] %s125_s15 }
   0x4   : > { %p1325_p2 = pnand %p1010_p0, %p113_p1  ;;  %s1243_s20 = scalar_lea.hbm %s1424_s1, 2304 }
   0x5   : > { %p1244_p6 = scmp.ne.s32.totalorder %s1424_s1, %s1243_s20  ;;  %p1250_p10 = scmp.lt.u32.totalorder %s1243_s20, %s1424_s1 }
   0x6   : > { %s1429_s16 = scalar_select %p1325_p2, 1, 0 }
   0x7   : > { %p1188_p4 = pneg %p1325_p2 }
   0x9   : > { %p1334_p5 = pnand %p1427_p3, %p1188_p4 }
   0xb   : > { %p1245_p7 = pneg %p1334_p5 }
   0xd   : > { %p1246_p8 = pnand %p1245_p7, %p1244_p6 }
   0xf   : > { %p1247_p9 = pneg %p1246_p8 }
  0x11   : > { %p1252_p11 = pnand %p1250_p10, %p1247_p9 }
  0x13   : > { %1255 = shalt.err (!%p1252_p11)
}
  0x14   : > { %s1256_s25 = scalar_lea.vmem %s126_s15, 2304  ;;  %p1264_p1 = scmp.lt.s32.totalorder %s126_s15, %s126_s15 }
  0x15   : > { %p1257_p12 = scmp.ne.s32.totalorder %s126_s15, %s1256_s25  ;;  %p1265_p4 = scmp.lt.s32.totalorder %s1256_s25, %s1256_s25 }
  0x17   : > { %p1259_p13 = pnand %p1257_p12, %p1245_p7  ;;  %p1266_p3 = por %p1265_p4, %p1264_p1 }
  0x19   : > { %p1260_p0 = pneg %p1259_p13 }
  0x1b   : > { %p1267_p2 = pnand %p1266_p3, %p1260_p0 }
  0x1d   : > { %1270 = shalt.err (!%p1267_p2)
}
  0x1e   : > { %s1284_s26 = smov 64   ;;  %s1285_s27 = smov 4  }
  0x1f   : > { %1191 = dma.hbm_to_vmem [thread:$0]  (!%p1334_p5), %s1424_s1, 2304, %s126_s15, [#allocation3], %s1284_s26, %s1284_s26, %s1285_s27  }
  0x20   : > { %p1431_p6 = scmp.ne.s32.totalorder %s1429_s16, 0 }
  0x21   : > { %p1432_p8 = scmp.eq.s32.totalorder (!%p1431_p6), %s1321_s13, 0 }
  0x22   : > { %151 = sbr.rel (%p1431_p6) target bundleno = 468 (0x1d4), region = 32 }
  0x29   : > { %1276 = dma.done.wait (%p1432_p8), [#allocation3], 2304   ;;  %p1433_p7 = pmov %p1432_p8 }
  0x2a   : > { %p174_p2 = scmp.lt.s32.totalorder %s1321_s13, 1  ;;  %vm209_vm0 = vcmask 64512   ;;  %v1217_v2 = vld [vmem:[#allocation2 + $0x40] sm:$0xff]   ;;  %s1286_s7 = smov 117   ;;  %v1219_v3 = vld [vmem:[#allocation2 + $0x10] sm:$0xff]   ;;  %v893_v4 = vld [vmem:[%s1425_s2 + $0x18] sm:$0xff] }
  0x2b   : > { %1278 = vsyncadd (%p1433_p7), [#allocation3], 4294964992  ;;  %s1287_s8 = smov 116   ;;  %1115 = vmatprep.mubr.msk.bf16.mxu0 %vm209_vm0, %v1217_v2  ;;  %1091 = vmatprep.mubr.msk.bf16.mxu1 %vm209_vm0, %v1219_v3  ;;  %s1288_s9 = smov 127   ;;  %v892_v5 = vld [vmem:[%s1425_s2 + $0x10] sm:$0xff]  ;;  %v1294_v6 = vmov 0  }
  0x2c   : > { %s1435_s13 = smov (!%p174_p2, %s1321_s13), 1  ;;  %s1289_s10 = smov 108   ;;  %1215 = vset.pattern.permute.xlu1 %v1294_v6  ;;  %1214 = vset.pattern.permute.xlu0 %v1294_v6  ;;  %v890_v7 = vld [vmem:[%s1425_s2] sm:$0xff]  ;;  %v891_v8 = vld [vmem:[%s1425_s2 + $0x8] sm:$0xff]  ;;  %vm216_vm1 = vcmask 1043456   ;;  %v1221_v14 = vld [vmem:[#allocation2 + $0x50] sm:$0xff]  }
  0x2d   : > { %s1015_s30 = sshll.u32 %s1435_s13, 2  ;;  %s1290_s11 = smov 107   ;;  %v1218_v12 = vld [vmem:[#allocation2 + $0x48] sm:$0xff]   ;;  %v1220_v17 = vld [vmem:[#allocation2 + $0x18] sm:$0xff]   ;;  %v1223_v19 = vld [vmem:[#allocation2] sm:$0xff]   ;;  %vm938_vm2 = vcmask 650240  }
  0x2e   : > { %s177_s6 = scalar_lea.vmem %s1423_s0, %s1015_s30  ;;  %s1291_s14 = smov 126   ;;  %v1222_v22 = vld [vmem:[#allocation2 + $0x58] sm:$0xff]   ;;  %v1225_v23 = vld [vmem:[#allocation2 + $0x60] sm:$0xff]   ;;  %v1224_v26 = vld [vmem:[#allocation2 + $0x8] sm:$0xff]  }
  0x2f   : > { %v184_v0 = vld [vmem:[%s177_s6] sm:$0xf]  ;;  %s1292_s15 = smov 106   ;;  %s1293_s16 = smov 118   ;;  %v1226_v30 = vld [vmem:[#allocation2 + $0x68] sm:$0xff]   ;;  %v1229_v31 = vld [vmem:[#allocation2 + $0x70] sm:$0xff]  }
  0x30   : > { %v1020_v1 = vcombine.low %v184_v0, %v184_v0  ;;  %v286_v20 = vsel %vm216_vm1, %v184_v0, 0  ;;  %v1227_v27 = vld [vmem:[#allocation2 + $0x20] sm:$0xff]   ;;  %v1228_v34 = vld [vmem:[#allocation2 + $0x28] sm:$0xff]   ;;  %v1231_v35 = vld [vmem:[#allocation2 + $0x30] sm:$0xff]   ;;  %s1059_s25 = sshll.u32 %s1435_s13, 3 }
  0x31   : > { %v1230_v37 = vld [vmem:[#allocation2 + $0x78] sm:$0xff]   ;;  %v1233_v38 = vld [vmem:[#allocation2 + $0x80] sm:$0xff]   ;;  %v1234_v41 = vld [vmem:[#allocation2 + $0x88] sm:$0xff]   ;;  %s182_s28 = scalar_lea.vmem %s1426_s3, %s1059_s25 }
  0x32   : > { %510 = vrot.lane.b32.xlu0 %v1020_v1, %s1286_s7  ;;  %589 = vrot.lane.b32.xlu1 %v1020_v1, %s1287_s8  ;;  %v1232_v40 = vld [vmem:[#allocation2 + $0x38] sm:$0xff]  }
  0x36   : > { %207 = vrot.lane.b32.xlu0 %v1020_v1, %s1288_s9  ;;  %668 = vrot.lane.b32.xlu1 %v1020_v1, %s1289_s10 }
  0x3a   : > { %747 = vrot.lane.b32.xlu1 %v1020_v1, %s1290_s11  ;;  %352 = vrot.lane.b32.xlu0 %v1020_v1, %s1291_s14 }
  0x3e   : > { %826 = vrot.lane.b32.xlu1 %v1020_v1, %s1292_s15  ;;  %431 = vrot.lane.b32.xlu0 %v1020_v1, %s1293_s16 }
  0x42   : > { %911 = vperm.xlu1 %1215, %v893_v4   ;;  %906 = vperm.xlu0 %1214, %v892_v5  }
  0x46   : > { %896 = vperm.xlu1 %1215, %v890_v7   ;;  %901 = vperm.xlu0 %1214, %v891_v8  }
  0xa4   : > { %v511_v9 = vpop.permute.xlu0 %510  ;;  %v590_v10 = vpop.permute.xlu1 %589 }
  0xa5   : > { %1179 = vmatprep.subr.msk.bf16.mxu0 %vm216_vm1, %v511_v9  ;;  %v519_v11 = vsel %vm216_vm1, %v511_v9, 0  ;;  %v598_v13 = vsel %vm216_vm1, %v590_v10, 0 }
  0xa6   : > { %1114 = vmatpush3.bf16.msra.mxu0 %v519_v11 }
  0xa7   : > { %1180 = vmatprep.subr.msk.bf16.mxu0 %vm216_vm1, %v590_v10 }
  0xa8   : > { %v208_v15 = vpop.permute.xlu0 %207  ;;  %v669_v18 = vpop.permute.xlu1 %668 }
  0xa9   : > { %1175 = vmatprep.subr.msk.bf16.mxu1 %vm216_vm1, %v208_v15  ;;  %1116 = vmatmul.mubr.msk.bf16.vlgmr.msra.gmra.mrb[0].mxu0 %vm209_vm0, %v1218_v12  ;;  %v218_v16 = vsel %vm216_vm1, %v208_v15, 0  ;;  %v677_v24 = vsel %vm216_vm1, %v669_v18, 0 }
  0xaa   : > { %1090 = vmatpush3.bf16.msra.mxu1 %v218_v16  ;;  %1120 = vmatpush3.bf16.msra.mxu0 %v598_v13 }
  0xab   : > { %1121 = vmatprep.mubr.msk.bf16.mxu0 %vm209_vm0, %v1221_v14  ;;  %1176 = vmatprep.subr.msk.bf16.mxu1 %vm216_vm1, %v184_v0 }
  0xac   : > { %1181 = vmatprep.subr.msk.bf16.mxu0 %vm216_vm1, %v669_v18  ;;  %v353_v21 = vpop.permute.xlu0 %352  ;;  %v748_v25 = vpop.permute.xlu1 %747 }
  0xad   : > { %1092 = vmatmul.mubr.msk.bf16.vlgmr.msra.gmra.mrb[0].mxu1 %vm209_vm0, %v1220_v17  ;;  %v361_v28 = vsel %vm216_vm1, %v353_v21, 0  ;;  %v756_v32 = vsel %vm216_vm1, %v748_v25, 0 }
  0xae   : > { %1096 = vmatpush3.bf16.msra.mxu1 %v286_v20  ;;  %1097 = vmatprep.mubr.msk.bf16.mxu1 %vm209_vm0, %v1223_v19 }
  0xaf   : > { %1177 = vmatprep.subr.msk.bf16.mxu1 %vm216_vm1, %v353_v21 }
  0xb0   : > { %v432_v29 = vpop.permute.xlu0 %431  ;;  %v827_v33 = vpop.permute.xlu1 %826 }
  0xb1   : > { %v440_v36 = vsel %vm216_vm1, %v432_v29, 0  ;;  %v835_v39 = vsel %vm216_vm1, %v827_v33, 0 }
  0xb5   : > { %1122 = vmatmul.mubr.msk.bf16.vlgmr.msra.gmra.mrb[0].mxu0 %vm209_vm0, %v1222_v22 }
  0xb6   : > { %1126 = vmatpush3.bf16.msra.mxu0 %v677_v24  ;;  %1127 = vmatprep.mubr.msk.bf16.mxu0 %vm209_vm0, %v1225_v23 }
  0xb7   : > { %1182 = vmatprep.subr.msk.bf16.mxu0 %vm216_vm1, %v748_v25 }
  0xb9   : > { %1098 = vmatmul.mubr.msk.bf16.vlgmr.msra.gmra.mrb[0].mxu1 %vm209_vm0, %v1224_v26 }
  0xba   : > { %1102 = vmatpush3.bf16.msra.mxu1 %v361_v28  ;;  %1103 = vmatprep.mubr.msk.bf16.mxu1 %vm209_vm0, %v1227_v27 }
  0xbb   : > { %1178 = vmatprep.subr.msk.bf16.mxu1 %vm216_vm1, %v432_v29 }
  0xc1   : > { %1128 = vmatmul.mubr.msk.bf16.vlgmr.msra.gmra.mrb[0].mxu0 %vm209_vm0, %v1226_v30  ;;  %v907_v50 = vpop.permute.xlu0 %906  ;;  %v912_v55 = vpop.permute.xlu1 %911 }
  0xc2   : > { %1132 = vmatpush3.bf16.msra.mxu0 %v756_v32  ;;  %1133 = vmatprep.mubr.msk.bf16.mxu0 %vm209_vm0, %v1229_v31 }
  0xc3   : > { %1183 = vmatprep.subr.msk.bf16.mxu0 %vm216_vm1, %v827_v33 }
  0xc5   : > { %1104 = vmatmul.mubr.msk.bf16.vlgmr.msra.gmra.mrb[0].mxu1 %vm209_vm0, %v1228_v34  ;;  %v897_v2 = vpop.permute.xlu1 %896  ;;  %v902_v3 = vpop.permute.xlu0 %901 }
  0xc6   : > { %1108 = vmatpush3.bf16.msra.mxu1 %v440_v36  ;;  %1109 = vmatprep.mubr.msk.bf16.mxu1 %vm209_vm0, %v1231_v35 }
  0xcd   : > { %1134 = vmatmul.mubr.msk.bf16.vlgmr.msra.gmra.mrb[0].mxu0 %vm209_vm0, %v1230_v37 }
  0xce   : > { %1138 = vmatpush3.bf16.msra.mxu0 %v835_v39  ;;  %1139 = vmatprep.mubr.msk.bf16.mxu0 %vm209_vm0, %v1233_v38 }
  0xd1   : > { %1110 = vmatmul.mubr.msk.bf16.vlgmr.msra.gmra.mrb[0].mxu1 %vm209_vm0, %v1232_v40 }
  0xd9   : > { %1140 = vmatmul.mubr.msk.bf16.vlgmr.msra.gmra.mrb[0].mxu0 %vm209_vm0, %v1234_v41 }
 0x1a4   : > { %v1111_v42 = vpop.f32.mrb[0].mxu1 }
 0x1a5   : > { %v476_v43 = vpop.f32.mrb[1].mxu1 }
 0x1a6   : > { %v1112_v44 = vpop.f32.mrb[2].mxu1 }
 0x1a7   : > { %v479_v45 = vpop.f32.mrb[3].mxu1 }
 0x1ac   : > { %v1141_v46 = vpop.f32.mrb[0].mxu0 }
 0x1ad   : > { %v1143_v47 = vadd.f32 %v1141_v46, %v1111_v42  ;;  %v871_v48 = vpop.f32.mrb[1].mxu0 }
 0x1ae   : > { %v1144_v49 = vadd.f32 %v871_v48, %v476_v43  ;;  %v1142_v51 = vpop.f32.mrb[2].mxu0 }
 0x1af   : > { %v916_v52 = vadd.f32 %v1143_v47, %v907_v50  ;;  %v1145_v53 = vadd.f32 %v1142_v51, %v1112_v44  ;;  %v874_v54 = vpop.f32.mrb[3].mxu0 }
 0x1b0   : > { %v1146_v56 = vadd.f32 %v874_v54, %v479_v45  ;;  %v914_v4 = vadd.f32 %v1144_v49, %v897_v2 }
 0x1b1   : > { %v918_v57 = vsub.f32 0.0, %v916_v52  ;;  %v917_v58 = vadd.f32 %v1145_v53, %v912_v55 }
 0x1b2   : > { %v915_v7 = vadd.f32 %v1146_v56, %v902_v3 }
 0x1b3   : > { %v920_v59 = vmul.f32 1.442695, %v918_v57  ;;  %v919_v60 = vsub.f32 0.0, %v917_v58 }
 0x1b5   : > { %1235 = vpow2.f32 %v920_v59  ;;  %v922_v61 = vmul.f32 1.442695, %v919_v60 }
 0x1b7   : > { %1237 = vpow2.f32 %v922_v61 }
 0x1bf   : > { %v1236_v62 = vpop.eup %1235 }
 0x1c0   : > { %v924_v63 = vadd.f32 1.0, %v1236_v62 }
 0x1c1   : > { %v1238_v0 = vpop.eup %1237 }
 0x1c2   : > { %1239 = vrcp.f32 %v924_v63  ;;  %v925_v1 = vadd.f32 1.0, %v1238_v0 }
 0x1c4   : > { %1241 = vrcp.f32 %v925_v1 }
 0x1cc   : > { %v1240_v5 = vpop.eup %1239 }
 0x1cd   : > { %v928_v6 = vmul.f32 %v1240_v5, %v914_v4 }
 0x1ce   : > { %v1242_v8 = vpop.eup %1241 }
 0x1cf   : > { %v1060_v9 = vpack.c.bf16 %v928_v6, %v928_v6  ;;  %v929_v10 = vmul.f32 %v1242_v8, %v915_v7 }
 0x1d1   : > { %939 = vst.msk [vmem:[%s182_s28] sm:$0xf] %vm938_vm2, %v1060_v9  ;;  %v1061_v11 = vpack.c.bf16 %v929_v10, %v929_v10 }
 0x1d3   : > { %940 = vst.msk [vmem:[%s182_s28 + $0x4] sm:$0xf] %vm938_vm2, %v1061_v11 }
 0x1d4 PF: > { %s14_s12 = sadd.s32 1, %s1281_s12  }
 0x1d5   : > { %p11_p3 = scmp.ge.s32.totalorder %s14_s12, 4  }
 0x1d7   :  { %13 = sbr.rel (!%p11_p3) target bundleno = 1 (0x1), region = 75 }
 0x1de   :  { %962 = vsyncpa [#allocation3], 1 }
 0x1df   :  { %964 = vsyncpa [#allocation3 + $0x1], 1 }

// kernel: simple_decoder_forward.4
= control target key start
LH: loop header
LB: loop body
LE: loop exit
PB: predicated region body
PF: predicated region fallthrough
CT: control target
= control target key end

     0   :  { %8 = vsyncpa [#allocation3], 0  ;;  %s1851_s12 = smov 0   ;;  %s1977_s0 = inlined_call_operand.vmem [shape: bf16[2,16,38], index: 0, kind: input, shape index: {}]   ;;  %s1978_s1 = inlined_call_operand.hbm [shape: bf16[9,64,16], index: 1, kind: input, shape index: {}]   ;;  %s1979_s2 = inlined_call_operand.vmem [shape: f32[64,1], index: 2, kind: input, shape index: {}]   ;;  %s1980_s3 = inlined_call_operand.vmem [shape: bf16[2,32,24], index: 3, kind: output, shape index: {}]  }
   0x1 LB: > { %s1857_s13 = sadd.s32 4294967295, %s1817_s12   ;;  %p1399_p0 = scmp.ge.s32.totalorder %s1817_s12, 1  ;;  %s1817_s12 = sphi %s1851_s12, %s14_s12  }
   0x2   : > { %p113_p1 = scmp.lt.s32.totalorder %s1817_s12, 3  ;;  %s1819_s14 = smov [#allocation2]  }
   0x3   : > { %s125_s15 = sshll.u32 %s1819_s14, 4  ;;  %p1981_p3 = scmp.eq.s32.totalorder %s1857_s13, 0  ;;  %s126_s15 = int_to_ptr.vmem [resolvable:$true] %s125_s15 }
   0x4   : > { %p1861_p2 = pnand %p1399_p0, %p113_p1  ;;  %s1779_s20 = scalar_lea.hbm %s1978_s1, 4608 }
   0x5   : > { %p1780_p6 = scmp.ne.s32.totalorder %s1978_s1, %s1779_s20  ;;  %p1786_p10 = scmp.lt.u32.totalorder %s1779_s20, %s1978_s1 }
   0x6   : > { %s1983_s16 = scalar_select %p1861_p2, 1, 0 }
   0x7   : > { %p1698_p4 = pneg %p1861_p2 }
   0x9   : > { %p1870_p5 = pnand %p1981_p3, %p1698_p4 }
   0xb   : > { %p1781_p7 = pneg %p1870_p5 }
   0xd   : > { %p1782_p8 = pnand %p1781_p7, %p1780_p6 }
   0xf   : > { %p1783_p9 = pneg %p1782_p8 }
  0x11   : > { %p1788_p11 = pnand %p1786_p10, %p1783_p9 }
  0x13   : > { %1791 = shalt.err (!%p1788_p11)
}
  0x14   : > { %s1792_s25 = scalar_lea.vmem %s126_s15, 4608  ;;  %p1800_p1 = scmp.lt.s32.totalorder %s126_s15, %s126_s15 }
  0x15   : > { %p1793_p12 = scmp.ne.s32.totalorder %s126_s15, %s1792_s25  ;;  %p1801_p4 = scmp.lt.s32.totalorder %s1792_s25, %s1792_s25 }
  0x17   : > { %p1795_p13 = pnand %p1793_p12, %p1781_p7  ;;  %p1802_p3 = por %p1801_p4, %p1800_p1 }
  0x19   : > { %p1796_p0 = pneg %p1795_p13 }
  0x1b   : > { %p1803_p2 = pnand %p1802_p3, %p1796_p0 }
  0x1d   : > { %1806 = shalt.err (!%p1803_p2)
}
  0x1e   : > { %s1820_s26 = smov 64   ;;  %s1821_s27 = smov 4  }
  0x1f   : > { %1701 = dma.hbm_to_vmem [thread:$0]  (!%p1870_p5), %s1978_s1, 4608, %s126_s15, [#allocation3], %s1820_s26, %s1820_s26, %s1821_s27  }
  0x20   : > { %p1985_p6 = scmp.ne.s32.totalorder %s1983_s16, 0 }
  0x21   : > { %p1986_p8 = scmp.eq.s32.totalorder (!%p1985_p6), %s1857_s13, 0 }
  0x22   : > { %152 = sbr.rel (%p1985_p6) target bundleno = 491 (0x1eb), region = 32 }
  0x29   : > { %1812 = dma.done.wait (%p1986_p8), [#allocation3], 4608   ;;  %p1987_p7 = pmov %p1986_p8 }
  0x2a   : > { %p176_p2 = scmp.lt.s32.totalorder %s1857_s13, 1  ;;  %vm234_vm0 = vcmask 130048   ;;  %v1727_v1 = vld [vmem:[#allocation2 + $0x20] sm:$0xff]   ;;  %s1822_s7 = smov 127   ;;  %v1234_v3 = vld [vmem:[%s1979_s2 + $0x28] sm:$0xff]  ;;  %v1830_v5 = vmov 0  }
  0x2b   : > { %1814 = vsyncadd (%p1987_p7), [#allocation3], 4294962688  ;;  %s1823_s8 = smov 120   ;;  %1540 = vmatprep.mubr.msk.bf16.mxu1 %vm234_vm0, %v1727_v1  ;;  %v1729_v2 = vld [vmem:[#allocation2 + $0x80] sm:$0xff]   ;;  %s1824_s9 = smov 121   ;;  %1725 = vset.pattern.permute.xlu1 %v1830_v5  ;;  %v1235_v6 = vld [vmem:[%s1979_s2 + $0x30] sm:$0xff] }
  0x2c   : > { %s1989_s13 = smov (!%p176_p2, %s1857_s13), 1  ;;  %1580 = vmatprep.mubr.msk.bf16.mxu0 %vm234_vm0, %v1729_v2  ;;  %s1825_s10 = smov 116   ;;  %v1233_v4 = vld [vmem:[%s1979_s2 + $0x20] sm:$0xff]  ;;  %1724 = vset.pattern.permute.xlu0 %v1830_v5  ;;  %v1236_v7 = vld [vmem:[%s1979_s2 + $0x38] sm:$0xff]  ;;  %v1230_v9 = vld [vmem:[%s1979_s2 + $0x8] sm:$0xff]  ;;  %vm1325_vm1 = vcmask 191488  }
  0x2d   : > { %s1487_s30 = sshll.u32 %s1989_s13, 3  ;;  %s1826_s11 = smov 126   ;;  %v1229_v8 = vld [vmem:[%s1979_s2] sm:$0xff]  ;;  %v1231_v10 = vld [vmem:[%s1979_s2 + $0x10] sm:$0xff]  ;;  %v1232_v11 = vld [vmem:[%s1979_s2 + $0x18] sm:$0xff] }
  0x2e   : > { %s180_s6 = scalar_lea.vmem %s1977_s0, %s1487_s30  ;;  %s1827_s14 = smov 115   ;;  %v1728_v13 = vld [vmem:[#allocation2 + $0x28] sm:$0xff]   ;;  %v1731_v14 = vld [vmem:[#allocation2 + $0x30] sm:$0xff]   ;;  %v1734_v18 = vld [vmem:[#allocation2 + $0xa0] sm:$0xff]  }
  0x2f   : > { %v1726_v0 = vld [vmem:[%s180_s6] sm:$0xff]   ;;  %s1828_s15 = smov 122   ;;  %s1829_s16 = smov 114   ;;  %v1730_v17 = vld [vmem:[#allocation2 + $0x88] sm:$0xff]   ;;  %v1732_v21 = vld [vmem:[#allocation2 + $0x38] sm:$0xff]  }
  0x30   : > { %231 = vrot.lane.b32.xlu0 %v1726_v0, %s1822_s7  ;;  %790 = vrot.lane.b32.xlu1 %v1726_v0, %s1823_s8  ;;  %v1733_v22 = vld [vmem:[#allocation2] sm:$0xff]   ;;  %v1735_v23 = vld [vmem:[#allocation2 + $0x8] sm:$0xff]   ;;  %v1737_v25 = vld [vmem:[#allocation2 + $0x10] sm:$0xff]   ;;  %s1488_s6 = sshll.u32 %s1989_s13, 4 }
  0x31   : > { %v1736_v24 = vld [vmem:[#allocation2 + $0xa8] sm:$0xff]   ;;  %v1738_v26 = vld [vmem:[#allocation2 + $0xb0] sm:$0xff]   ;;  %v1739_v29 = vld [vmem:[#allocation2 + $0x18] sm:$0xff]  }
  0x32   : > { %v1740_v30 = vld [vmem:[#allocation2 + $0xb8] sm:$0xff]   ;;  %v1741_v31 = vld [vmem:[#allocation2 + $0x40] sm:$0xff]   ;;  %v1743_v33 = vld [vmem:[#allocation2 + $0x48] sm:$0xff]  }
  0x33   : > { %v1742_v32 = vld [vmem:[#allocation2 + $0xc0] sm:$0xff]   ;;  %v1744_v34 = vld [vmem:[#allocation2 + $0xc8] sm:$0xff]   ;;  %v1745_v35 = vld [vmem:[#allocation2 + $0x50] sm:$0xff]  }
  0x34   : > { %673 = vrot.lane.b32.xlu0 %v1726_v0, %s1824_s9  ;;  %907 = vrot.lane.b32.xlu1 %v1726_v0, %s1825_s10  ;;  %v1746_v36 = vld [vmem:[#allocation2 + $0xd0] sm:$0xff]   ;;  %v1747_v38 = vld [vmem:[#allocation2 + $0x58] sm:$0xff]   ;;  %v1749_v40 = vld [vmem:[#allocation2 + $0x60] sm:$0xff]   ;;  %s185_s9 = scalar_lea.vmem %s1980_s3, %s1488_s6 }
  0x35   : > { %v1748_v39 = vld [vmem:[#allocation2 + $0xd8] sm:$0xff]   ;;  %v1750_v41 = vld [vmem:[#allocation2 + $0xe0] sm:$0xff]   ;;  %v1751_v42 = vld [vmem:[#allocation2 + $0x68] sm:$0xff]  }
  0x36   : > { %v1752_v43 = vld [vmem:[#allocation2 + $0xe8] sm:$0xff]   ;;  %v1753_v44 = vld [vmem:[#allocation2 + $0x70] sm:$0xff]   ;;  %v1755_v46 = vld [vmem:[#allocation2 + $0x78] sm:$0xff]  }
  0x37   : > { %v1754_v45 = vld [vmem:[#allocation2 + $0xf0] sm:$0xff]   ;;  %v1756_v47 = vld [vmem:[#allocation2 + $0xf8] sm:$0xff]   ;;  %v1757_v48 = vld [vmem:[#allocation2 + $0x100] sm:$0xff]  }
  0x38   : > { %439 = vrot.lane.b32.xlu0 %v1726_v0, %s1826_s11  ;;  %1024 = vrot.lane.b32.xlu1 %v1726_v0, %s1827_s14  ;;  %v1759_v49 = vld [vmem:[#allocation2 + $0x90] sm:$0xff]   ;;  %v1758_v50 = vld [vmem:[#allocation2 + $0x108] sm:$0xff]   ;;  %v1760_v52 = vld [vmem:[#allocation2 + $0x98] sm:$0xff]  }
  0x39   : > { %v1761_v51 = vld [vmem:[#allocation2 + $0x110] sm:$0xff]   ;;  %v1762_v53 = vld [vmem:[#allocation2 + $0x118] sm:$0xff]  }
  0x3c   : > { %556 = vrot.lane.b32.xlu0 %v1726_v0, %s1828_s15  ;;  %1141 = vrot.lane.b32.xlu1 %v1726_v0, %s1829_s16 }
  0x40   : > { %1264 = vperm.xlu1 %1725, %v1234_v3   ;;  %1259 = vperm.xlu0 %1724, %v1233_v4  }
  0x44   : > { %1269 = vperm.xlu1 %1725, %v1235_v6   ;;  %1274 = vperm.xlu0 %1724, %v1236_v7  }
  0x48   : > { %1239 = vperm.xlu1 %1725, %v1229_v8   ;;  %1244 = vperm.xlu0 %1724, %v1230_v9  }
  0x4c   : > { %1249 = vperm.xlu1 %1725, %v1231_v10   ;;  %1254 = vperm.xlu0 %1724, %v1232_v11  }
  0xa2   : > { %v232_v12 = vpop.permute.xlu0 %231  ;;  %v791_v16 = vpop.permute.xlu1 %790 }
  0xa3   : > { %1538 = vmatprep.subr.bf16.mxu1 %v232_v12 }
  0xa4   : > { %1539 = vmatpush3.bf16.msra.mxu1 %v232_v12 }
  0xa5   : > { %1548 = vmatprep.subr.bf16.mxu1 %v1726_v0 }
  0xa6   : > { %v1930_v15 = vpop.permute.xlu0 %673  ;;  %v908_v19 = vpop.permute.xlu1 %907 }
  0xa7   : > { %1541 = vmatmul.mubr.msk.bf16.vlgmr.msra.gmra.mrb[0].mxu1 %vm234_vm0, %v1728_v13  ;;  %1578 = vmatprep.subr.bf16.mxu0 %v1930_v15 }
  0xa8   : > { %1579 = vmatpush3.bf16.msra.mxu0 %v1930_v15  ;;  %1549 = vmatpush3.bf16.msra.mxu1 %v1726_v0 }
  0xa9   : > { %1588 = vmatprep.subr.bf16.mxu0 %v791_v16  ;;  %1544 = vmatprep.mubr.msk.bf16.mxu1 %vm234_vm0, %v1731_v14 }
  0xaa   : > { %v440_v20 = vpop.permute.xlu0 %439  ;;  %v1025_v27 = vpop.permute.xlu1 %1024 }
  0xab   : > { %1581 = vmatmul.mubr.msk.bf16.vlgmr.msra.gmra.mrb[0].mxu0 %vm234_vm0, %v1730_v17  ;;  %1558 = vmatprep.subr.bf16.mxu1 %v440_v20 }
  0xac   : > { %1589 = vmatpush3.bf16.msra.mxu0 %v791_v16  ;;  %1590 = vmatprep.mubr.msk.bf16.mxu0 %vm234_vm0, %v1734_v18 }
  0xad   : > { %1598 = vmatprep.subr.bf16.mxu0 %v908_v19 }
  0xae   : > { %v557_v28 = vpop.permute.xlu0 %556  ;;  %v1142_v37 = vpop.permute.xlu1 %1141 }
  0xaf   : > { %1545 = vmatmul.mubr.msk.bf16.gmra.mrb[4].mxu1 %vm234_vm0, %v1732_v21 }
  0xb0   : > { %1550 = vmatprep.mubr.msk.bf16.mxu1 %vm234_vm0, %v1733_v22 }
  0xb7   : > { %1551 = vmatmul.mubr.msk.bf16.vlgmr.msra.gmra.mrb[0].mxu1 %vm234_vm0, %v1735_v23  ;;  %1591 = vmatmul.mubr.msk.bf16.vlgmr.msra.gmra.mrb[0].mxu0 %vm234_vm0, %v1736_v24 }
  0xb8   : > { %1599 = vmatpush3.bf16.msra.mxu0 %v908_v19  ;;  %1559 = vmatpush3.bf16.msra.mxu1 %v440_v20 }
  0xb9   : > { %1554 = vmatprep.mubr.msk.bf16.mxu1 %vm234_vm0, %v1737_v25  ;;  %1594 = vmatprep.mubr.msk.bf16.mxu0 %vm234_vm0, %v1738_v26 }
  0xba   : > { %1568 = vmatprep.subr.bf16.mxu1 %v557_v28  ;;  %1608 = vmatprep.subr.bf16.mxu0 %v1025_v27 }
  0xbf   : > { %1555 = vmatmul.mubr.msk.bf16.gmra.mrb[4].mxu1 %vm234_vm0, %v1739_v29  ;;  %1595 = vmatmul.mubr.msk.bf16.gmra.mrb[4].mxu0 %vm234_vm0, %v1740_v30  ;;  %v1265_v1 = vpop.permute.xlu1 %1264  ;;  %v1260_v5 = vpop.permute.xlu0 %1259 }
  0xc0   : > { %1560 = vmatprep.mubr.msk.bf16.mxu1 %vm234_vm0, %v1741_v31  ;;  %1600 = vmatprep.mubr.msk.bf16.mxu0 %vm234_vm0, %v1742_v32 }
  0xc3   : > { %v1270_v11 = vpop.permute.xlu1 %1269  ;;  %v1275_v17 = vpop.permute.xlu0 %1274 }
  0xc7   : > { %1561 = vmatmul.mubr.msk.bf16.vlgmr.msra.gmra.mrb[0].mxu1 %vm234_vm0, %v1743_v33  ;;  %1601 = vmatmul.mubr.msk.bf16.vlgmr.msra.gmra.mrb[0].mxu0 %vm234_vm0, %v1744_v34 }
  0xc8   : > { %1569 = vmatpush3.bf16.msra.mxu1 %v557_v28  ;;  %1609 = vmatpush3.bf16.msra.mxu0 %v1025_v27 }
  0xc9   : > { %1628 = vmatprep.subr.bf16.mxu1 %v1930_v15  ;;  %1564 = vmatprep.mubr.msk.bf16.mxu1 %vm234_vm0, %v1745_v35 }
  0xca   : > { %1604 = vmatprep.mubr.msk.bf16.mxu0 %vm234_vm0, %v1746_v36  ;;  %1618 = vmatprep.subr.bf16.mxu0 %v1142_v37  ;;  %v1240_v36 = vpop.permute.xlu1 %1239 }
  0xcf   : > { %1565 = vmatmul.mubr.msk.bf16.gmra.mrb[4].mxu1 %vm234_vm0, %v1747_v38  ;;  %1605 = vmatmul.mubr.msk.bf16.gmra.mrb[4].mxu0 %vm234_vm0, %v1748_v39  ;;  %v1245_v39 = vpop.permute.xlu0 %1244 }
  0xd0   : > { %1570 = vmatprep.mubr.msk.bf16.mxu1 %vm234_vm0, %v1749_v40  ;;  %1610 = vmatprep.mubr.msk.bf16.mxu0 %vm234_vm0, %v1750_v41  ;;  %v1250_v40 = vpop.permute.xlu1 %1249 }
  0xd3   : > { %v1255_v41 = vpop.permute.xlu0 %1254 }
  0xd7   : > { %1571 = vmatmul.mubr.msk.bf16.vlgmr.msra.gmra.mrb[0].mxu1 %vm234_vm0, %v1751_v42  ;;  %1611 = vmatmul.mubr.msk.bf16.vlgmr.msra.gmra.mrb[0].mxu0 %vm234_vm0, %v1752_v43 }
  0xd8   : > { %1629 = vmatpush3.bf16.msra.mxu1 %v1930_v15  ;;  %1619 = vmatpush3.bf16.msra.mxu0 %v1142_v37 }
  0xd9   : > { %1574 = vmatprep.mubr.msk.bf16.mxu1 %vm234_vm0, %v1753_v44  ;;  %1614 = vmatprep.mubr.msk.bf16.mxu0 %vm234_vm0, %v1754_v45 }
  0xdf   : > { %1575 = vmatmul.mubr.msk.bf16.gmra.mrb[4].mxu1 %vm234_vm0, %v1755_v46  ;;  %1615 = vmatmul.mubr.msk.bf16.gmra.mrb[4].mxu0 %vm234_vm0, %v1756_v47 }
  0xe0   : > { %1620 = vmatprep.mubr.msk.bf16.mxu0 %vm234_vm0, %v1757_v48  ;;  %1584 = vmatprep.mubr.msk.bf16.mxu1 %vm234_vm0, %v1759_v49 }
  0xe7   : > { %1621 = vmatmul.mubr.msk.bf16.vlgmr.msra.gmra.mrb[0].mxu0 %vm234_vm0, %v1758_v50 }
  0xe8   : > { %1624 = vmatprep.mubr.msk.bf16.mxu0 %vm234_vm0, %v1761_v51 }
  0xeb   : > { %1585 = vmatmul.mubr.msk.bf16.vlgmr.msra.gmra.mrb[4].mxu1 %vm234_vm0, %v1760_v52 }
  0xef   : > { %1625 = vmatmul.mubr.msk.bf16.gmra.mrb[4].mxu0 %vm234_vm0, %v1762_v53 }
 0x1aa   : > { %v1572_v54 = vpop.f32.mrb[0].mxu1 }
 0x1ab   : > { %v605_v55 = vpop.f32.mrb[1].mxu1 }
 0x1ac   : > { %v1573_v56 = vpop.f32.mrb[2].mxu1 }
 0x1ad   : > { %v608_v57 = vpop.f32.mrb[3].mxu1 }
 0x1ba   : > { %v1622_v58 = vpop.f32.mrb[0].mxu0 }
 0x1bb   : > { %v1630_v59 = vadd.f32 %v1622_v58, %v1572_v54  ;;  %v1190_v60 = vpop.f32.mrb[1].mxu0 }
 0x1bc   : > { %v1631_v61 = vadd.f32 %v1190_v60, %v605_v55  ;;  %v1623_v62 = vpop.f32.mrb[2].mxu0 }
 0x1bd   : > { %v1632_v63 = vadd.f32 %v1623_v62, %v1573_v56  ;;  %v1193_v0 = vpop.f32.mrb[3].mxu0  ;;  %v1279_v42 = vadd.f32 %v1630_v59, %v1250_v40 }
 0x1be   : > { %v1633_v2 = vadd.f32 %v1193_v0, %v608_v57  ;;  %v1586_v3 = vpop.f32.mrb[4].mxu1  ;;  %v1277_v44 = vadd.f32 %v1631_v61, %v1240_v36 }
 0x1bf   : > { %v738_v4 = vpop.f32.mrb[5].mxu1  ;;  %v1280_v46 = vadd.f32 %v1632_v63, %v1255_v41 }
 0x1c0   : > { %v1587_v6 = vpop.f32.mrb[6].mxu1  ;;  %v1278_v49 = vadd.f32 %v1633_v2, %v1245_v39 }
 0x1c1   : > { %v741_v7 = vpop.f32.mrb[7].mxu1 }
 0x1c2   : > { %v1626_v8 = vpop.f32.mrb[4].mxu0 }
 0x1c3   : > { %v1634_v9 = vadd.f32 %v1626_v8, %v1586_v3  ;;  %v1206_v10 = vpop.f32.mrb[5].mxu0 }
 0x1c4   : > { %v1635_v12 = vadd.f32 %v1206_v10, %v738_v4  ;;  %v1627_v13 = vpop.f32.mrb[6].mxu0 }
 0x1c5   : > { %v1283_v14 = vadd.f32 %v1634_v9, %v1270_v11  ;;  %v1636_v15 = vadd.f32 %v1627_v13, %v1587_v6  ;;  %v1209_v16 = vpop.f32.mrb[7].mxu0 }
 0x1c6   : > { %v1281_v18 = vadd.f32 %v1635_v12, %v1260_v5  ;;  %v1637_v19 = vadd.f32 %v1209_v16, %v741_v7 }
 0x1c7   : > { %v1287_v20 = vsub.f32 0.0, %v1283_v14  ;;  %v1284_v21 = vadd.f32 %v1636_v15, %v1275_v17 }
 0x1c8   : > { %v1285_v22 = vsub.f32 0.0, %v1281_v18  ;;  %v1282_v23 = vadd.f32 %v1637_v19, %v1265_v1 }
 0x1c9   : > { %v1293_v24 = vmul.f32 1.442695, %v1287_v20  ;;  %v1288_v25 = vsub.f32 0.0, %v1284_v21 }
 0x1ca   : > { %v1289_v26 = vmul.f32 1.442695, %v1285_v22  ;;  %v1286_v27 = vsub.f32 0.0, %v1282_v23 }
 0x1cb   : > { %1763 = vpow2.f32 %v1293_v24  ;;  %v1295_v28 = vmul.f32 1.442695, %v1288_v25 }
 0x1cc   : > { %1765 = vpow2.f32 %v1289_v26  ;;  %v1291_v29 = vmul.f32 1.442695, %v1286_v27 }
 0x1cd   : > { %1767 = vpow2.f32 %v1295_v28 }
 0x1ce   : > { %1769 = vpow2.f32 %v1291_v29 }
 0x1d5   : > { %v1764_v30 = vpop.eup %1763 }
 0x1d6   : > { %v1766_v31 = vpop.eup %1765  ;;  %v1299_v32 = vadd.f32 1.0, %v1764_v30 }
 0x1d7   : > { %v1768_v33 = vpop.eup %1767  ;;  %v1297_v34 = vadd.f32 1.0, %v1766_v31 }
 0x1d8   : > { %v1770_v35 = vpop.eup %1769  ;;  %1771 = vrcp.f32 %v1299_v32  ;;  %v1300_v37 = vadd.f32 1.0, %v1768_v33 }
 0x1d9   : > { %1773 = vrcp.f32 %v1297_v34  ;;  %v1298_v38 = vadd.f32 1.0, %v1770_v35 }
 0x1da   : > { %1775 = vrcp.f32 %v1300_v37 }
 0x1db   : > { %1777 = vrcp.f32 %v1298_v38 }
 0x1e2   : > { %v1772_v43 = vpop.eup %1771 }
 0x1e3   : > { %v1774_v45 = vpop.eup %1773  ;;  %v1307_v47 = vmul.f32 %v1772_v43, %v1279_v42 }
 0x1e4   : > { %v1776_v48 = vpop.eup %1775  ;;  %v1305_v50 = vmul.f32 %v1774_v45, %v1277_v44 }
 0x1e5   : > { %v1778_v51 = vpop.eup %1777  ;;  %v1491_v52 = vpack.c.bf16 %v1307_v47, %v1307_v47  ;;  %v1308_v53 = vmul.f32 %v1776_v48, %v1280_v46 }
 0x1e6   : > { %v1489_v54 = vpack.c.bf16 %v1305_v50, %v1305_v50  ;;  %v1306_v55 = vmul.f32 %v1778_v51, %v1278_v49 }
 0x1e7   : > { %1328 = vst.msk [vmem:[%s185_s9 + $0x8] sm:$0xf] %vm1325_vm1, %v1491_v52  ;;  %v1492_v56 = vpack.c.bf16 %v1308_v53, %v1308_v53 }
 0x1e8   : > { %1326 = vst.msk [vmem:[%s185_s9] sm:$0xf] %vm1325_vm1, %v1489_v54  ;;  %v1490_v57 = vpack.c.bf16 %v1306_v55, %v1306_v55 }
 0x1e9   : > { %1329 = vst.msk [vmem:[%s185_s9 + $0xc] sm:$0xf] %vm1325_vm1, %v1492_v56 }
 0x1ea   : > { %1327 = vst.msk [vmem:[%s185_s9 + $0x4] sm:$0xf] %vm1325_vm1, %v1490_v57 }
 0x1eb PF: > { %s14_s12 = sadd.s32 1, %s1817_s12  }
 0x1ec   : > { %p11_p3 = scmp.ge.s32.totalorder %s14_s12, 4  }
 0x1ee   :  { %13 = sbr.rel (!%p11_p3) target bundleno = 1 (0x1), region = 75 }
 0x1f5   :  { %1351 = vsyncpa [#allocation3], 1 }
 0x1f6   :  { %1353 = vsyncpa [#allocation3 + $0x1], 1 }

// kernel: simple_decoder_forward.6
= control target key start
LH: loop header
LB: loop body
LE: loop exit
PB: predicated region body
PF: predicated region fallthrough
CT: control target
= control target key end

     0   :  { %8 = vsyncpa [#allocation3], 0  ;;  %s1797_s12 = smov 0   ;;  %s1998_s0 = inlined_call_operand.vmem [shape: bf16[2,4,326], index: 0, kind: input, shape index: {}]   ;;  %s1999_s1 = inlined_call_operand.hbm [shape: bf16[9,16,4], index: 1, kind: input, shape index: {}]   ;;  %s2000_s2 = inlined_call_operand.vmem [shape: f32[16,1], index: 2, kind: input, shape index: {}]   ;;  %s2001_s3 = inlined_call_operand.vmem [shape: bf16[2,8,288], index: 3, kind: output, shape index: {}]  }
   0x1 LB: > { %s1803_s13 = sadd.s32 4294967295, %s1760_s12   ;;  %p1503_p0 = scmp.ge.s32.totalorder %s1760_s12, 1  ;;  %s1760_s12 = sphi %s1797_s12, %s14_s12  }
   0x2   : > { %p113_p1 = scmp.lt.s32.totalorder %s1760_s12, 3  ;;  %s1762_s14 = smov [#allocation2]  }
   0x3   : > { %s125_s15 = sshll.u32 %s1762_s14, 4  ;;  %p2002_p3 = scmp.eq.s32.totalorder %s1803_s13, 0  ;;  %s126_s15 = int_to_ptr.vmem [resolvable:$true] %s125_s15 }
   0x4   : > { %p1807_p2 = pnand %p1503_p0, %p113_p1  ;;  %s1722_s20 = scalar_lea.hbm %s1999_s1, 1152 }
   0x5   : > { %p1723_p6 = scmp.ne.s32.totalorder %s1999_s1, %s1722_s20  ;;  %p1729_p10 = scmp.lt.u32.totalorder %s1722_s20, %s1999_s1 }
   0x6   : > { %s2004_s16 = scalar_select %p1807_p2, 1, 0 }
   0x7   : > { %p1662_p4 = pneg %p1807_p2 }
   0x9   : > { %p1816_p5 = pnand %p2002_p3, %p1662_p4 }
   0xb   : > { %p1724_p7 = pneg %p1816_p5 }
   0xd   : > { %p1725_p8 = pnand %p1724_p7, %p1723_p6 }
   0xf   : > { %p1726_p9 = pneg %p1725_p8 }
  0x11   : > { %p1731_p11 = pnand %p1729_p10, %p1726_p9 }
  0x13   : > { %1734 = shalt.err (!%p1731_p11)
}
  0x14   : > { %s1735_s25 = scalar_lea.vmem %s126_s15, 1152  ;;  %p1743_p1 = scmp.lt.s32.totalorder %s126_s15, %s126_s15 }
  0x15   : > { %p1736_p12 = scmp.ne.s32.totalorder %s126_s15, %s1735_s25  ;;  %p1744_p4 = scmp.lt.s32.totalorder %s1735_s25, %s1735_s25 }
  0x17   : > { %p1738_p13 = pnand %p1736_p12, %p1724_p7  ;;  %p1745_p3 = por %p1744_p4, %p1743_p1 }
  0x19   : > { %p1739_p0 = pneg %p1738_p13 }
  0x1b   : > { %p1746_p2 = pnand %p1745_p3, %p1739_p0 }
  0x1d   : > { %1749 = shalt.err (!%p1746_p2)
}
  0x1e   : > { %s1763_s26 = smov 64   ;;  %s1764_s27 = smov 4  }
  0x1f   : > { %1665 = dma.hbm_to_vmem [thread:$0]  (!%p1816_p5), %s1999_s1, 1152, %s126_s15, [#allocation3], %s1763_s26, %s1763_s26, %s1764_s27  }
  0x20   : > { %p2006_p6 = scmp.ne.s32.totalorder %s2004_s16, 0 }
  0x21   : > { %p2007_p8 = scmp.eq.s32.totalorder (!%p2006_p6), %s1803_s13, 0 }
  0x22   : > { %152 = sbr.rel (%p2006_p6) target bundleno = 521 (0x209), region = 32 }
  0x29   : > { %1755 = dma.done.wait (%p2007_p8), [#allocation3], 1152   ;;  %p2008_p7 = pmov %p2007_p8 }
  0x2a   : > { %p176_p2 = scmp.lt.s32.totalorder %s1803_s13, 1  ;;  %v203_v0 = vlaneseq  ;;  %v1765_v1 = vmov 1983009808   ;;  %v1766_v4 = vmov 0.0   ;;  %vm1767_vm0 = vmmov 0   ;;  %s1769_s7 = smov 127  }
  0x2b   : > { %1757 = vsyncadd (%p2008_p7), [#allocation3], 4294966144  ;;  %v201_v2 = vunpack.c.l.s4 %v1765_v1  ;;  %1570 = vmatprep.subr.bf16.mxu1 %v1766_v4  ;;  %1572 = vmatprep.mubr.msk.bf16.mxu1 %vm1767_vm0, %v1766_v4  ;;  %v1768_v6 = vmov 0   ;;  %s1770_s8 = smov 126   ;;  %s1771_s9 = smov 110   ;;  %v1382_v48 = vld [vmem:[%s2000_s2] sm:$0xff] }
  0x2c   : > { %s2010_s13 = smov (!%p176_p2, %s1803_s13), 1  ;;  %v204_v3 = vshrl.u32 %v203_v0, 7  ;;  %270 = vmatprep.mubr.bf16.mxu0 %v1768_v6  ;;  %1692 = vset.pattern.permute.xlu1 %v1768_v6  ;;  %s1772_s10 = smov 109   ;;  %v1383_v49 = vld [vmem:[%s2000_s2 + $0x8] sm:$0xff]  ;;  %vm228_vm1 = vcmask 1041408   ;;  %vm221_vm2 = vcmask 1039360  }
  0x2d   : > { %v202_v5 = vunpack.c.0.s8 %v201_v2  ;;  %s1656_s30 = smul.u32 6, %s2010_s13  ;;  %1691 = vset.pattern.permute.xlu0 %v1768_v6  ;;  %s1773_s11 = smov 108   ;;  %v1701_v53 = vld [vmem:[#allocation2 + $0x8] sm:$0xff]   ;;  %vm224_vm3 = vcmask 31744   ;;  %vm455_vm4 = vcmask 1031168   ;;  %v1702_v63 = vld [vmem:[#allocation2] sm:$0xff]  }
  0x2e   : > { %s1774_s14 = smov 92   ;;  %s1775_s15 = smov 91   ;;  %vm592_vm5 = vcmask 900096   ;;  %vm729_vm6 = vcmask 891904   ;;  %vm866_vm7 = vcmask 883712   ;;  %vm1003_vm8 = vcmask 752640  }
  0x2f   : > { %v1852_v7 = vsub.s32 %v202_v5, %v204_v3  ;;  %s1858_s6 = scalar_lea.vmem %s1998_s0, %s1656_s30  ;;  %s1776_s16 = smov 90   ;;  %vm1140_vm9 = vcmask 744448   ;;  %vm1277_vm10 = vcmask 736256   ;;  %vm1432_vm11 = vcmask 257024  }
  0x30   : > { %v187_v8 = vld [vmem:[%s1858_s6] sm:$0x3f]  ;;  %s1657_s21 = smul.u32 12, %s2010_s13 }
  0x31   : > { %v1862_v9 = vrot.slane %v187_v8, %v1852_v7  ;;  %v199_v10 = vcombine.high %v187_v8, %v187_v8  ;;  %v423_v11 = vld [vmem:[%s1858_s6] sm:$0x3f]  ;;  %v1703_v8 = vld [vmem:[#allocation2 + $0x10] sm:$0xff]  }
  0x32   : > { %v440_v14 = vrot.slane %v423_v11, %v1852_v7  ;;  %v433_v15 = vcombine.high %v423_v11, %v423_v11  ;;  %v560_v16 = vld [vmem:[%s1858_s6] sm:$0x3f]  ;;  %s185_s24 = scalar_lea.vmem %s2001_s3, %s1657_s21 }
  0x33   : > { %215 = vrot.lane.b32.xlu0 %v1862_v9, %s1769_s7  ;;  %v1867_v12 = vrot.slane %v199_v10, %v1852_v7  ;;  %v1871_v13 = vcombine.high %v1862_v9, %v1862_v9  ;;  %v577_v19 = vrot.slane %v560_v16, %v1852_v7  ;;  %v570_v20 = vcombine.high %v560_v16, %v560_v16  ;;  %v697_v22 = vld [vmem:[%s1858_s6] sm:$0x3f] }
  0x34   : > { %v448_v17 = vcombine.high %v440_v14, %v440_v14  ;;  %v447_v18 = vrot.slane %v433_v15, %v1852_v7  ;;  %v714_v24 = vrot.slane %v697_v22, %v1852_v7  ;;  %v707_v25 = vcombine.high %v697_v22, %v697_v22  ;;  %v834_v27 = vld [vmem:[%s1858_s6] sm:$0x3f]  ;;  %v1704_v15 = vld [vmem:[#allocation2 + $0x18] sm:$0xff]  }
  0x35   : > { %219 = vrot.lane.b32.xlu1 %v1867_v12, %s1769_s7  ;;  %v585_v21 = vcombine.high %v577_v19, %v577_v19  ;;  %v584_v23 = vrot.slane %v570_v20, %v1852_v7  ;;  %v851_v29 = vrot.slane %v834_v27, %v1852_v7  ;;  %v844_v30 = vcombine.high %v834_v27, %v834_v27  ;;  %v971_v32 = vld [vmem:[%s1858_s6] sm:$0x3f] }
  0x36   : > { %v722_v26 = vcombine.high %v714_v24, %v714_v24  ;;  %v721_v28 = vrot.slane %v707_v25, %v1852_v7  ;;  %v988_v34 = vrot.slane %v971_v32, %v1852_v7  ;;  %v981_v35 = vcombine.high %v971_v32, %v971_v32  ;;  %v1108_v37 = vld [vmem:[%s1858_s6] sm:$0x3f] }
  0x37   : > { %217 = vrot.lane.b32.xlu0 %v1871_v13, %s1769_s7  ;;  %v859_v31 = vcombine.high %v851_v29, %v851_v29  ;;  %v858_v33 = vrot.slane %v844_v30, %v1852_v7  ;;  %v1125_v39 = vrot.slane %v1108_v37, %v1852_v7  ;;  %v1118_v40 = vcombine.high %v1108_v37, %v1108_v37  ;;  %v1245_v42 = vld [vmem:[%s1858_s6] sm:$0x3f] }
  0x38   : > { %v996_v36 = vcombine.high %v988_v34, %v988_v34  ;;  %v995_v38 = vrot.slane %v981_v35, %v1852_v7  ;;  %v1262_v44 = vrot.slane %v1245_v42, %v1852_v7  ;;  %v1255_v45 = vcombine.high %v1245_v42, %v1245_v42 }
  0x39   : > { %449 = vrot.lane.b32.xlu1 %v440_v14, %s1770_s8  ;;  %v1133_v41 = vcombine.high %v1125_v39, %v1125_v39  ;;  %v1132_v43 = vrot.slane %v1118_v40, %v1852_v7  ;;  %v337_v57 = vsel %vm228_vm1, %v1867_v12, 0  ;;  %v331_v60 = vsel %vm228_vm1, %v1862_v9, 0 }
  0x3a   : > { %v1270_v46 = vcombine.high %v1262_v44, %v1262_v44  ;;  %v1269_v47 = vrot.slane %v1255_v45, %v1852_v7 }
  0x3b   : > { %451 = vrot.lane.b32.xlu0 %v448_v17, %s1770_s8 }
  0x3d   : > { %453 = vrot.lane.b32.xlu1 %v447_v18, %s1770_s8 }
  0x3f   : > { %586 = vrot.lane.b32.xlu0 %v577_v19, %s1771_s9 }
  0x41   : > { %588 = vrot.lane.b32.xlu1 %v585_v21, %s1771_s9 }
  0x43   : > { %590 = vrot.lane.b32.xlu0 %v584_v23, %s1771_s9  ;;  %v1705_v23 = vld [vmem:[#allocation2 + $0x20] sm:$0xff]  }
  0x45   : > { %723 = vrot.lane.b32.xlu1 %v714_v24, %s1772_s10 }
  0x47   : > { %725 = vrot.lane.b32.xlu0 %v722_v26, %s1772_s10 }
  0x49   : > { %727 = vrot.lane.b32.xlu1 %v721_v28, %s1772_s10 }
  0x4b   : > { %860 = vrot.lane.b32.xlu0 %v851_v29, %s1773_s11  ;;  %v1706_v29 = vld [vmem:[#allocation2 + $0x28] sm:$0xff]  }
  0x4d   : > { %862 = vrot.lane.b32.xlu1 %v859_v31, %s1773_s11 }
  0x4f   : > { %864 = vrot.lane.b32.xlu0 %v858_v33, %s1773_s11 }
  0x51   : > { %997 = vrot.lane.b32.xlu1 %v988_v34, %s1774_s14 }
  0x53   : > { %999 = vrot.lane.b32.xlu0 %v996_v36, %s1774_s14  ;;  %v1707_v36 = vld [vmem:[#allocation2 + $0x30] sm:$0xff]  }
  0x55   : > { %1001 = vrot.lane.b32.xlu1 %v995_v38, %s1774_s14 }
  0x57   : > { %1134 = vrot.lane.b32.xlu0 %v1125_v39, %s1775_s15 }
  0x59   : > { %1136 = vrot.lane.b32.xlu1 %v1133_v41, %s1775_s15 }
  0x5b   : > { %1138 = vrot.lane.b32.xlu0 %v1132_v43, %s1775_s15  ;;  %v1708_v43 = vld [vmem:[#allocation2 + $0x38] sm:$0xff]  }
  0x5d   : > { %1271 = vrot.lane.b32.xlu1 %v1262_v44, %s1776_s16 }
  0x5f   : > { %1273 = vrot.lane.b32.xlu0 %v1270_v46, %s1776_s16  ;;  %v1709_v46 = vld [vmem:[#allocation2 + $0x40] sm:$0xff]  }
  0x61   : > { %1275 = vrot.lane.b32.xlu1 %v1269_v47, %s1776_s16 }
  0x63   : > { %1391 = vperm.xlu0 %1691, %v1383_v49  }
  0x65   : > { %1386 = vperm.xlu1 %1692, %v1382_v48  }
  0xa5   : > { %v216_v50 = vpop.permute.xlu0 %215 }
  0xa7   : > { %v220_v51 = vpop.permute.xlu1 %219 }
  0xa8   : > { %v236_v52 = vsel %vm228_vm1, %v220_v51, 0 }
  0xa9   : > { %v218_v54 = vpop.permute.xlu0 %217  ;;  %1571 = vmatpush3.bf16.msra.mxu1 %v236_v52 }
  0xaa   : > { %v223_v55 = vsel %vm221_vm2, %v218_v54, %v220_v51  ;;  %v222_v56 = vsel %vm221_vm2, %v216_v50, %v218_v54  ;;  %1576 = vmatprep.subr.bf16.mxu1 %v1766_v4 }
  0xab   : > { %1511 = vmatprep.subr.msk.bf16.mxu0 %vm228_vm1, %v223_v55  ;;  %v230_v58 = vsel %vm228_vm1, %v222_v56, 0  ;;  %v450_v59 = vpop.permute.xlu1 %449 }
  0xac   : > { %239 = vmatpush1.bf16.msra.mxu0 %v230_v58  ;;  %1573 = vmatmul.mubr.msk.bf16.vlgmr.msra.gmra.mrb[0].mxu1 %vm224_vm3, %v1701_v53 }
  0xad   : > { %1515 = vmatprep.subr.msk.bf16.mxu0 %vm228_vm1, %v1871_v13  ;;  %1577 = vmatpush3.bf16.msra.mxu1 %v337_v57  ;;  %v452_v61 = vpop.permute.xlu0 %451 }
  0xae   : > { %1578 = vmatprep.mubr.msk.bf16.mxu1 %vm1767_vm0, %v1766_v4  ;;  %1582 = vmatprep.subr.bf16.mxu1 %v1766_v4  ;;  %v456_v5 = vsel %vm455_vm4, %v450_v59, %v452_v61 }
  0xaf   : > { %1512 = vmatmul.mubr.msk.bf16.vlgmr.msra.gmra.mrb[0].mxu0 %vm224_vm3, %v1701_v53  ;;  %v454_v62 = vpop.permute.xlu1 %453  ;;  %v462_v9 = vsel %vm228_vm1, %v456_v5, 0 }
  0xb0   : > { %340 = vmatpush1.bf16.msra.mxu0 %v331_v60  ;;  %v457_v0 = vsel %vm455_vm4, %v452_v61, %v454_v62  ;;  %371 = vmatprep.mubr.bf16.mxu0 %v1768_v6  ;;  %v468_v2 = vsel %vm228_vm1, %v454_v62, 0 }
  0xb1   : > { %1519 = vmatprep.subr.msk.bf16.mxu0 %vm228_vm1, %v457_v0  ;;  %v587_v1 = vpop.permute.xlu0 %586 }
  0xb3   : > { %v589_v3 = vpop.permute.xlu1 %588 }
  0xb4   : > { %1579 = vmatmul.mubr.msk.bf16.vlgmr.msra.gmra.mrb[4].mxu1 %vm224_vm3, %v1702_v63  ;;  %v593_v17 = vsel %vm592_vm5, %v587_v1, %v589_v3 }
  0xb5   : > { %1583 = vmatpush3.bf16.msra.mxu1 %v468_v2  ;;  %1584 = vmatprep.mubr.msk.bf16.mxu1 %vm1767_vm0, %v1766_v4  ;;  %v591_v7 = vpop.permute.xlu0 %590  ;;  %v599_v20 = vsel %vm228_vm1, %v593_v17, 0 }
  0xb6   : > { %1588 = vmatprep.subr.bf16.mxu1 %v1766_v4  ;;  %v605_v11 = vsel %vm228_vm1, %v591_v7, 0  ;;  %v594_v12 = vsel %vm592_vm5, %v589_v3, %v591_v7 }
  0xb7   : > { %v724_v10 = vpop.permute.xlu1 %723 }
  0xb9   : > { %v726_v13 = vpop.permute.xlu0 %725 }
  0xba   : > { %v730_v27 = vsel %vm729_vm6, %v724_v10, %v726_v13 }
  0xbb   : > { %1516 = vmatmul.mubr.msk.bf16.vlgmr.msra.gmra.mrb[0].mxu0 %vm224_vm3, %v1702_v63  ;;  %v728_v14 = vpop.permute.xlu1 %727  ;;  %v736_v30 = vsel %vm228_vm1, %v730_v27, 0 }
  0xbc   : > { %471 = vmatpush1.bf16.msra.mxu0 %v462_v9  ;;  %1585 = vmatmul.mubr.msk.bf16.vlgmr.msra.gmra.mrb[8].mxu1 %vm224_vm3, %v1703_v8  ;;  %v742_v18 = vsel %vm228_vm1, %v728_v14, 0  ;;  %v731_v21 = vsel %vm729_vm6, %v726_v13, %v728_v14 }
  0xbd   : > { %1589 = vmatpush3.bf16.msra.mxu1 %v605_v11  ;;  %1590 = vmatprep.mubr.msk.bf16.mxu1 %vm1767_vm0, %v1766_v4  ;;  %v861_v16 = vpop.permute.xlu0 %860 }
  0xbe   : > { %502 = vmatprep.mubr.bf16.mxu0 %v1768_v6  ;;  %1523 = vmatprep.subr.msk.bf16.mxu0 %vm228_vm1, %v594_v12 }
  0xbf   : > { %1594 = vmatprep.subr.bf16.mxu1 %v1766_v4  ;;  %v863_v19 = vpop.permute.xlu1 %862 }
  0xc0   : > { %v867_v38 = vsel %vm866_vm7, %v861_v16, %v863_v19 }
  0xc1   : > { %v865_v22 = vpop.permute.xlu0 %864  ;;  %v873_v40 = vsel %vm228_vm1, %v867_v38, 0 }
  0xc2   : > { %v879_v25 = vsel %vm228_vm1, %v865_v22, 0  ;;  %v868_v33 = vsel %vm866_vm7, %v863_v19, %v865_v22 }
  0xc3   : > { %v998_v24 = vpop.permute.xlu1 %997 }
  0xc4   : > { %1591 = vmatmul.mubr.msk.bf16.vlgmr.msra.gmra.mrb[12].mxu1 %vm224_vm3, %v1704_v15 }
  0xc5   : > { %1595 = vmatpush3.bf16.msra.mxu1 %v742_v18  ;;  %1596 = vmatprep.mubr.msk.bf16.mxu1 %vm1767_vm0, %v1766_v4  ;;  %v1000_v26 = vpop.permute.xlu0 %999 }
  0xc6   : > { %1600 = vmatprep.subr.bf16.mxu1 %v1766_v4  ;;  %v1004_v45 = vsel %vm1003_vm8, %v998_v24, %v1000_v26 }
  0xc7   : > { %1520 = vmatmul.mubr.msk.bf16.vlgmr.msra.gmra.mrb[0].mxu0 %vm224_vm3, %v1703_v8  ;;  %v1002_v28 = vpop.permute.xlu1 %1001  ;;  %v1010_v47 = vsel %vm228_vm1, %v1004_v45, 0 }
  0xc8   : > { %608 = vmatpush1.bf16.msra.mxu0 %v599_v20  ;;  %639 = vmatprep.mubr.bf16.mxu0 %v1768_v6  ;;  %v1016_v32 = vsel %vm228_vm1, %v1002_v28, 0  ;;  %v1005_v41 = vsel %vm1003_vm8, %v1000_v26, %v1002_v28 }
  0xc9   : > { %1527 = vmatprep.subr.msk.bf16.mxu0 %vm228_vm1, %v731_v21  ;;  %v1135_v31 = vpop.permute.xlu0 %1134 }
  0xcb   : > { %v1137_v34 = vpop.permute.xlu1 %1136 }
  0xcc   : > { %1597 = vmatmul.mubr.msk.bf16.vlgmr.msra.gmra.mrb[16].mxu1 %vm224_vm3, %v1705_v23  ;;  %v1141_v49 = vsel %vm1140_vm9, %v1135_v31, %v1137_v34 }
  0xcd   : > { %1601 = vmatpush3.bf16.msra.mxu1 %v879_v25  ;;  %1602 = vmatprep.mubr.msk.bf16.mxu1 %vm1767_vm0, %v1766_v4  ;;  %v1139_v35 = vpop.permute.xlu0 %1138 }
  0xce   : > { %1606 = vmatprep.subr.bf16.mxu1 %v1766_v4  ;;  %v1153_v39 = vsel %vm228_vm1, %v1139_v35, 0  ;;  %v1142_v48 = vsel %vm1140_vm9, %v1137_v34, %v1139_v35 }
  0xcf   : > { %v1272_v37 = vpop.permute.xlu1 %1271 }
  0xd1   : > { %v1274_v50 = vpop.permute.xlu0 %1273 }
  0xd2   : > { %v1278_v52 = vsel %vm1277_vm10, %v1272_v37, %v1274_v50 }
  0xd3   : > { %1524 = vmatmul.mubr.msk.bf16.vlgmr.msra.gmra.mrb[0].mxu0 %vm224_vm3, %v1704_v15  ;;  %v1276_v42 = vpop.permute.xlu1 %1275  ;;  %v1284_v53 = vsel %vm228_vm1, %v1278_v52, 0 }
  0xd4   : > { %745 = vmatpush1.bf16.msra.mxu0 %v736_v30  ;;  %1603 = vmatmul.mubr.msk.bf16.vlgmr.msra.gmra.mrb[20].mxu1 %vm224_vm3, %v1706_v29  ;;  %v1290_v44 = vsel %vm228_vm1, %v1276_v42, 0  ;;  %v1279_v51 = vsel %vm1277_vm10, %v1274_v50, %v1276_v42 }
  0xd5   : > { %1607 = vmatpush3.bf16.msra.mxu1 %v1016_v32  ;;  %1608 = vmatprep.mubr.msk.bf16.mxu1 %vm1767_vm0, %v1766_v4 }
  0xd6   : > { %776 = vmatprep.mubr.bf16.mxu0 %v1768_v6  ;;  %1531 = vmatprep.subr.msk.bf16.mxu0 %vm228_vm1, %v868_v33 }
  0xd7   : > { %1612 = vmatprep.subr.bf16.mxu1 %v1766_v4 }
  0xdc   : > { %1609 = vmatmul.mubr.msk.bf16.vlgmr.msra.gmra.mrb[24].mxu1 %vm224_vm3, %v1707_v36 }
  0xdd   : > { %1613 = vmatpush3.bf16.msra.mxu1 %v1153_v39  ;;  %1614 = vmatprep.mubr.msk.bf16.mxu1 %vm1767_vm0, %v1766_v4 }
  0xde   : > { %1618 = vmatprep.subr.bf16.mxu1 %v1766_v4 }
  0xdf   : > { %1528 = vmatmul.mubr.msk.bf16.vlgmr.msra.gmra.mrb[0].mxu0 %vm224_vm3, %v1705_v23 }
  0xe0   : > { %882 = vmatpush1.bf16.msra.mxu0 %v873_v40  ;;  %913 = vmatprep.mubr.bf16.mxu0 %v1768_v6 }
  0xe1   : > { %1535 = vmatprep.subr.msk.bf16.mxu0 %vm228_vm1, %v1005_v41 }
  0xe2   : > { %v1392_v41 = vpop.permute.xlu0 %1391 }
  0xe4   : > { %1615 = vmatmul.mubr.msk.bf16.vlgmr.msra.gmra.mrb[28].mxu1 %vm224_vm3, %v1708_v43 }
  0xe5   : > { %1619 = vmatpush3.bf16.msra.mxu1 %v1290_v44  ;;  %1620 = vmatprep.mubr.msk.bf16.mxu1 %vm1767_vm0, %v1766_v4  ;;  %v1147_v4 = vsel %vm228_vm1, %v1141_v49, 0  ;;  %v1387_v49 = vpop.permute.xlu1 %1386 }
  0xeb   : > { %1532 = vmatmul.mubr.msk.bf16.vlgmr.msra.gmra.mrb[0].mxu0 %vm224_vm3, %v1706_v29 }
  0xec   : > { %1019 = vmatpush1.bf16.msra.mxu0 %v1010_v47  ;;  %1621 = vmatmul.mubr.msk.bf16.vlgmr.msra.gmra.mrb[32].mxu1 %vm224_vm3, %v1709_v46 }
  0xed   : > { %1050 = vmatprep.mubr.bf16.mxu0 %v1768_v6  ;;  %1539 = vmatprep.subr.msk.bf16.mxu0 %vm228_vm1, %v1142_v48 }
  0xf7   : > { %1536 = vmatmul.mubr.msk.bf16.vlgmr.msra.gmra.mrb[0].mxu0 %vm224_vm3, %v1707_v36 }
  0xf8   : > { %1156 = vmatpush1.bf16.msra.mxu0 %v1147_v4  ;;  %1187 = vmatprep.mubr.bf16.mxu0 %v1768_v6 }
  0xf9   : > { %1543 = vmatprep.subr.msk.bf16.mxu0 %vm228_vm1, %v1279_v51 }
 0x103   : > { %1540 = vmatmul.mubr.msk.bf16.vlgmr.msra.gmra.mrb[0].mxu0 %vm224_vm3, %v1708_v43 }
 0x104   : > { %1293 = vmatpush1.bf16.msra.mxu0 %v1284_v53  ;;  %1324 = vmatprep.mubr.bf16.mxu0 %v1768_v6 }
 0x10f   : > { %1544 = vmatmul.mubr.msk.bf16.vlgmr.msra.gmra.mrb[0].mxu0 %vm224_vm3, %v1709_v46 }
 0x17f   : > { %v315_v54 = vpop.f32.mrb[0].mxu1 }
 0x180   : > { %v1574_v55 = vpop.f32.mrb[1].mxu1 }
 0x181   : > { %v318_v56 = vpop.f32.mrb[2].mxu1 }
 0x182   : > { %v1575_v57 = vpop.f32.mrb[3].mxu1 }
 0x187   : > { %v416_v58 = vpop.f32.mrb[4].mxu1 }
 0x188   : > { %v417_v59 = vadd.f32 %v416_v58, %v315_v54  ;;  %v1580_v60 = vpop.f32.mrb[5].mxu1 }
 0x189   : > { %v419_v61 = vpop.f32.mrb[6].mxu1 }
 0x18a   : > { %v420_v62 = vadd.f32 %v419_v61, %v318_v56  ;;  %v1581_v63 = vpop.f32.mrb[7].mxu1 }
 0x18f   : > { %v547_v0 = vpop.f32.mrb[8].mxu1 }
 0x190   : > { %v556_v1 = vadd.f32 %v547_v0, %v417_v59  ;;  %v1586_v2 = vpop.f32.mrb[9].mxu1 }
 0x191   : > { %v550_v3 = vpop.f32.mrb[10].mxu1 }
 0x192   : > { %v559_v5 = vadd.f32 %v550_v3, %v420_v62  ;;  %v1587_v7 = vpop.f32.mrb[11].mxu1 }
 0x197   : > { %v684_v8 = vpop.f32.mrb[12].mxu1 }
 0x198   : > { %v693_v6 = vadd.f32 %v684_v8, %v556_v1  ;;  %v1592_v9 = vpop.f32.mrb[13].mxu1 }
 0x199   : > { %v687_v10 = vpop.f32.mrb[14].mxu1 }
 0x19a   : > { %v696_v11 = vadd.f32 %v687_v10, %v559_v5  ;;  %v1593_v12 = vpop.f32.mrb[15].mxu1 }
 0x19f   : > { %v821_v13 = vpop.f32.mrb[16].mxu1 }
 0x1a0   : > { %v830_v14 = vadd.f32 %v821_v13, %v693_v6  ;;  %v1598_v15 = vpop.f32.mrb[17].mxu1 }
 0x1a1   : > { %v824_v16 = vpop.f32.mrb[18].mxu1 }
 0x1a2   : > { %v833_v17 = vadd.f32 %v824_v16, %v696_v11  ;;  %v1599_v18 = vpop.f32.mrb[19].mxu1 }
 0x1a7   : > { %v958_v19 = vpop.f32.mrb[20].mxu1 }
 0x1a8   : > { %v967_v20 = vadd.f32 %v958_v19, %v830_v14  ;;  %v1604_v21 = vpop.f32.mrb[21].mxu1 }
 0x1a9   : > { %v961_v22 = vpop.f32.mrb[22].mxu1 }
 0x1aa   : > { %v970_v23 = vadd.f32 %v961_v22, %v833_v17  ;;  %v1605_v24 = vpop.f32.mrb[23].mxu1 }
 0x1af   : > { %v1095_v25 = vpop.f32.mrb[24].mxu1 }
 0x1b0   : > { %v1104_v26 = vadd.f32 %v1095_v25, %v967_v20  ;;  %v1610_v27 = vpop.f32.mrb[25].mxu1 }
 0x1b1   : > { %v1098_v28 = vpop.f32.mrb[26].mxu1 }
 0x1b2   : > { %v1107_v29 = vadd.f32 %v1098_v28, %v970_v23  ;;  %v1611_v30 = vpop.f32.mrb[27].mxu1 }
 0x1b7   : > { %v1232_v31 = vpop.f32.mrb[28].mxu1 }
 0x1b8   : > { %v1241_v32 = vadd.f32 %v1232_v31, %v1104_v26  ;;  %v1616_v33 = vpop.f32.mrb[29].mxu1 }
 0x1b9   : > { %v1235_v34 = vpop.f32.mrb[30].mxu1 }
 0x1ba   : > { %v1244_v35 = vadd.f32 %v1235_v34, %v1107_v29  ;;  %v1617_v36 = vpop.f32.mrb[31].mxu1 }
 0x1bf   : > { %v1369_v37 = vpop.f32.mrb[32].mxu1 }
 0x1c0   : > { %v1378_v38 = vadd.f32 %v1369_v37, %v1241_v32  ;;  %v1622_v39 = vpop.f32.mrb[33].mxu1 }
 0x1c1   : > { %v1372_v40 = vpop.f32.mrb[34].mxu1 }
 0x1c2   : > { %v1381_v42 = vadd.f32 %v1372_v40, %v1244_v35  ;;  %v1623_v43 = vpop.f32.mrb[35].mxu1  ;;  %v1396_v50 = vadd.f32 %v1387_v49, %v1378_v38 }
 0x1c4   : > { %v1399_v44 = vadd.f32 %v1392_v41, %v1381_v42 }
 0x1c6   : > { %v1402_v45 = vsub.f32 0.0, %v1399_v44 }
 0x1c8   : > { %v1407_v46 = vmul.f32 1.442695, %v1402_v45 }
 0x1ca   : > { %1710 = vpow2.f32 %v1407_v46 }
 0x1d4   : > { %v1711_v47 = vpop.eup %1710 }
 0x1d5   : > { %v1411_v48 = vadd.f32 1.0, %v1711_v47 }
 0x1d7   : > { %1712 = vrcp.f32 %v1411_v48 }
 0x1e1   : > { %v1713_v4 = vpop.eup %1712 }
 0x1e2   : > { %v1417_v51 = vmul.f32 %v1713_v4, %v1396_v50  ;;  %v1326_v52 = vpop.f32.mrb[0].mxu0 }
 0x1e3   : > { %v1328_v53 = vpop.f32.mrb[1].mxu0  ;;  %v1394_v3 = vadd.f32 %v1387_v49, %v1326_v52 }
 0x1e4   : > { %v1551_v54 = vpack.c.bf16 %v1417_v51, %v1417_v51  ;;  %v1330_v55 = vpop.f32.mrb[2].mxu0  ;;  %v1395_v7 = vadd.f32 %v1387_v49, %v1328_v53 }
 0x1e5   : > { %v1397_v56 = vadd.f32 %v1392_v41, %v1330_v55  ;;  %v1332_v57 = vpop.f32.mrb[3].mxu0 }
 0x1e6   : > { %v1398_v58 = vadd.f32 %v1392_v41, %v1332_v57  ;;  %1433 = vst.msk [vmem:[%s185_s24 + $0x8] sm:$0xf] %vm1432_vm11, %v1551_v54 }
 0x1e7   : > { %v1400_v59 = vsub.f32 0.0, %v1397_v56 }
 0x1e8   : > { %v1401_v60 = vsub.f32 0.0, %v1398_v58 }
 0x1e9   : > { %v1403_v61 = vmul.f32 1.442695, %v1400_v59 }
 0x1ea   : > { %v1405_v62 = vmul.f32 1.442695, %v1401_v60 }
 0x1eb   : > { %1714 = vpow2.f32 %v1403_v61 }
 0x1ec   : > { %1716 = vpow2.f32 %v1405_v62 }
 0x1f5   : > { %v1715_v63 = vpop.eup %1714 }
 0x1f6   : > { %v1717_v0 = vpop.eup %1716  ;;  %v1409_v1 = vadd.f32 1.0, %v1715_v63 }
 0x1f7   : > { %v1410_v2 = vadd.f32 1.0, %v1717_v0 }
 0x1f8   : > { %1718 = vrcp.f32 %v1409_v1 }
 0x1f9   : > { %1720 = vrcp.f32 %v1410_v2 }
 0x202   : > { %v1719_v5 = vpop.eup %1718 }
 0x203   : > { %v1721_v8 = vpop.eup %1720  ;;  %v1415_v6 = vmul.f32 %v1719_v5, %v1394_v3 }
 0x204   : > { %v1416_v9 = vmul.f32 %v1721_v8, %v1395_v7 }
 0x206   : > { %v1550_v10 = vpack.c.bf16 %v1416_v9, %v1415_v6 }
 0x208   : > { %1431 = vst [vmem:[%s185_s24] sm:$0xff] %v1550_v10 }
 0x209 PF: > { %s14_s12 = sadd.s32 1, %s1760_s12  }
 0x20a   : > { %p11_p3 = scmp.ge.s32.totalorder %s14_s12, 4  }
 0x20c   :  { %13 = sbr.rel (!%p11_p3) target bundleno = 1 (0x1), region = 75 }
 0x213   :  { %1455 = vsyncpa [#allocation3], 1 }
 0x214   :  { %1457 = vsyncpa [#allocation3 + $0x1], 1 }

// kernel: simple_decoder_forward.7
= control target key start
LH: loop header
LB: loop body
LE: loop exit
PB: predicated region body
PF: predicated region fallthrough
CT: control target
= control target key end

     0   :  { %8 = vsyncpa [#allocation3], 0  ;;  %s4996_s12 = smov 0   ;;  %s5846_s0 = inlined_call_operand.vmem [shape: bf16[2,2,1158], index: 0, kind: input, shape index: {}]   ;;  %s5847_s1 = inlined_call_operand.hbm [shape: bf16[9,32,2], index: 1, kind: input, shape index: {}]   ;;  %s5848_s2 = inlined_call_operand.vmem [shape: f32[32,1], index: 2, kind: input, shape index: {}]   ;;  %s5849_s3 = inlined_call_operand.vmem [shape: f32[2,16,1088], index: 3, kind: output, shape index: {}]  }
   0x1 LB: > { %s5002_s13 = sadd.s32 4294967295, %s4961_s12   ;;  %p4259_p0 = scmp.ge.s32.totalorder %s4961_s12, 1  ;;  %s4961_s12 = sphi %s4996_s12, %s14_s12  }
   0x2   : > { %p113_p1 = scmp.lt.s32.totalorder %s4961_s12, 3  ;;  %s4963_s14 = smov [#allocation2]  }
   0x3   : > { %s125_s15 = sshll.u32 %s4963_s14, 4  ;;  %p5850_p3 = scmp.eq.s32.totalorder %s5002_s13, 0  ;;  %s126_s15 = int_to_ptr.vmem [resolvable:$true] %s125_s15 }
   0x4   : > { %p5006_p2 = pnand %p4259_p0, %p113_p1  ;;  %s4923_s20 = scalar_lea.hbm %s5847_s1, 2304 }
   0x5   : > { %p4924_p6 = scmp.ne.s32.totalorder %s5847_s1, %s4923_s20  ;;  %p4930_p10 = scmp.lt.u32.totalorder %s4923_s20, %s5847_s1 }
   0x6   : > { %s5852_s16 = scalar_select %p5006_p2, 1, 0 }
   0x7   : > { %p4803_p4 = pneg %p5006_p2 }
   0x9   : > { %p5015_p5 = pnand %p5850_p3, %p4803_p4 }
   0xb   : > { %p4925_p7 = pneg %p5015_p5 }
   0xd   : > { %p4926_p8 = pnand %p4925_p7, %p4924_p6 }
   0xf   : > { %p4927_p9 = pneg %p4926_p8 }
  0x11   : > { %p4932_p11 = pnand %p4930_p10, %p4927_p9 }
  0x13   : > { %4935 = shalt.err (!%p4932_p11)
}
  0x14   : > { %s4936_s25 = scalar_lea.vmem %s126_s15, 2304  ;;  %p4944_p1 = scmp.lt.s32.totalorder %s126_s15, %s126_s15 }
  0x15   : > { %p4937_p12 = scmp.ne.s32.totalorder %s126_s15, %s4936_s25  ;;  %p4945_p4 = scmp.lt.s32.totalorder %s4936_s25, %s4936_s25 }
  0x17   : > { %p4939_p13 = pnand %p4937_p12, %p4925_p7  ;;  %p4946_p3 = por %p4945_p4, %p4944_p1 }
  0x19   : > { %p4940_p0 = pneg %p4939_p13 }
  0x1b   : > { %p4947_p2 = pnand %p4946_p3, %p4940_p0 }
  0x1d   : > { %4950 = shalt.err (!%p4947_p2)
}
  0x1e   : > { %s4964_s26 = smov 64   ;;  %s4965_s27 = smov 4  }
  0x1f   : > { %4806 = dma.hbm_to_vmem [thread:$0]  (!%p5015_p5), %s5847_s1, 2304, %s126_s15, [#allocation3], %s4964_s26, %s4964_s26, %s4965_s27  }
  0x20   : > { %p5854_p6 = scmp.ne.s32.totalorder %s5852_s16, 0 }
  0x21   : > { %p5855_p8 = scmp.eq.s32.totalorder (!%p5854_p6), %s5002_s13, 0 }
  0x22   : > { %151 = sbr.rel (%p5854_p6) target bundleno = 747 (0x2eb), region = 32 }
  0x29   : > { %4956 = dma.done.wait (%p5855_p8), [#allocation3], 2304   ;;  %p5856_p7 = pmov %p5855_p8 }
  0x2a   : > { %p174_p2 = scmp.lt.s32.totalorder %s5002_s13, 1  ;;  %v211_v0 = vlaneseq  ;;  %v4966_v1 = vmov 1966171168   ;;  %vm297_vm0 = vcmask 15360   ;;  %v5055_v8 = vld [vmem:[#allocation2 + $0x10] sm:$0xff]   ;;  %s4967_s7 = smov 127  }
  0x2b   : > { %4958 = vsyncadd (%p5856_p7), [#allocation3], 4294964992  ;;  %v209_v2 = vunpack.c.l.s4 %v4966_v1  ;;  %4448 = vmatprep.mubr.msk.bf16.mxu0 %vm297_vm0, %v5055_v8  ;;  %v4968_v14 = vmov 0   ;;  %s4969_s8 = smov 126   ;;  %s4970_s9 = smov 94   ;;  %vm304_vm1 = vcmask 1040384  }
  0x2c   : > { %s5858_s13 = smov (!%p174_p2, %s5002_s13), 1  ;;  %v212_v3 = vshrl.u32 %v211_v0, 7  ;;  %364 = vmatprep.mubr.bf16.mxu1 %v4968_v14  ;;  %4830 = vset.pattern.permute.xlu1 %v4968_v14  ;;  %s4971_s10 = smov 93   ;;  %v5167_v30 = vld [vmem:[#allocation2 + $0x18] sm:$0xff]   ;;  %vm288_vm2 = vcmask 1039360   ;;  %v5188_v38 = vld [vmem:[#allocation2] sm:$0xff]  }
  0x2d   : > { %v210_v4 = vunpack.c.0.s8 %v209_v2  ;;  %s4797_s30 = smul.u32 10, %s5858_s13  ;;  %4831 = vset.pattern.permute.xlu0 %v4968_v14  ;;  %s4972_s11 = smov 92   ;;  %v5209_v48 = vld [vmem:[#allocation2 + $0x8] sm:$0xff]   ;;  %vm997_vm3 = vcmask 1031168   ;;  %vm1436_vm4 = vcmask 769024   ;;  %vm1875_vm5 = vcmask 760832  }
  0x2e   : > { %s4973_s14 = smov 60   ;;  %s4974_s15 = smov 59   ;;  %vm2314_vm6 = vcmask 752640   ;;  %vm2763_vm7 = vcmask 490496   ;;  %vm3213_vm8 = vcmask 482304   ;;  %vm3663_vm9 = vcmask 474112  }
  0x2f   : > { %v5046_v5 = vsub.s32 %v210_v4, %v212_v3  ;;  %s5051_s6 = scalar_lea.vmem %s5846_s0, %s4797_s30  ;;  %s4975_s16 = smov 58   ;;  %v5282_v3 = vld [vmem:[#allocation2 + $0x20] sm:$0xff]   ;;  %vm4179_vm10 = vcmask 523264  }
  0x30   : > { %v4267_v6 = vld.sshfl [vmem:[%s5051_s6 + $0x8] sm:$0x1 pattern:$0x75316420]  ;;  %v184_v7 = vld [vmem:[%s5051_s6] sm:$0xff]  ;;  %s4798_s25 = smul.u32 144, %s5858_s13 }
  0x31   : > { %v5058_v9 = vrot.slane %v4267_v6, %v5046_v5  ;;  %v214_v10 = vrot.slane %v184_v7, %v5046_v5  ;;  %v207_v13 = vcombine.high %v184_v7, %v184_v7  ;;  %v4368_v24 = vld.sshfl [vmem:[%s5051_s6 + $0x8] sm:$0x11 pattern:$0x75316420] }
  0x32   : > { %v5148_v25 = vrot.slane %v4368_v24, %v5046_v5  ;;  %v2728_v26 = vcombine.high %v4368_v24, %v4368_v24  ;;  %v5300_v6 = vld [vmem:[#allocation2 + $0x28] sm:$0xff]   ;;  %v5350_v24 = vld [vmem:[#allocation2 + $0x30] sm:$0xff]   ;;  %s5788_s27 = scalar_lea.vmem %s5849_s3, %s4798_s25 }
  0x33   : > { %286 = vrot.lane.b32.xlu0 %v5058_v9, %s4967_s7  ;;  %v5065_v11 = vrot.slane %v214_v10, %v5046_v5  ;;  %v222_v12 = vcombine.high %v214_v10, %v214_v10  ;;  %v221_v18 = vrot.slane %v207_v13, %v5046_v5  ;;  %v634_v52 = vsel %vm304_vm1, %v5058_v9, 0 }
  0x34   : > { %v5153_v27 = vrot.slane %v2728_v26, %v5046_v5 }
  0x35   : > { %v5071_v15 = vrot.slane %v222_v12, %v5046_v5  ;;  %v5077_v16 = vcombine.high %v5065_v11, %v5065_v11  ;;  %v223_v19 = vcombine.high %v221_v18, %v221_v18  ;;  %v5087_v20 = vrot.slane %v221_v18, %v5046_v5 }
  0x36   : > { %v610_v31 = vsel %vm304_vm1, %v5065_v11, 0 }
  0x37   : > { %270 = vrot.lane.b32.xlu0 %v5065_v11, %s4967_s7  ;;  %272 = vrot.lane.b32.xlu1 %v5071_v15, %s4967_s7  ;;  %v5081_v17 = vcombine.high %v5071_v15, %v5071_v15  ;;  %v5090_v21 = vrot.slane %v223_v19, %v5046_v5  ;;  %v5096_v22 = vcombine.high %v5087_v20, %v5087_v20  ;;  %v622_v42 = vsel %vm304_vm1, %v5087_v20, 0 }
  0x38   : > { %v616_v7 = vsel %vm304_vm1, %v5077_v16, 0 }
  0x39   : > { %v5103_v23 = vcombine.high %v5090_v21, %v5090_v21 }
  0x3b   : > { %274 = vrot.lane.b32.xlu1 %v5077_v16, %s4967_s7  ;;  %276 = vrot.lane.b32.xlu0 %v5081_v17, %s4967_s7 }
  0x3f   : > { %278 = vrot.lane.b32.xlu1 %v5087_v20, %s4967_s7  ;;  %280 = vrot.lane.b32.xlu0 %v5090_v21, %s4967_s7 }
  0x43   : > { %282 = vrot.lane.b32.xlu1 %v5096_v22, %s4967_s7  ;;  %979 = vrot.lane.b32.xlu0 %v5065_v11, %s4969_s8 }
  0x47   : > { %981 = vrot.lane.b32.xlu1 %v5071_v15, %s4969_s8  ;;  %983 = vrot.lane.b32.xlu0 %v5077_v16, %s4969_s8 }
  0x4b   : > { %284 = vrot.lane.b32.xlu1 %v5103_v23, %s4967_s7  ;;  %987 = vrot.lane.b32.xlu0 %v5087_v20, %s4969_s8 }
  0x4f   : > { %989 = vrot.lane.b32.xlu1 %v5090_v21, %s4969_s8  ;;  %991 = vrot.lane.b32.xlu0 %v5096_v22, %s4969_s8 }
  0x53   : > { %995 = vrot.lane.b32.xlu1 %v5058_v9, %s4969_s8  ;;  %1418 = vrot.lane.b32.xlu0 %v5065_v11, %s4970_s9 }
  0x57   : > { %1420 = vrot.lane.b32.xlu1 %v5071_v15, %s4970_s9  ;;  %1422 = vrot.lane.b32.xlu0 %v5077_v16, %s4970_s9 }
  0x5b   : > { %985 = vrot.lane.b32.xlu1 %v5081_v17, %s4969_s8  ;;  %1426 = vrot.lane.b32.xlu0 %v5087_v20, %s4970_s9 }
  0x5f   : > { %1428 = vrot.lane.b32.xlu1 %v5090_v21, %s4970_s9  ;;  %1430 = vrot.lane.b32.xlu0 %v5096_v22, %s4970_s9 }
  0x63   : > { %993 = vrot.lane.b32.xlu1 %v5103_v23, %s4969_s8  ;;  %1434 = vrot.lane.b32.xlu0 %v5058_v9, %s4970_s9 }
  0x67   : > { %1859 = vrot.lane.b32.xlu0 %v5071_v15, %s4971_s10  ;;  %1857 = vrot.lane.b32.xlu1 %v5065_v11, %s4971_s10 }
  0x6b   : > { %1424 = vrot.lane.b32.xlu0 %v5081_v17, %s4970_s9  ;;  %1861 = vrot.lane.b32.xlu1 %v5077_v16, %s4971_s10 }
  0x6f   : > { %1867 = vrot.lane.b32.xlu0 %v5090_v21, %s4971_s10  ;;  %1865 = vrot.lane.b32.xlu1 %v5087_v20, %s4971_s10 }
  0x73   : > { %1432 = vrot.lane.b32.xlu0 %v5103_v23, %s4970_s9  ;;  %1869 = vrot.lane.b32.xlu1 %v5096_v22, %s4971_s10 }
  0x77   : > { %1863 = vrot.lane.b32.xlu0 %v5081_v17, %s4971_s10  ;;  %1873 = vrot.lane.b32.xlu1 %v5058_v9, %s4971_s10 }
  0x7b   : > { %2298 = vrot.lane.b32.xlu0 %v5071_v15, %s4972_s11  ;;  %2296 = vrot.lane.b32.xlu1 %v5065_v11, %s4972_s11 }
  0x7f   : > { %1871 = vrot.lane.b32.xlu0 %v5103_v23, %s4971_s10  ;;  %2300 = vrot.lane.b32.xlu1 %v5077_v16, %s4972_s11 }
  0x83   : > { %2304 = vrot.lane.b32.xlu1 %v5087_v20, %s4972_s11  ;;  %2306 = vrot.lane.b32.xlu0 %v5090_v21, %s4972_s11 }
  0x87   : > { %2308 = vrot.lane.b32.xlu1 %v5096_v22, %s4972_s11  ;;  %2302 = vrot.lane.b32.xlu0 %v5081_v17, %s4972_s11 }
  0x8b   : > { %2312 = vrot.lane.b32.xlu1 %v5058_v9, %s4972_s11  ;;  %2743 = vrot.lane.b32.xlu0 %v5065_v11, %s4973_s14 }
  0x8f   : > { %2745 = vrot.lane.b32.xlu1 %v5071_v15, %s4973_s14  ;;  %2747 = vrot.lane.b32.xlu0 %v5077_v16, %s4973_s14 }
  0x93   : > { %2310 = vrot.lane.b32.xlu1 %v5103_v23, %s4972_s11  ;;  %2751 = vrot.lane.b32.xlu0 %v5087_v20, %s4973_s14 }
  0x97   : > { %2753 = vrot.lane.b32.xlu1 %v5090_v21, %s4973_s14  ;;  %2755 = vrot.lane.b32.xlu0 %v5096_v22, %s4973_s14 }
  0x9b   : > { %2749 = vrot.lane.b32.xlu1 %v5081_v17, %s4973_s14  ;;  %2759 = vrot.lane.b32.xlu0 %v5148_v25, %s4973_s14 }
  0x9f   : > { %2757 = vrot.lane.b32.xlu0 %v5103_v23, %s4973_s14  ;;  %2761 = vrot.lane.b32.xlu1 %v5153_v27, %s4973_s14 }
  0xa3   : > { %3193 = vrot.lane.b32.xlu1 %v5065_v11, %s4974_s15  ;;  %3195 = vrot.lane.b32.xlu0 %v5071_v15, %s4974_s15 }
  0xa5   : > { %v5161_v28 = vpop.permute.xlu0 %286 }
  0xa6   : > { %4788 = vmatprep.subr.msk.bf16.mxu0 %vm304_vm1, %v5161_v28  ;;  %v330_v29 = vsel %vm304_vm1, %v5161_v28, 0 }
  0xa7   : > { %4447 = vmatpush3.bf16.msra.mxu0 %v330_v29  ;;  %3197 = vrot.lane.b32.xlu1 %v5077_v16, %s4974_s15 }
  0xa8   : > { %4284 = vmatprep.subr.msk.bf16.mxu0 %vm304_vm1, %v5071_v15  ;;  %3199 = vrot.lane.b32.xlu0 %v5081_v17, %s4974_s15 }
  0xa9   : > { %v271_v32 = vpop.permute.xlu0 %270  ;;  %v273_v33 = vpop.permute.xlu1 %272 }
  0xaa   : > { %4449 = vmatmul.mubr.msk.bf16.vlgmr.msra.gmra.mrb[0].mxu0 %vm297_vm0, %v5167_v30  ;;  %v289_v34 = vsel %vm288_vm2, %v271_v32, %v273_v33 }
  0xab   : > { %637 = vmatpush1.bf16.msra.mxu0 %v610_v31  ;;  %668 = vmatprep.mubr.bf16.mxu0 %v4968_v14  ;;  %v306_v39 = vsel %vm304_vm1, %v289_v34, 0  ;;  %v5364_v31 = vld [vmem:[#allocation2 + $0x38] sm:$0xff]  }
  0xac   : > { %4290 = vmatprep.subr.msk.bf16.mxu0 %vm304_vm1, %v5090_v21  ;;  %3201 = vrot.lane.b32.xlu1 %v5087_v20, %s4974_s15 }
  0xad   : > { %v275_v35 = vpop.permute.xlu1 %274  ;;  %v277_v36 = vpop.permute.xlu0 %276  ;;  %3203 = vrot.lane.b32.xlu0 %v5090_v21, %s4974_s15 }
  0xae   : > { %v290_v37 = vsel %vm288_vm2, %v273_v33, %v275_v35  ;;  %v291_v40 = vsel %vm288_vm2, %v275_v35, %v277_v36 }
  0xaf   : > { %4268 = vmatprep.subr.msk.bf16.mxu1 %vm304_vm1, %v290_v37  ;;  %v312_v44 = vsel %vm304_vm1, %v291_v40, 0 }
  0xb0   : > { %333 = vmatpush1.bf16.msra.mxu1 %v306_v39  ;;  %3205 = vrot.lane.b32.xlu1 %v5096_v22, %s4974_s15 }
  0xb1   : > { %v279_v41 = vpop.permute.xlu1 %278  ;;  %3207 = vrot.lane.b32.xlu0 %v5103_v23, %s4974_s15  ;;  %v281_v45 = vpop.permute.xlu0 %280 }
  0xb2   : > { %v292_v43 = vsel %vm288_vm2, %v277_v36, %v279_v41  ;;  %4285 = vmatmul.mubr.msk.bf16.vlgmr.msra.gmra.mrb[4].mxu0 %vm297_vm0, %v5188_v38  ;;  %v293_v51 = vsel %vm288_vm2, %v279_v41, %v281_v45 }
  0xb3   : > { %4269 = vmatmul.mubr.msk.bf16.vlgmr.msra.gmra.mrb[0].mxu1 %vm297_vm0, %v5055_v8  ;;  %4271 = vmatprep.subr.msk.bf16.mxu1 %vm304_vm1, %v292_v43  ;;  %v318_v55 = vsel %vm304_vm1, %v293_v51, 0 }
  0xb4   : > { %386 = vmatpush1.bf16.msra.mxu1 %v312_v44  ;;  %743 = vmatpush1.bf16.msra.mxu0 %v622_v42 }
  0xb5   : > { %v283_v46 = vpop.permute.xlu1 %282  ;;  %678 = vmatprep.mubr.bf16.mxu0 %v4968_v14  ;;  %374 = vmatprep.mubr.bf16.mxu1 %v4968_v14  ;;  %v980_v49 = vpop.permute.xlu0 %979 }
  0xb6   : > { %v294_v47 = vsel %vm288_vm2, %v281_v45, %v283_v46  ;;  %4789 = vmatprep.subr.msk.bf16.mxu0 %vm304_vm1, %v5058_v9  ;;  %3209 = vrot.lane.b32.xlu1 %v5148_v25, %s4974_s15 }
  0xb7   : > { %4274 = vmatprep.subr.msk.bf16.mxu1 %vm304_vm1, %v294_v47  ;;  %3211 = vrot.lane.b32.xlu0 %v5153_v27, %s4974_s15 }
  0xb9   : > { %v982_v50 = vpop.permute.xlu1 %981  ;;  %v5227_v53 = vpop.permute.xlu0 %983 }
  0xba   : > { %4286 = vmatmul.mubr.msk.bf16.gmra.mrb[8].mxu0 %vm297_vm0, %v5209_v48  ;;  %v999_v56 = vsel %vm997_vm3, %v982_v50, %v5227_v53  ;;  %3643 = vrot.lane.b32.xlu1 %v5065_v11, %s4975_s16  ;;  %v998_v59 = vsel %vm997_vm3, %v980_v49, %v982_v50 }
  0xbb   : > { %4270 = vmatmul.mubr.msk.bf16.gmra.mrb[4].mxu1 %vm297_vm0, %v5167_v30  ;;  %774 = vmatprep.mubr.bf16.mxu0 %v4968_v14  ;;  %v1013_v62 = vsel %vm304_vm1, %v998_v59, 0 }
  0xbc   : > { %417 = vmatprep.mubr.bf16.mxu1 %v4968_v14  ;;  %3645 = vrot.lane.b32.xlu0 %v5071_v15, %s4975_s16 }
  0xbd   : > { %v285_v54 = vpop.permute.xlu1 %284  ;;  %v5246_v58 = vpop.permute.xlu0 %987 }
  0xbe   : > { %v296_v57 = vsel %vm288_vm2, %v285_v54, %v5161_v28  ;;  %3647 = vrot.lane.b32.xlu1 %v5077_v16, %s4975_s16  ;;  %v295_v61 = vsel %vm288_vm2, %v283_v46, %v285_v54 }
  0xbf   : > { %v324_v1 = vsel %vm304_vm1, %v295_v61, 0 }
  0xc0   : > { %3649 = vrot.lane.b32.xlu0 %v5081_v17, %s4975_s16 }
  0xc1   : > { %v5262_v60 = vpop.permute.xlu0 %991  ;;  %v990_v63 = vpop.permute.xlu1 %989 }
  0xc2   : > { %4291 = vmatmul.mubr.msk.bf16.vlgmr.msra.gmra.mrb[12].mxu0 %vm297_vm0, %v5188_v38  ;;  %3651 = vrot.lane.b32.xlu1 %v5087_v20, %s4975_s16  ;;  %v1003_v0 = vsel %vm997_vm3, %v990_v63, %v5262_v60  ;;  %v1002_v2 = vsel %vm997_vm3, %v5246_v58, %v990_v63 }
  0xc3   : > { %4272 = vmatmul.mubr.msk.bf16.vlgmr.msra.gmra.mrb[8].mxu1 %vm297_vm0, %v5055_v8  ;;  %4453 = vmatpush3.bf16.msra.mxu0 %v634_v52  ;;  %v1025_v4 = vsel %vm304_vm1, %v1002_v2, 0  ;;  %v5416_v52 = vld [vmem:[#allocation2 + $0x40] sm:$0xff]  }
  0xc4   : > { %439 = vmatpush1.bf16.msra.mxu1 %v318_v55  ;;  %784 = vmatprep.mubr.bf16.mxu0 %v4968_v14  ;;  %v5426_v55 = vld [vmem:[#allocation2 + $0x48] sm:$0xff]  }
  0xc5   : > { %4277 = vmatprep.subr.msk.bf16.mxu1 %vm304_vm1, %v296_v57  ;;  %427 = vmatprep.mubr.bf16.mxu1 %v4968_v14  ;;  %v996_v5 = vpop.permute.xlu1 %995  ;;  %v1419_v9 = vpop.permute.xlu0 %1418 }
  0xc6   : > { %4301 = vmatprep.subr.msk.bf16.mxu0 %vm304_vm1, %v999_v56  ;;  %3653 = vrot.lane.b32.xlu0 %v5090_v21, %s4975_s16  ;;  %v1037_v10 = vsel %vm304_vm1, %v996_v5, 0 }
  0xc7   : > { %3655 = vrot.lane.b32.xlu1 %v5096_v22, %s4975_s16 }
  0xc9   : > { %v1421_v11 = vpop.permute.xlu1 %1420  ;;  %v5313_v12 = vpop.permute.xlu0 %1422 }
  0xca   : > { %4292 = vmatmul.mubr.msk.bf16.gmra.mrb[16].mxu0 %vm297_vm0, %v5209_v48  ;;  %3657 = vrot.lane.b32.xlu0 %v5103_v23, %s4975_s16  ;;  %v1438_v13 = vsel %vm1436_vm4, %v1421_v11, %v5313_v12  ;;  %v1437_v18 = vsel %vm1436_vm4, %v1419_v9, %v1421_v11 }
  0xcb   : > { %4273 = vmatmul.mubr.msk.bf16.gmra.mrb[12].mxu1 %vm297_vm0, %v5167_v30  ;;  %4454 = vmatprep.mubr.msk.bf16.mxu0 %vm297_vm0, %v5188_v38  ;;  %v1452_v20 = vsel %vm304_vm1, %v1437_v18, 0 }
  0xcc   : > { %470 = vmatprep.mubr.bf16.mxu1 %v4968_v14  ;;  %3659 = vrot.lane.b32.xlu1 %v5148_v25, %s4975_s16 }
  0xcd   : > { %v1427_v15 = vpop.permute.xlu0 %1426  ;;  %v986_v16 = vpop.permute.xlu1 %985 }
  0xce   : > { %3661 = vrot.lane.b32.xlu0 %v5153_v27, %s4975_s16  ;;  %v1000_v25 = vsel %vm997_vm3, %v5227_v53, %v986_v16 }
  0xcf   : > { %v1019_v27 = vsel %vm304_vm1, %v1000_v25, 0 }
  0xd1   : > { %v1429_v19 = vpop.permute.xlu1 %1428  ;;  %v5338_v21 = vpop.permute.xlu0 %1430 }
  0xd2   : > { %4455 = vmatmul.mubr.msk.bf16.vlgmr.msra.gmra.mrb[0].mxu0 %vm297_vm0, %v5209_v48 }
  0xd3   : > { %1040 = vmatpush1.bf16.msra.mxu0 %v1013_v62  ;;  %4275 = vmatmul.mubr.msk.bf16.vlgmr.msra.gmra.mrb[16].mxu1 %vm297_vm0, %v5055_v8 }
  0xd4   : > { %492 = vmatpush1.bf16.msra.mxu1 %v324_v1  ;;  %1071 = vmatprep.mubr.bf16.mxu0 %v4968_v14 }
  0xd5   : > { %4307 = vmatprep.subr.msk.bf16.mxu0 %vm304_vm1, %v1003_v0  ;;  %480 = vmatprep.mubr.bf16.mxu1 %v4968_v14  ;;  %v994_v28 = vpop.permute.xlu1 %993 }
  0xd6   : > { %4287 = vmatprep.subr.msk.bf16.mxu1 %vm304_vm1, %v5081_v17  ;;  %v1001_v17 = vsel %vm997_vm3, %v986_v16, %v5246_v58  ;;  %v1005_v29 = vsel %vm997_vm3, %v994_v28, %v996_v5  ;;  %v1004_v34 = vsel %vm997_vm3, %v5262_v60, %v994_v28 }
  0xd7   : > { %v1031_v37 = vsel %vm304_vm1, %v1004_v34, 0 }
  0xd9   : > { %v1858_v32 = vpop.permute.xlu1 %1857 }
  0xda   : > { %4302 = vmatmul.mubr.msk.bf16.vlgmr.msra.gmra.mrb[4].mxu0 %vm297_vm0, %v5282_v3 }
  0xdb   : > { %1146 = vmatpush1.bf16.msra.mxu0 %v1025_v4  ;;  %4276 = vmatmul.mubr.msk.bf16.gmra.mrb[20].mxu1 %vm297_vm0, %v5167_v30 }
  0xdc   : > { %1081 = vmatprep.mubr.bf16.mxu0 %v4968_v14  ;;  %523 = vmatprep.mubr.bf16.mxu1 %v4968_v14 }
  0xdd   : > { %4790 = vmatprep.subr.msk.bf16.mxu0 %vm304_vm1, %v996_v5  ;;  %v5376_v36 = vpop.permute.xlu1 %1861 }
  0xe1   : > { %v1866_v41 = vpop.permute.xlu1 %1865 }
  0xe2   : > { %4303 = vmatmul.mubr.msk.bf16.gmra.mrb[8].mxu0 %vm297_vm0, %v5300_v6 }
  0xe3   : > { %4278 = vmatmul.mubr.msk.bf16.vlgmr.msra.gmra.mrb[24].mxu1 %vm297_vm0, %v5055_v8  ;;  %1177 = vmatprep.mubr.bf16.mxu0 %v4968_v14  ;;  %v628_v8 = vsel %vm304_vm1, %v5096_v22, 0  ;;  %v1442_v22 = vsel %vm1436_vm4, %v1429_v19, %v5338_v21 }
  0xe4   : > { %690 = vmatpush1.bf16.msra.mxu1 %v616_v7  ;;  %533 = vmatprep.mubr.bf16.mxu1 %v4968_v14 }
  0xe5   : > { %4293 = vmatprep.subr.msk.bf16.mxu1 %vm304_vm1, %v5103_v23  ;;  %v1441_v23 = vsel %vm1436_vm4, %v1427_v15, %v1429_v19  ;;  %v5398_v44 = vpop.permute.xlu1 %1869 }
  0xe6   : > { %v1464_v26 = vsel %vm304_vm1, %v1441_v23, 0 }
  0xe9   : > { %v1874_v54 = vpop.permute.xlu1 %1873 }
  0xea   : > { %4308 = vmatmul.mubr.msk.bf16.vlgmr.msra.gmra.mrb[12].mxu0 %vm297_vm0, %v5282_v3  ;;  %v1915_v62 = vsel %vm304_vm1, %v1874_v54, 0 }
  0xeb   : > { %4279 = vmatmul.mubr.msk.bf16.gmra.mrb[28].mxu1 %vm297_vm0, %v5167_v30  ;;  %4459 = vmatpush3.bf16.msra.mxu0 %v1037_v10  ;;  %v1435_v30 = vpop.permute.xlu0 %1434 }
  0xec   : > { %1187 = vmatprep.mubr.bf16.mxu0 %v4968_v14  ;;  %721 = vmatprep.mubr.bf16.mxu1 %v4968_v14  ;;  %v1476_v35 = vsel %vm304_vm1, %v1435_v30, 0 }
  0xed   : > { %4318 = vmatprep.subr.msk.bf16.mxu0 %vm304_vm1, %v1438_v13  ;;  %v2297_v58 = vpop.permute.xlu1 %2296  ;;  %v5471_v13 = vld [vmem:[#allocation2 + $0x50] sm:$0xff]  }
  0xef   : > { %v1860_v33 = vpop.permute.xlu0 %1859 }
  0xf0   : > { %v1877_v39 = vsel %vm1875_vm5, %v1860_v33, %v5376_v36  ;;  %v1876_v43 = vsel %vm1875_vm5, %v1858_v32, %v1860_v33  ;;  %v4005_v32 = vld [vmem:[%s5848_s2 + $0x10] sm:$0xff]  ;;  %v4006_v33 = vld [vmem:[%s5848_s2 + $0x18] sm:$0xff] }
  0xf1   : > { %v1891_v46 = vsel %vm304_vm1, %v1876_v43, 0  ;;  %v2301_v61 = vpop.permute.xlu1 %2300  ;;  %4019 = vperm.xlu1 %4830, %v4005_v32   ;;  %4024 = vperm.xlu0 %4831, %v4006_v33   ;;  %v4004_v43 = vld [vmem:[%s5848_s2 + $0x8] sm:$0xff] }
  0xf2   : > { %4309 = vmatmul.mubr.msk.bf16.gmra.mrb[16].mxu0 %vm297_vm0, %v5300_v6 }
  0xf3   : > { %4288 = vmatmul.mubr.msk.bf16.vlgmr.msra.gmra.mrb[8].mxu1 %vm297_vm0, %v5188_v38  ;;  %4460 = vmatprep.mubr.msk.bf16.mxu0 %vm297_vm0, %v5282_v3 }
  0xf4   : > { %796 = vmatpush1.bf16.msra.mxu1 %v628_v8  ;;  %731 = vmatprep.mubr.bf16.mxu1 %v4968_v14 }
  0xf5   : > { %4304 = vmatprep.subr.msk.bf16.mxu1 %vm304_vm1, %v1001_v17 }
  0xfa   : > { %4461 = vmatmul.mubr.msk.bf16.vlgmr.msra.gmra.mrb[0].mxu0 %vm297_vm0, %v5300_v6 }
  0xfb   : > { %1479 = vmatpush1.bf16.msra.mxu0 %v1452_v20  ;;  %4289 = vmatmul.mubr.msk.bf16.gmra.mrb[12].mxu1 %vm297_vm0, %v5209_v48  ;;  %v5485_v20 = vld [vmem:[#allocation2 + $0x58] sm:$0xff]  }
  0xfc   : > { %1510 = vmatprep.mubr.bf16.mxu0 %v4968_v14  ;;  %4324 = vmatprep.subr.msk.bf16.mxu0 %vm304_vm1, %v1442_v22 }
  0xfd   : > { %827 = vmatprep.mubr.bf16.mxu1 %v4968_v14 }
 0x102   : > { %4319 = vmatmul.mubr.msk.bf16.vlgmr.msra.gmra.mrb[4].mxu0 %vm297_vm0, %v5350_v24 }
 0x103   : > { %1585 = vmatpush1.bf16.msra.mxu0 %v1464_v26  ;;  %4294 = vmatmul.mubr.msk.bf16.vlgmr.msra.gmra.mrb[24].mxu1 %vm297_vm0, %v5188_v38  ;;  %v1425_v38 = vpop.permute.xlu0 %1424 }
 0x104   : > { %1093 = vmatpush1.bf16.msra.mxu1 %v1019_v27  ;;  %1520 = vmatprep.mubr.bf16.mxu0 %v4968_v14  ;;  %v1440_v40 = vsel %vm1436_vm4, %v1425_v38, %v1427_v15  ;;  %v1439_v45 = vsel %vm1436_vm4, %v5313_v12, %v1425_v38 }
 0x105   : > { %4310 = vmatprep.subr.msk.bf16.mxu1 %vm304_vm1, %v1005_v29  ;;  %837 = vmatprep.mubr.bf16.mxu1 %v4968_v14 }
 0x106   : > { %4791 = vmatprep.subr.msk.bf16.mxu0 %vm304_vm1, %v1435_v30 }
 0x107   : > { %v1868_v42 = vpop.permute.xlu0 %1867 }
 0x108   : > { %v1881_v47 = vsel %vm1875_vm5, %v1868_v42, %v5398_v44  ;;  %v1880_v51 = vsel %vm1875_vm5, %v1866_v41, %v1868_v42 }
 0x109   : > { %v1903_v53 = vsel %vm304_vm1, %v1880_v51, 0 }
 0x10a   : > { %4320 = vmatmul.mubr.msk.bf16.gmra.mrb[8].mxu0 %vm297_vm0, %v5364_v31 }
 0x10b   : > { %4295 = vmatmul.mubr.msk.bf16.gmra.mrb[28].mxu1 %vm297_vm0, %v5209_v48  ;;  %1616 = vmatprep.mubr.bf16.mxu0 %v4968_v14  ;;  %v1458_v48 = vsel %vm304_vm1, %v1439_v45, 0  ;;  %v1433_v49 = vpop.permute.xlu0 %1432  ;;  %v5541_v45 = vld [vmem:[#allocation2 + $0x60] sm:$0xff]  }
 0x10c   : > { %1124 = vmatprep.mubr.bf16.mxu1 %v4968_v14  ;;  %v1444_v50 = vsel %vm1436_vm4, %v1433_v49, %v1435_v30  ;;  %v1443_v56 = vsel %vm1436_vm4, %v5338_v21, %v1433_v49 }
 0x10d   : > { %v1470_v60 = vsel %vm304_vm1, %v1443_v56, 0 }
 0x10f   : > { %v1864_v57 = vpop.permute.xlu0 %1863 }
 0x110   : > { %v1879_v59 = vsel %vm1875_vm5, %v1864_v57, %v1866_v41  ;;  %v1878_v1 = vsel %vm1875_vm5, %v5376_v36, %v1864_v57 }
 0x111   : > { %v1897_v5 = vsel %vm304_vm1, %v1878_v1, 0 }
 0x112   : > { %4325 = vmatmul.mubr.msk.bf16.vlgmr.msra.gmra.mrb[12].mxu0 %vm297_vm0, %v5350_v24 }
 0x113   : > { %4305 = vmatmul.mubr.msk.bf16.vlgmr.msra.gmra.mrb[8].mxu1 %vm297_vm0, %v5282_v3  ;;  %4465 = vmatpush3.bf16.msra.mxu0 %v1476_v35  ;;  %v2299_v63 = vpop.permute.xlu0 %2298  ;;  %v4003_v35 = vld [vmem:[%s5848_s2] sm:$0xff] }
 0x114   : > { %1199 = vmatpush1.bf16.msra.mxu1 %v1031_v37  ;;  %1626 = vmatprep.mubr.bf16.mxu0 %v4968_v14  ;;  %v2316_v0 = vsel %vm2314_vm6, %v2299_v63, %v2301_v61 }
 0x115   : > { %4321 = vmatprep.subr.msk.bf16.mxu1 %vm304_vm1, %v1440_v40  ;;  %1134 = vmatprep.mubr.bf16.mxu1 %v4968_v14 }
 0x116   : > { %4335 = vmatprep.subr.msk.bf16.mxu0 %vm304_vm1, %v1877_v39  ;;  %4009 = vperm.xlu1 %4830, %v4003_v35  }
 0x117   : > { %v1872_v2 = vpop.permute.xlu0 %1871 }
 0x118   : > { %v1883_v4 = vsel %vm1875_vm5, %v1872_v2, %v1874_v54  ;;  %v1882_v8 = vsel %vm1875_vm5, %v5398_v44, %v1872_v2 }
 0x119   : > { %v1909_v18 = vsel %vm304_vm1, %v1882_v8, 0 }
 0x11a   : > { %4326 = vmatmul.mubr.msk.bf16.gmra.mrb[16].mxu0 %vm297_vm0, %v5364_v31  ;;  %4014 = vperm.xlu1 %4830, %v4004_v43  }
 0x11b   : > { %4306 = vmatmul.mubr.msk.bf16.gmra.mrb[12].mxu1 %vm297_vm0, %v5300_v6  ;;  %4466 = vmatprep.mubr.msk.bf16.mxu0 %vm297_vm0, %v5350_v24  ;;  %v2307_v9 = vpop.permute.xlu0 %2306 }
 0x11c   : > { %1230 = vmatprep.mubr.bf16.mxu1 %v4968_v14 }
 0x11f   : > { %v2303_v16 = vpop.permute.xlu0 %2302 }
 0x120   : > { %v2317_v23 = vsel %vm2314_vm6, %v2301_v61, %v2303_v16 }
 0x121   : > { %v2336_v28 = vsel %vm304_vm1, %v2317_v23, 0 }
 0x122   : > { %4467 = vmatmul.mubr.msk.bf16.vlgmr.msra.gmra.mrb[0].mxu0 %vm297_vm0, %v5364_v31 }
 0x123   : > { %1918 = vmatpush1.bf16.msra.mxu0 %v1891_v46  ;;  %4311 = vmatmul.mubr.msk.bf16.vlgmr.msra.gmra.mrb[24].mxu1 %vm297_vm0, %v5282_v3  ;;  %v2305_v3 = vpop.permute.xlu1 %2304  ;;  %v2744_v21 = vpop.permute.xlu0 %2743 }
 0x124   : > { %1532 = vmatpush1.bf16.msra.mxu1 %v1458_v48  ;;  %1949 = vmatprep.mubr.bf16.mxu0 %v4968_v14  ;;  %v2319_v12 = vsel %vm2314_vm6, %v2305_v3, %v2307_v9  ;;  %v2318_v17 = vsel %vm2314_vm6, %v2303_v16, %v2305_v3 }
 0x125   : > { %4327 = vmatprep.subr.msk.bf16.mxu1 %vm304_vm1, %v1444_v50  ;;  %4341 = vmatprep.subr.msk.bf16.mxu0 %vm304_vm1, %v1881_v47  ;;  %v2342_v15 = vsel %vm304_vm1, %v2319_v12, 0  ;;  %v5552_v50 = vld [vmem:[#allocation2 + $0x68] sm:$0xff]  }
 0x126   : > { %1240 = vmatprep.mubr.bf16.mxu1 %v4968_v14 }
 0x127   : > { %v2309_v10 = vpop.permute.xlu1 %2308  ;;  %v2748_v25 = vpop.permute.xlu0 %2747 }
 0x128   : > { %v2320_v11 = vsel %vm2314_vm6, %v2307_v9, %v2309_v10 }
 0x12a   : > { %4336 = vmatmul.mubr.msk.bf16.vlgmr.msra.gmra.mrb[4].mxu0 %vm297_vm0, %v5416_v52 }
 0x12b   : > { %2024 = vmatpush1.bf16.msra.mxu0 %v1903_v53  ;;  %4312 = vmatmul.mubr.msk.bf16.gmra.mrb[28].mxu1 %vm297_vm0, %v5300_v6  ;;  %v2315_v6 = vsel %vm2314_vm6, %v2297_v58, %v2299_v63  ;;  %v2313_v19 = vpop.permute.xlu1 %2312  ;;  %v2752_v30 = vpop.permute.xlu0 %2751 }
 0x12c   : > { %1959 = vmatprep.mubr.bf16.mxu0 %v4968_v14  ;;  %1563 = vmatprep.mubr.bf16.mxu1 %v4968_v14  ;;  %v2330_v7 = vsel %vm304_vm1, %v2315_v6, 0 }
 0x12d   : > { %4792 = vmatprep.subr.msk.bf16.mxu0 %vm304_vm1, %v1874_v54 }
 0x12f   : > { %v2746_v22 = vpop.permute.xlu1 %2745  ;;  %v2756_v38 = vpop.permute.xlu0 %2755 }
 0x130   : > { %v2765_v29 = vsel %vm2763_vm7, %v2746_v22, %v2748_v25  ;;  %v2764_v34 = vsel %vm2763_vm7, %v2744_v21, %v2746_v22 }
 0x131   : > { %v2780_v37 = vsel %vm304_vm1, %v2764_v34, 0 }
 0x132   : > { %4337 = vmatmul.mubr.msk.bf16.gmra.mrb[8].mxu0 %vm297_vm0, %v5426_v55 }
 0x133   : > { %4322 = vmatmul.mubr.msk.bf16.vlgmr.msra.gmra.mrb[8].mxu1 %vm297_vm0, %v5350_v24  ;;  %2055 = vmatprep.mubr.bf16.mxu0 %v4968_v14  ;;  %v2311_v26 = vpop.permute.xlu1 %2310  ;;  %v2760_v47 = vpop.permute.xlu0 %2759 }
 0x134   : > { %1638 = vmatpush1.bf16.msra.mxu1 %v1470_v60  ;;  %1573 = vmatprep.mubr.bf16.mxu1 %v4968_v14  ;;  %v2322_v27 = vsel %vm2314_vm6, %v2311_v26, %v2313_v19  ;;  %v2321_v36 = vsel %vm2314_vm6, %v2309_v10, %v2311_v26 }
 0x135   : > { %4338 = vmatprep.subr.msk.bf16.mxu1 %vm304_vm1, %v1879_v59  ;;  %v2348_v42 = vsel %vm304_vm1, %v2321_v36, 0 }
 0x13a   : > { %4342 = vmatmul.mubr.msk.bf16.vlgmr.msra.gmra.mrb[12].mxu0 %vm297_vm0, %v5416_v52 }
 0x13b   : > { %4323 = vmatmul.mubr.msk.bf16.gmra.mrb[12].mxu1 %vm297_vm0, %v5364_v31  ;;  %4471 = vmatpush3.bf16.msra.mxu0 %v1915_v62 }
 0x13c   : > { %2065 = vmatprep.mubr.bf16.mxu0 %v4968_v14  ;;  %1669 = vmatprep.mubr.bf16.mxu1 %v4968_v14 }
 0x13d   : > { %4352 = vmatprep.subr.msk.bf16.mxu0 %vm304_vm1, %v2316_v0 }
 0x142   : > { %4343 = vmatmul.mubr.msk.bf16.gmra.mrb[16].mxu0 %vm297_vm0, %v5426_v55 }
 0x143   : > { %4328 = vmatmul.mubr.msk.bf16.vlgmr.msra.gmra.mrb[24].mxu1 %vm297_vm0, %v5350_v24  ;;  %4472 = vmatprep.mubr.msk.bf16.mxu0 %vm297_vm0, %v5416_v52  ;;  %v2354_v24 = vsel %vm304_vm1, %v2313_v19, 0 }
 0x144   : > { %1971 = vmatpush1.bf16.msra.mxu1 %v1897_v5  ;;  %1679 = vmatprep.mubr.bf16.mxu1 %v4968_v14 }
 0x145   : > { %4344 = vmatprep.subr.msk.bf16.mxu1 %vm304_vm1, %v1883_v4 }
 0x14a   : > { %4473 = vmatmul.mubr.msk.bf16.vlgmr.msra.gmra.mrb[0].mxu0 %vm297_vm0, %v5426_v55 }
 0x14b   : > { %2357 = vmatpush1.bf16.msra.mxu0 %v2330_v7  ;;  %4329 = vmatmul.mubr.msk.bf16.gmra.mrb[28].mxu1 %vm297_vm0, %v5364_v31  ;;  %v2754_v31 = vpop.permute.xlu1 %2753 }
 0x14c   : > { %2388 = vmatprep.mubr.bf16.mxu0 %v4968_v14  ;;  %4358 = vmatprep.subr.msk.bf16.mxu0 %vm304_vm1, %v2320_v11  ;;  %v2769_v40 = vsel %vm2763_vm7, %v2754_v31, %v2756_v38  ;;  %v2768_v44 = vsel %vm2763_vm7, %v2752_v30, %v2754_v31 }
 0x14d   : > { %2002 = vmatprep.mubr.bf16.mxu1 %v4968_v14  ;;  %v2792_v46 = vsel %vm304_vm1, %v2768_v44, 0 }
 0x14f   : > { %v2750_v39 = vpop.permute.xlu1 %2749 }
 0x150   : > { %v2767_v41 = vsel %vm2763_vm7, %v2750_v39, %v2752_v30  ;;  %v2766_v51 = vsel %vm2763_vm7, %v2748_v25, %v2750_v39 }
 0x152   : > { %4353 = vmatmul.mubr.msk.bf16.vlgmr.msra.gmra.mrb[4].mxu0 %vm297_vm0, %v5471_v13 }
 0x153   : > { %2463 = vmatpush1.bf16.msra.mxu0 %v2342_v15  ;;  %4339 = vmatmul.mubr.msk.bf16.vlgmr.msra.gmra.mrb[8].mxu1 %vm297_vm0, %v5416_v52  ;;  %v2762_v48 = vpop.permute.xlu1 %2761 }
 0x154   : > { %2077 = vmatpush1.bf16.msra.mxu1 %v1909_v18  ;;  %2398 = vmatprep.mubr.bf16.mxu0 %v4968_v14  ;;  %v2772_v49 = vsel %vm2763_vm7, %v2760_v47, %v2762_v48 }
 0x155   : > { %4355 = vmatprep.subr.msk.bf16.mxu1 %vm304_vm1, %v2318_v17  ;;  %2012 = vmatprep.mubr.bf16.mxu1 %v4968_v14  ;;  %v2804_v61 = vsel %vm304_vm1, %v2772_v49, 0  ;;  %v5611_v17 = vld [vmem:[#allocation2 + $0x70] sm:$0xff]  }
 0x156   : > { %4793 = vmatprep.subr.msk.bf16.mxu0 %vm304_vm1, %v2313_v19 }
 0x157   : > { %v3194_v53 = vpop.permute.xlu1 %3193 }
 0x15a   : > { %4354 = vmatmul.mubr.msk.bf16.gmra.mrb[8].mxu0 %vm297_vm0, %v5485_v20 }
 0x15b   : > { %4340 = vmatmul.mubr.msk.bf16.gmra.mrb[12].mxu1 %vm297_vm0, %v5426_v55  ;;  %2494 = vmatprep.mubr.bf16.mxu0 %v4968_v14  ;;  %v3198_v59 = vpop.permute.xlu1 %3197 }
 0x15c   : > { %2108 = vmatprep.mubr.bf16.mxu1 %v4968_v14 }
 0x15f   : > { %v3202_v2 = vpop.permute.xlu1 %3201 }
 0x162   : > { %4359 = vmatmul.mubr.msk.bf16.vlgmr.msra.gmra.mrb[12].mxu0 %vm297_vm0, %v5471_v13 }
 0x163   : > { %4345 = vmatmul.mubr.msk.bf16.vlgmr.msra.gmra.mrb[24].mxu1 %vm297_vm0, %v5416_v52  ;;  %4477 = vmatpush3.bf16.msra.mxu0 %v2354_v24  ;;  %v2758_v52 = vpop.permute.xlu0 %2757  ;;  %v3206_v12 = vpop.permute.xlu1 %3205 }
 0x164   : > { %2410 = vmatpush1.bf16.msra.mxu1 %v2336_v28  ;;  %2504 = vmatprep.mubr.bf16.mxu0 %v4968_v14  ;;  %v2771_v54 = vsel %vm2763_vm7, %v2758_v52, %v2760_v47  ;;  %v2770_v3 = vsel %vm2763_vm7, %v2756_v38, %v2758_v52 }
 0x165   : > { %4361 = vmatprep.subr.msk.bf16.mxu1 %vm304_vm1, %v2322_v27  ;;  %2118 = vmatprep.mubr.bf16.mxu1 %v4968_v14  ;;  %v2798_v9 = vsel %vm304_vm1, %v2770_v3, 0  ;;  %v4848_v27 = vld [vmem:[#allocation2 + $0x78] sm:$0xff]  }
 0x166   : > { %4369 = vmatprep.subr.msk.bf16.mxu0 %vm304_vm1, %v2765_v29 }
 0x167   : > { %v3196_v57 = vpop.permute.xlu0 %3195  ;;  %v3210_v18 = vpop.permute.xlu1 %3209 }
 0x168   : > { %v3215_v63 = vsel %vm3213_vm8, %v3196_v57, %v3198_v59  ;;  %v3214_v10 = vsel %vm3213_vm8, %v3194_v53, %v3196_v57 }
 0x16a   : > { %4360 = vmatmul.mubr.msk.bf16.gmra.mrb[16].mxu0 %vm297_vm0, %v5485_v20 }
 0x16b   : > { %4346 = vmatmul.mubr.msk.bf16.gmra.mrb[28].mxu1 %vm297_vm0, %v5426_v55  ;;  %4478 = vmatprep.mubr.msk.bf16.mxu0 %vm297_vm0, %v5471_v13  ;;  %v2786_v55 = vsel %vm304_vm1, %v2766_v51, 0  ;;  %v3200_v6 = vpop.permute.xlu0 %3199  ;;  %v3644_v25 = vpop.permute.xlu1 %3643 }
 0x16c   : > { %2441 = vmatprep.mubr.bf16.mxu1 %v4968_v14  ;;  %v3217_v7 = vsel %vm3213_vm8, %v3200_v6, %v3202_v2  ;;  %v3216_v19 = vsel %vm3213_vm8, %v3198_v59, %v3200_v6 }
 0x16d   : > { %v3236_v23 = vsel %vm304_vm1, %v3216_v19, 0 }
 0x16f   : > { %v3204_v11 = vpop.permute.xlu0 %3203  ;;  %v3648_v32 = vpop.permute.xlu1 %3647 }
 0x170   : > { %v3219_v8 = vsel %vm3213_vm8, %v3204_v11, %v3206_v12  ;;  %v3218_v16 = vsel %vm3213_vm8, %v3202_v2, %v3204_v11  ;;  %v4850_v2 = vld [vmem:[#allocation2 + $0x88] sm:$0xff]  }
 0x172   : > { %4479 = vmatmul.mubr.msk.bf16.vlgmr.msra.gmra.mrb[0].mxu0 %vm297_vm0, %v5485_v20 }
 0x173   : > { %2807 = vmatpush1.bf16.msra.mxu0 %v2780_v37  ;;  %4356 = vmatmul.mubr.msk.bf16.vlgmr.msra.gmra.mrb[8].mxu1 %vm297_vm0, %v5471_v13  ;;  %v3208_v15 = vpop.permute.xlu0 %3207  ;;  %v3652_v39 = vpop.permute.xlu1 %3651 }
 0x174   : > { %2516 = vmatpush1.bf16.msra.mxu1 %v2348_v42  ;;  %2838 = vmatprep.mubr.bf16.mxu0 %v4968_v14  ;;  %v3221_v22 = vsel %vm3213_vm8, %v3208_v15, %v3210_v18  ;;  %v3220_v36 = vsel %vm3213_vm8, %v3206_v12, %v3208_v15 }
 0x175   : > { %4372 = vmatprep.subr.msk.bf16.mxu1 %vm304_vm1, %v2767_v41  ;;  %4375 = vmatprep.subr.msk.bf16.mxu0 %vm304_vm1, %v2769_v40  ;;  %v3248_v42 = vsel %vm304_vm1, %v3220_v36, 0 }
 0x176   : > { %2451 = vmatprep.mubr.bf16.mxu1 %v4968_v14 }
 0x177   : > { %v3212_v21 = vpop.permute.xlu0 %3211 }
 0x178   : > { %v3222_v24 = vsel %vm3213_vm8, %v3210_v18, %v3212_v21 }
 0x179   : > { %v3254_v38 = vsel %vm304_vm1, %v3222_v24, 0 }
 0x17a   : > { %4370 = vmatmul.mubr.msk.bf16.vlgmr.msra.gmra.mrb[4].mxu0 %vm297_vm0, %v5541_v45 }
 0x17b   : > { %2913 = vmatpush1.bf16.msra.mxu0 %v2792_v46  ;;  %4357 = vmatmul.mubr.msk.bf16.gmra.mrb[12].mxu1 %vm297_vm0, %v5485_v20  ;;  %v3646_v31 = vpop.permute.xlu0 %3645 }
 0x17c   : > { %2848 = vmatprep.mubr.bf16.mxu0 %v4968_v14  ;;  %2547 = vmatprep.mubr.bf16.mxu1 %v4968_v14  ;;  %v3665_v41 = vsel %vm3663_vm9, %v3646_v31, %v3648_v32  ;;  %v3664_v46 = vsel %vm3663_vm9, %v3644_v25, %v3646_v31 }
 0x17d   : > { %4794 = vmatprep.subr.msk.bf16.mxu0 %vm304_vm1, %v2772_v49  ;;  %v3680_v48 = vsel %vm304_vm1, %v3664_v46, 0 }
 0x17f   : > { %v3650_v35 = vpop.permute.xlu0 %3649 }
 0x180   : > { %v3667_v43 = vsel %vm3663_vm9, %v3650_v35, %v3652_v39  ;;  %v3666_v47 = vsel %vm3663_vm9, %v3648_v32, %v3650_v35 }
 0x181   : > { %v3686_v51 = vsel %vm304_vm1, %v3666_v47, 0 }
 0x182   : > { %4371 = vmatmul.mubr.msk.bf16.gmra.mrb[8].mxu0 %vm297_vm0, %v5552_v50 }
 0x183   : > { %4362 = vmatmul.mubr.msk.bf16.vlgmr.msra.gmra.mrb[24].mxu1 %vm297_vm0, %v5471_v13  ;;  %2944 = vmatprep.mubr.bf16.mxu0 %v4968_v14  ;;  %v3230_v13 = vsel %vm304_vm1, %v3214_v10, 0  ;;  %v3654_v44 = vpop.permute.xlu0 %3653 }
 0x184   : > { %2860 = vmatpush1.bf16.msra.mxu1 %v2786_v55  ;;  %2557 = vmatprep.mubr.bf16.mxu1 %v4968_v14  ;;  %v4849_v55 = vld [vmem:[#allocation2 + $0x80] sm:$0xff]  }
 0x185   : > { %4378 = vmatprep.subr.msk.bf16.mxu1 %vm304_vm1, %v2771_v54  ;;  %v3668_v54 = vsel %vm3663_vm9, %v3652_v39, %v3654_v44 }
 0x186   : > { %v5564_v56 = vpop.f32.mrb[0].mxu1  ;;  %v3692_v59 = vsel %vm304_vm1, %v3668_v54, 0 }
 0x187   : > { %v5566_v58 = vpop.f32.mrb[1].mxu1  ;;  %v3658_v49 = vpop.permute.xlu0 %3657 }
 0x188   : > { %v5568_v60 = vpop.f32.mrb[2].mxu1 }
 0x189   : > { %v5571_v62 = vpop.f32.mrb[3].mxu1 }
 0x18a   : > { %4376 = vmatmul.mubr.msk.bf16.vlgmr.msra.gmra.mrb[12].mxu0 %vm297_vm0, %v5541_v45 }
 0x18b   : > { %4363 = vmatmul.mubr.msk.bf16.gmra.mrb[28].mxu1 %vm297_vm0, %v5485_v20  ;;  %4483 = vmatpush3.bf16.msra.mxu0 %v2804_v61  ;;  %v3242_v20 = vsel %vm304_vm1, %v3218_v16, 0  ;;  %v3662_v57 = vpop.permute.xlu0 %3661 }
 0x18c   : > { %2954 = vmatprep.mubr.bf16.mxu0 %v4968_v14  ;;  %2891 = vmatprep.mubr.bf16.mxu1 %v4968_v14 }
 0x18d   : > { %4386 = vmatprep.subr.msk.bf16.mxu0 %vm304_vm1, %v3215_v63 }
 0x18e   : > { %v5581_v0 = vpop.f32.mrb[4].mxu1 }
 0x18f   : > { %v5583_v1 = vpop.f32.mrb[5].mxu1 }
 0x190   : > { %v5586_v4 = vpop.f32.mrb[6].mxu1 }
 0x191   : > { %v5588_v5 = vpop.f32.mrb[7].mxu1 }
 0x192   : > { %4377 = vmatmul.mubr.msk.bf16.gmra.mrb[16].mxu0 %vm297_vm0, %v5552_v50 }
 0x193   : > { %4373 = vmatmul.mubr.msk.bf16.vlgmr.msra.gmra.mrb[8].mxu1 %vm297_vm0, %v5541_v45  ;;  %4484 = vmatprep.mubr.msk.bf16.mxu0 %vm297_vm0, %v5541_v45 }
 0x194   : > { %2966 = vmatpush1.bf16.msra.mxu1 %v2798_v9  ;;  %2901 = vmatprep.mubr.bf16.mxu1 %v4968_v14 }
 0x195   : > { %4389 = vmatprep.subr.msk.bf16.mxu1 %vm304_vm1, %v3217_v7 }
 0x19a   : > { %4485 = vmatmul.mubr.msk.bf16.vlgmr.msra.gmra.mrb[0].mxu0 %vm297_vm0, %v5552_v50 }
 0x19b   : > { %3257 = vmatpush1.bf16.msra.mxu0 %v3230_v13  ;;  %4374 = vmatmul.mubr.msk.bf16.gmra.mrb[12].mxu1 %vm297_vm0, %v5552_v50 }
 0x19c   : > { %3288 = vmatprep.mubr.bf16.mxu0 %v4968_v14  ;;  %4392 = vmatprep.subr.msk.bf16.mxu0 %vm304_vm1, %v3219_v8 }
 0x19d   : > { %2997 = vmatprep.mubr.bf16.mxu1 %v4968_v14 }
 0x1a2   : > { %4387 = vmatmul.mubr.msk.bf16.vlgmr.msra.gmra.mrb[4].mxu0 %vm297_vm0, %v5611_v17 }
 0x1a3   : > { %3363 = vmatpush1.bf16.msra.mxu0 %v3242_v20  ;;  %4379 = vmatmul.mubr.msk.bf16.vlgmr.msra.gmra.mrb[24].mxu1 %vm297_vm0, %v5541_v45  ;;  %v3656_v45 = vpop.permute.xlu1 %3655 }
 0x1a4   : > { %3310 = vmatpush1.bf16.msra.mxu1 %v3236_v23  ;;  %3298 = vmatprep.mubr.bf16.mxu0 %v4968_v14  ;;  %v3669_v52 = vsel %vm3663_vm9, %v3654_v44, %v3656_v45  ;;  %v3670_v63 = vsel %vm3663_vm9, %v3656_v45, %v3658_v49 }
 0x1a5   : > { %3007 = vmatprep.mubr.bf16.mxu1 %v4968_v14  ;;  %4395 = vmatprep.subr.msk.bf16.mxu1 %vm304_vm1, %v3221_v22  ;;  %v3698_v3 = vsel %vm304_vm1, %v3670_v63, 0 }
 0x1a6   : > { %v5625_v26 = vpop.f32.mrb[16].mxu1  ;;  %4795 = vmatprep.subr.msk.bf16.mxu0 %vm304_vm1, %v3222_v24 }
 0x1a7   : > { %v5628_v28 = vpop.f32.mrb[17].mxu1 }
 0x1a8   : > { %v5630_v29 = vpop.f32.mrb[18].mxu1 }
 0x1a9   : > { %v5632_v30 = vpop.f32.mrb[19].mxu1 }
 0x1aa   : > { %4388 = vmatmul.mubr.msk.bf16.gmra.mrb[8].mxu0 %vm297_vm0, %v4848_v27 }
 0x1ab   : > { %4380 = vmatmul.mubr.msk.bf16.gmra.mrb[28].mxu1 %vm297_vm0, %v5552_v50  ;;  %3394 = vmatprep.mubr.bf16.mxu0 %v4968_v14  ;;  %v3660_v50 = vpop.permute.xlu1 %3659 }
 0x1ac   : > { %3341 = vmatprep.mubr.bf16.mxu1 %v4968_v14  ;;  %v3671_v53 = vsel %vm3663_vm9, %v3658_v49, %v3660_v50  ;;  %v3672_v61 = vsel %vm3663_vm9, %v3660_v50, %v3662_v57 }
 0x1ad   : > { %v3704_v6 = vsel %vm304_vm1, %v3672_v61, 0 }
 0x1ae   : > { %v5639_v33 = vpop.f32.mrb[20].mxu1 }
 0x1af   : > { %v5641_v34 = vpop.f32.mrb[21].mxu1 }
 0x1b0   : > { %v5644_v37 = vpop.f32.mrb[22].mxu1 }
 0x1b1   : > { %v5647_v40 = vpop.f32.mrb[23].mxu1 }
 0x1b2   : > { %4393 = vmatmul.mubr.msk.bf16.vlgmr.msra.gmra.mrb[12].mxu0 %vm297_vm0, %v5611_v17 }
 0x1b3   : > { %4390 = vmatmul.mubr.msk.bf16.vlgmr.msra.gmra.mrb[8].mxu1 %vm297_vm0, %v5611_v17  ;;  %4489 = vmatpush3.bf16.msra.mxu0 %v3254_v38 }
 0x1b4   : > { %3416 = vmatpush1.bf16.msra.mxu1 %v3248_v42  ;;  %3404 = vmatprep.mubr.bf16.mxu0 %v4968_v14 }
 0x1b5   : > { %3351 = vmatprep.mubr.bf16.mxu1 %v4968_v14  ;;  %4403 = vmatprep.subr.msk.bf16.mxu0 %vm304_vm1, %v3665_v41 }
 0x1b6   : > { %4406 = vmatprep.subr.msk.bf16.mxu1 %vm304_vm1, %v3667_v43 }
 0x1ba   : > { %4394 = vmatmul.mubr.msk.bf16.gmra.mrb[16].mxu0 %vm297_vm0, %v4848_v27 }
 0x1bb   : > { %4391 = vmatmul.mubr.msk.bf16.gmra.mrb[12].mxu1 %vm297_vm0, %v4848_v27  ;;  %4490 = vmatprep.mubr.msk.bf16.mxu0 %vm297_vm0, %v5611_v17 }
 0x1bc   : > { %3447 = vmatprep.mubr.bf16.mxu1 %v4968_v14 }
 0x1c2   : > { %4491 = vmatmul.mubr.msk.bf16.vlgmr.msra.gmra.mrb[0].mxu0 %vm297_vm0, %v4848_v27 }
 0x1c3   : > { %3707 = vmatpush1.bf16.msra.mxu0 %v3680_v48  ;;  %4396 = vmatmul.mubr.msk.bf16.vlgmr.msra.gmra.mrb[24].mxu1 %vm297_vm0, %v5611_v17  ;;  %v5717_v17 = vpop.permute.xlu0 %4024 }
 0x1c4   : > { %3760 = vmatpush1.bf16.msra.mxu1 %v3686_v51  ;;  %3738 = vmatprep.mubr.bf16.mxu0 %v4968_v14 }
 0x1c5   : > { %4409 = vmatprep.subr.msk.bf16.mxu0 %vm304_vm1, %v3669_v52  ;;  %3457 = vmatprep.mubr.bf16.mxu1 %v4968_v14 }
 0x1c6   : > { %4412 = vmatprep.subr.msk.bf16.mxu1 %vm304_vm1, %v3671_v53 }
 0x1ca   : > { %4404 = vmatmul.mubr.msk.bf16.vlgmr.msra.gmra.mrb[4].mxu0 %vm297_vm0, %v4849_v55 }
 0x1cb   : > { %3813 = vmatpush1.bf16.msra.mxu0 %v3692_v59  ;;  %4397 = vmatmul.mubr.msk.bf16.gmra.mrb[28].mxu1 %vm297_vm0, %v4848_v27 }
 0x1cc   : > { %3748 = vmatprep.mubr.bf16.mxu0 %v4968_v14  ;;  %3791 = vmatprep.mubr.bf16.mxu1 %v4968_v14 }
 0x1cd   : > { %4796 = vmatprep.subr.msk.bf16.mxu0 %vm304_vm1, %v3672_v61 }
 0x1d2   : > { %4405 = vmatmul.mubr.msk.bf16.gmra.mrb[8].mxu0 %vm297_vm0, %v4850_v2 }
 0x1d3   : > { %4407 = vmatmul.mubr.msk.bf16.vlgmr.msra.gmra.mrb[8].mxu1 %vm297_vm0, %v4849_v55  ;;  %3844 = vmatprep.mubr.bf16.mxu0 %v4968_v14 }
 0x1d4   : > { %3866 = vmatpush1.bf16.msra.mxu1 %v3698_v3  ;;  %3801 = vmatprep.mubr.bf16.mxu1 %v4968_v14 }
 0x1da   : > { %4410 = vmatmul.mubr.msk.bf16.vlgmr.msra.gmra.mrb[12].mxu0 %vm297_vm0, %v4849_v55 }
 0x1db   : > { %4495 = vmatpush3.bf16.msra.mxu0 %v3704_v6  ;;  %4408 = vmatmul.mubr.msk.bf16.gmra.mrb[12].mxu1 %vm297_vm0, %v4850_v2 }
 0x1dc   : > { %3854 = vmatprep.mubr.bf16.mxu0 %v4968_v14  ;;  %3897 = vmatprep.mubr.bf16.mxu1 %v4968_v14 }
 0x1e2   : > { %4411 = vmatmul.mubr.msk.bf16.gmra.mrb[16].mxu0 %vm297_vm0, %v4850_v2 }
 0x1e3   : > { %4413 = vmatmul.mubr.msk.bf16.vlgmr.msra.gmra.mrb[24].mxu1 %vm297_vm0, %v4849_v55  ;;  %4496 = vmatprep.mubr.msk.bf16.mxu0 %vm297_vm0, %v4849_v55 }
 0x1e4   : > { %3907 = vmatprep.mubr.bf16.mxu1 %v4968_v14  ;;  %v5715_v14 = vpop.permute.xlu1 %4019 }
 0x1ea   : > { %4497 = vmatmul.mubr.msk.bf16.vlgmr.msra.gmra.mrb[0].mxu0 %vm297_vm0, %v4850_v2 }
 0x1eb   : > { %4414 = vmatmul.mubr.msk.bf16.gmra.mrb[28].mxu1 %vm297_vm0, %v4850_v2 }
 0x29d   : > { %v3740_v7 = vpop.f32.mrb[4].mxu0 }
 0x29e   : > { %v5704_v9 = vadd.f32 %v3740_v7, %v5564_v56  ;;  %v3742_v10 = vpop.f32.mrb[5].mxu0 }
 0x29f   : > { %v5707_v11 = vadd.f32 %v3742_v10, %v5566_v58  ;;  %v3744_v12 = vpop.f32.mrb[6].mxu0 }
 0x2a0   : > { %v5710_v13 = vadd.f32 %v3744_v12, %v5568_v60  ;;  %v3746_v8 = vpop.f32.mrb[7].mxu0 }
 0x2a1   : > { %v5713_v15 = vadd.f32 %v3746_v8, %v5571_v62 }
 0x2a5   : > { %v3750_v16 = vpop.f32.mrb[8].mxu0 }
 0x2a6   : > { %v4504_v56 = vadd.f32 %v3750_v16, %v5581_v0  ;;  %v3752_v18 = vpop.f32.mrb[9].mxu0  ;;  %v5720_v19 = vpop.f32.mrb[8].mxu1 }
 0x2a7   : > { %v4505_v58 = vadd.f32 %v3752_v18, %v5583_v1  ;;  %v3754_v20 = vpop.f32.mrb[10].mxu0  ;;  %v5723_v21 = vpop.f32.mrb[9].mxu1 }
 0x2a8   : > { %v4045_v60 = vadd.f32 %v4504_v56, %v5715_v14  ;;  %v4506_v62 = vadd.f32 %v3754_v20, %v5586_v4  ;;  %v3756_v22 = vpop.f32.mrb[11].mxu0  ;;  %v5727_v23 = vpop.f32.mrb[10].mxu1 }
 0x2a9   : > { %v4046_v24 = vadd.f32 %v4505_v58, %v5715_v14  ;;  %v4507_v25 = vadd.f32 %v3756_v22, %v5588_v5  ;;  %v5731_v0 = vpop.f32.mrb[11].mxu1 }
 0x2aa   : > { %v4063_v27 = vsub.f32 0.0, %v4045_v60  ;;  %v4054_v31 = vadd.f32 %v4506_v62, %v5717_v17 }
 0x2ab   : > { %v4064_v1 = vsub.f32 0.0, %v4046_v24  ;;  %v4055_v32 = vadd.f32 %v4507_v25, %v5717_v17 }
 0x2ac   : > { %v4081_v35 = vmul.f32 1.442695, %v4063_v27  ;;  %v4072_v36 = vsub.f32 0.0, %v4054_v31 }
 0x2ad   : > { %v4083_v38 = vmul.f32 1.442695, %v4064_v1  ;;  %v4073_v39 = vsub.f32 0.0, %v4055_v32  ;;  %v3846_v4 = vpop.f32.mrb[12].mxu0 }
 0x2ae   : > { %4851 = vpow2.f32 %v4081_v35  ;;  %v4099_v41 = vmul.f32 1.442695, %v4072_v36  ;;  %v5736_v42 = vadd.f32 %v3846_v4, %v5625_v26  ;;  %v3803_v43 = vpop.f32.mrb[12].mxu1  ;;  %v3848_v5 = vpop.f32.mrb[13].mxu0 }
 0x2af   : > { %4853 = vpow2.f32 %v4083_v38  ;;  %v4101_v44 = vmul.f32 1.442695, %v4073_v39  ;;  %v4047_v45 = vadd.f32 %v5715_v14, %v3803_v43  ;;  %v5740_v46 = vadd.f32 %v3848_v5, %v5628_v28  ;;  %v3805_v47 = vpop.f32.mrb[13].mxu1  ;;  %v3850_v48 = vpop.f32.mrb[14].mxu0 }
 0x2b0   : > { %4855 = vpow2.f32 %v4099_v41  ;;  %v4048_v49 = vadd.f32 %v5715_v14, %v3805_v47  ;;  %v5744_v50 = vadd.f32 %v3850_v48, %v5630_v29  ;;  %v3807_v51 = vpop.f32.mrb[14].mxu1  ;;  %v3852_v26 = vpop.f32.mrb[15].mxu0 }
 0x2b1   : > { %4857 = vpow2.f32 %v4101_v44  ;;  %v4065_v52 = vsub.f32 0.0, %v4047_v45  ;;  %v4056_v53 = vadd.f32 %v5717_v17, %v3807_v51  ;;  %v3809_v54 = vpop.f32.mrb[15].mxu1  ;;  %v5748_v57 = vadd.f32 %v3852_v26, %v5632_v30  ;;  %v5767_v38 = vpop.permute.xlu1 %4009 }
 0x2b2   : > { %v4066_v55 = vsub.f32 0.0, %v4048_v49  ;;  %v4057_v28 = vadd.f32 %v5717_v17, %v3809_v54  ;;  %v4027_v51 = vadd.f32 %v5704_v9, %v5767_v38 }
 0x2b3   : > { %v4085_v59 = vmul.f32 1.442695, %v4065_v52  ;;  %v4074_v61 = vsub.f32 0.0, %v4056_v53 }
 0x2b4   : > { %v4087_v63 = vmul.f32 1.442695, %v4066_v55  ;;  %v4075_v2 = vsub.f32 0.0, %v4057_v28 }
 0x2b5   : > { %4859 = vpow2.f32 %v4085_v59  ;;  %v4103_v29 = vmul.f32 1.442695, %v4074_v61  ;;  %v3856_v3 = vpop.f32.mrb[16].mxu0 }
 0x2b6   : > { %4861 = vpow2.f32 %v4087_v63  ;;  %v4105_v6 = vmul.f32 1.442695, %v4075_v2  ;;  %v4512_v7 = vadd.f32 %v3856_v3, %v5639_v33  ;;  %v3858_v10 = vpop.f32.mrb[17].mxu0  ;;  %v5752_v12 = vpop.f32.mrb[24].mxu1 }
 0x2b7   : > { %4863 = vpow2.f32 %v4103_v29  ;;  %v4513_v30 = vadd.f32 %v3858_v10, %v5641_v34  ;;  %v3860_v8 = vpop.f32.mrb[18].mxu0  ;;  %v5755_v16 = vpop.f32.mrb[25].mxu1 }
 0x2b8   : > { %v4852_v56 = vpop.eup %4851  ;;  %4865 = vpow2.f32 %v4105_v6  ;;  %v4049_v18 = vadd.f32 %v4512_v7, %v5715_v14  ;;  %v4514_v58 = vadd.f32 %v3860_v8, %v5644_v37  ;;  %v3862_v20 = vpop.f32.mrb[19].mxu0 }
 0x2b9   : > { %v5759_v60 = vpop.f32.mrb[26].mxu1  ;;  %v4854_v62 = vpop.eup %4853  ;;  %v4117_v33 = vadd.f32 1.0, %v4852_v56  ;;  %v4050_v22 = vadd.f32 %v4513_v30, %v5715_v14  ;;  %v4515_v24 = vadd.f32 %v3862_v20, %v5647_v40  ;;  %v4028_v20 = vadd.f32 %v5707_v11, %v5767_v38 }
 0x2ba   : > { %v5763_v25 = vpop.f32.mrb[27].mxu1  ;;  %v4856_v34 = vpop.eup %4855  ;;  %v4118_v27 = vadd.f32 1.0, %v4854_v62  ;;  %v4067_v31 = vsub.f32 0.0, %v4049_v18  ;;  %v4058_v1 = vadd.f32 %v4514_v58, %v5717_v17 }
 0x2bb   : > { %v4858_v32 = vpop.eup %4857  ;;  %4867 = vrcp.f32 %v4117_v33  ;;  %v4126_v35 = vadd.f32 1.0, %v4856_v34  ;;  %v4068_v37 = vsub.f32 0.0, %v4050_v22  ;;  %v4059_v36 = vadd.f32 %v4515_v24, %v5717_v17  ;;  %v5780_v10 = vpop.permute.xlu1 %4014 }
 0x2bc   : > { %4869 = vrcp.f32 %v4118_v27  ;;  %v4127_v39 = vadd.f32 1.0, %v4858_v32  ;;  %v4089_v4 = vmul.f32 1.442695, %v4067_v31  ;;  %v4076_v41 = vsub.f32 0.0, %v4058_v1 }
 0x2bd   : > { %4871 = vrcp.f32 %v4126_v35  ;;  %v4091_v40 = vmul.f32 1.442695, %v4068_v37  ;;  %v4498_v43 = vpop.f32.mrb[0].mxu0  ;;  %v4077_v44 = vsub.f32 0.0, %v4059_v36  ;;  %v4036_v24 = vadd.f32 %v5710_v13, %v5780_v10 }
 0x2be   : > { %4873 = vrcp.f32 %v4127_v39  ;;  %v4107_v5 = vmul.f32 1.442695, %v4076_v41  ;;  %v4053_v45 = vadd.f32 %v4498_v43, %v5715_v14  ;;  %v3909_v47 = vpop.f32.mrb[28].mxu1  ;;  %v5770_v48 = vpop.f32.mrb[1].mxu0  ;;  %v4037_v37 = vadd.f32 %v5713_v15, %v5780_v10 }
 0x2bf   : > { %v4860_v49 = vpop.eup %4859  ;;  %4875 = vpow2.f32 %v4089_v4  ;;  %v4051_v26 = vadd.f32 %v5715_v14, %v3909_v47  ;;  %v3911_v52 = vpop.f32.mrb[29].mxu1  ;;  %v4109_v8 = vmul.f32 1.442695, %v4077_v44  ;;  %v4029_v15 = vadd.f32 %v5767_v38, %v5720_v19 }
 0x2c0   : > { %v4499_v53 = vpop.f32.mrb[2].mxu0  ;;  %v4862_v54 = vpop.eup %4861  ;;  %v4119_v55 = vadd.f32 1.0, %v4860_v49  ;;  %4877 = vpow2.f32 %v4091_v40  ;;  %v4071_v28 = vsub.f32 0.0, %v4053_v45  ;;  %v4052_v59 = vadd.f32 %v5715_v14, %v3911_v52 }
 0x2c1   : > { %v3913_v61 = vpop.f32.mrb[30].mxu1  ;;  %v5776_v63 = vpop.f32.mrb[3].mxu0  ;;  %v4120_v29 = vadd.f32 1.0, %v4862_v54  ;;  %4879 = vpow2.f32 %v4107_v5  ;;  %v4069_v3 = vsub.f32 0.0, %v4051_v26  ;;  %v4062_v9 = vadd.f32 %v4499_v53, %v5717_v17 }
 0x2c2   : > { %v4864_v2 = vpop.eup %4863  ;;  %v3915_v6 = vpop.f32.mrb[31].mxu1  ;;  %4881 = vrcp.f32 %v4119_v55  ;;  %v4070_v56 = vsub.f32 0.0, %v4052_v59  ;;  %v4097_v18 = vmul.f32 1.442695, %v4071_v28  ;;  %v4060_v33 = vadd.f32 %v5717_v17, %v3913_v61 }
 0x2c3   : > { %v4866_v7 = vpop.eup %4865  ;;  %v4128_v30 = vadd.f32 1.0, %v4864_v2  ;;  %4883 = vrcp.f32 %v4120_v29  ;;  %v4080_v58 = vsub.f32 0.0, %v4062_v9  ;;  %v4093_v62 = vmul.f32 1.442695, %v4069_v3 }
 0x2c4   : > { %v4129_v14 = vadd.f32 1.0, %v4866_v7  ;;  %v4095_v34 = vmul.f32 1.442695, %v4070_v56  ;;  %v4061_v27 = vadd.f32 %v5717_v17, %v3915_v6  ;;  %v4078_v32 = vsub.f32 0.0, %v4060_v33 }
 0x2c5   : > { %4885 = vrcp.f32 %v4128_v30  ;;  %v4868_v22 = vpop.eup %4867  ;;  %v4115_v1 = vmul.f32 1.442695, %v4080_v58  ;;  %v4038_v53 = vadd.f32 %v5780_v10, %v5727_v23  ;;  %v4039_v55 = vadd.f32 %v5780_v10, %v5731_v0 }
 0x2c6   : > { %4887 = vrcp.f32 %v4129_v14  ;;  %v4870_v31 = vpop.eup %4869  ;;  %v4153_v11 = vmul.f32 %v4868_v22, %v4027_v51  ;;  %v4079_v39 = vsub.f32 0.0, %v4061_v27  ;;  %v4111_v17 = vmul.f32 1.442695, %v4078_v32 }
 0x2c7   : > { %4889 = vpow2.f32 %v4109_v8  ;;  %v4872_v35 = vpop.eup %4871  ;;  %v4154_v36 = vmul.f32 %v4870_v31, %v4028_v20  ;;  %v4030_v51 = vadd.f32 %v5767_v38, %v5723_v21  ;;  %v4031_v56 = vadd.f32 %v5736_v42, %v5767_v38 }
 0x2c8   : > { %4891 = vpow2.f32 %v4097_v18  ;;  %v4874_v13 = vpop.eup %4873  ;;  %4171 = vst [vmem:[%s5788_s27] sm:$0xff] %v4153_v11  ;;  %v4162_v4 = vmul.f32 %v4872_v35, %v4036_v24  ;;  %v4113_v47 = vmul.f32 1.442695, %v4079_v39  ;;  %v4032_v58 = vadd.f32 %v5740_v46, %v5767_v38 }
 0x2c9   : > { %4893 = vpow2.f32 %v4093_v62  ;;  %v4876_v41 = vpop.eup %4875  ;;  %4172 = vst [vmem:[%s5788_s27 + $0x8] sm:$0xff] %v4154_v36  ;;  %v4163_v40 = vmul.f32 %v4874_v13, %v4037_v37  ;;  %v4040_v33 = vadd.f32 %v5744_v50, %v5780_v10  ;;  %v4041_v46 = vadd.f32 %v5748_v57, %v5780_v10 }
 0x2ca   : > { %4895 = vpow2.f32 %v4095_v34  ;;  %v4878_v43 = vpop.eup %4877  ;;  %4181 = vst [vmem:[%s5788_s27 + $0x48] sm:$0xff] %v4162_v4  ;;  %v4121_v5 = vadd.f32 1.0, %v4876_v41  ;;  %v4035_v50 = vadd.f32 %v5767_v38, %v5770_v48  ;;  %v4033_v32 = vadd.f32 %v5767_v38, %v5752_v12 }
 0x2cb   : > { %4897 = vpow2.f32 %v4115_v1  ;;  %v4880_v44 = vpop.eup %4879  ;;  %4182 = vst [vmem:[%s5788_s27 + $0x50] sm:$0xff] %v4163_v40  ;;  %v4122_v45 = vadd.f32 1.0, %v4878_v43  ;;  %v4034_v36 = vadd.f32 %v5767_v38, %v5755_v16  ;;  %v4044_v48 = vadd.f32 %v5780_v10, %v5776_v63 }
 0x2cc   : > { %4899 = vpow2.f32 %v4111_v17  ;;  %v4882_v49 = vpop.eup %4881  ;;  %v4130_v26 = vadd.f32 1.0, %v4880_v44  ;;  %v4042_v12 = vadd.f32 %v5780_v10, %v5759_v60  ;;  %v4043_v38 = vadd.f32 %v5780_v10, %v5763_v25 }
 0x2cd   : > { %4901 = vrcp.f32 %v4121_v5  ;;  %v4884_v52 = vpop.eup %4883  ;;  %v4155_v54 = vmul.f32 %v4882_v49, %v4029_v15 }
 0x2ce   : > { %4903 = vrcp.f32 %v4122_v45  ;;  %v4156_v28 = vmul.f32 %v4884_v52, %v4030_v51 }
 0x2cf   : > { %v4886_v19 = vpop.eup %4885  ;;  %4905 = vrcp.f32 %v4130_v26  ;;  %4173 = vst [vmem:[%s5788_s27 + $0x10] sm:$0xff] %v4155_v54 }
 0x2d0   : > { %v4888_v59 = vpop.eup %4887  ;;  %v4164_v21 = vmul.f32 %v4886_v19, %v4038_v53  ;;  %4907 = vpow2.f32 %v4113_v47  ;;  %4174 = vst [vmem:[%s5788_s27 + $0x18] sm:$0xff] %v4156_v28 }
 0x2d1   : > { %v4890_v61 = vpop.eup %4889  ;;  %v4165_v2 = vmul.f32 %v4888_v59, %v4039_v55 }
 0x2d2   : > { %v4892_v29 = vpop.eup %4891  ;;  %4183 = vst [vmem:[%s5788_s27 + $0x58] sm:$0xff] %v4164_v21  ;;  %v4131_v3 = vadd.f32 1.0, %v4890_v61 }
 0x2d3   : > { %v4894_v23 = vpop.eup %4893  ;;  %4184 = vst [vmem:[%s5788_s27 + $0x60] sm:$0xff] %v4165_v2  ;;  %v4125_v9 = vadd.f32 1.0, %v4892_v29 }
 0x2d4   : > { %v4896_v6 = vpop.eup %4895  ;;  %4909 = vrcp.f32 %v4131_v3  ;;  %v4123_v7 = vadd.f32 1.0, %v4894_v23 }
 0x2d5   : > { %v4898_v30 = vpop.eup %4897  ;;  %4911 = vrcp.f32 %v4125_v9  ;;  %v4124_v0 = vadd.f32 1.0, %v4896_v6 }
 0x2d6   : > { %v4900_v8 = vpop.eup %4899  ;;  %4913 = vrcp.f32 %v4123_v7  ;;  %v4134_v14 = vadd.f32 1.0, %v4898_v30 }
 0x2d7   : > { %v4902_v18 = vpop.eup %4901  ;;  %4915 = vrcp.f32 %v4124_v0  ;;  %v4132_v20 = vadd.f32 1.0, %v4900_v8 }
 0x2d8   : > { %v4904_v62 = vpop.eup %4903  ;;  %v4157_v22 = vmul.f32 %v4902_v18, %v4031_v56  ;;  %4917 = vrcp.f32 %v4134_v14 }
 0x2d9   : > { %v4906_v24 = vpop.eup %4905  ;;  %v4158_v34 = vmul.f32 %v4904_v62, %v4032_v58  ;;  %4919 = vrcp.f32 %v4132_v20 }
 0x2da   : > { %v4908_v42 = vpop.eup %4907  ;;  %4175 = vst [vmem:[%s5788_s27 + $0x20] sm:$0xff] %v4157_v22  ;;  %v4166_v27 = vmul.f32 %v4906_v24, %v4040_v33 }
 0x2db   : > { %4176 = vst [vmem:[%s5788_s27 + $0x28] sm:$0xff] %v4158_v34  ;;  %v4133_v31 = vadd.f32 1.0, %v4908_v42 }
 0x2dc   : > { %4185 = vst [vmem:[%s5788_s27 + $0x68] sm:$0xff] %v4166_v27 }
 0x2dd   : > { %4921 = vrcp.f32 %v4133_v31 }
 0x2de   : > { %v4910_v11 = vpop.eup %4909 }
 0x2df   : > { %v4912_v1 = vpop.eup %4911  ;;  %v4167_v35 = vmul.f32 %v4910_v11, %v4041_v46 }
 0x2e0   : > { %v4914_v37 = vpop.eup %4913  ;;  %v4161_v57 = vmul.f32 %v4912_v1, %v4035_v50 }
 0x2e1   : > { %v4916_v39 = vpop.eup %4915  ;;  %4186 = vst [vmem:[%s5788_s27 + $0x70] sm:$0xff] %v4167_v35  ;;  %v4159_v13 = vmul.f32 %v4914_v37, %v4033_v32 }
 0x2e2   : > { %v4918_v4 = vpop.eup %4917  ;;  %4180 = vst.msk [vmem:[%s5788_s27 + $0x40] sm:$0xff] %vm4179_vm10, %v4161_v57  ;;  %v4160_v17 = vmul.f32 %v4916_v39, %v4034_v36 }
 0x2e3   : > { %v4920_v41 = vpop.eup %4919  ;;  %4177 = vst [vmem:[%s5788_s27 + $0x30] sm:$0xff] %v4159_v13  ;;  %v4170_v40 = vmul.f32 %v4918_v4, %v4044_v48 }
 0x2e4   : > { %4178 = vst [vmem:[%s5788_s27 + $0x38] sm:$0xff] %v4160_v17  ;;  %v4168_v16 = vmul.f32 %v4920_v41, %v4042_v12 }
 0x2e5   : > { %4189 = vst.msk [vmem:[%s5788_s27 + $0x88] sm:$0xff] %vm4179_vm10, %v4170_v40 }
 0x2e6   : > { %4187 = vst [vmem:[%s5788_s27 + $0x78] sm:$0xff] %v4168_v16 }
 0x2e7   : > { %v4922_v43 = vpop.eup %4921 }
 0x2e8   : > { %v4169_v63 = vmul.f32 %v4922_v43, %v4043_v38 }
 0x2ea   : > { %4188 = vst [vmem:[%s5788_s27 + $0x80] sm:$0xff] %v4169_v63 }
 0x2eb PF: > { %s14_s12 = sadd.s32 1, %s4961_s12  }
 0x2ec   : > { %p11_p3 = scmp.ge.s32.totalorder %s14_s12, 4  }
 0x2ee   :  { %13 = sbr.rel (!%p11_p3) target bundleno = 1 (0x1), region = 75 }
 0x2f5   :  { %4211 = vsyncpa [#allocation3], 1 }
 0x2f6   :  { %4213 = vsyncpa [#allocation3 + $0x1], 1 }

</bundles_post_ra>
